<compile_context>
chip_gen: v5e
topology: v5e:2x2
jax: 0.10.0
libtpu: 0.0.40
codegen_flags: <defaults>
</compile_context>

<pallas_src>
import jax
import jax.numpy as jnp
from jax import lax
from jax.experimental import pallas as pl
from jax.experimental.pallas import tpu as pltpu


# ----------------------------------------------------------------------------
# Kernel 1: fused qkv projection -> head-major Q, K, V
# ----------------------------------------------------------------------------
def _qkv_proj_kernel(x_ref, w_ref, b_ref, q_ref, k_ref, v_ref):
    # x_ref: (1, bp, D) bf16; w_ref: (D, 3D) bf16 (scale folded into Q columns);
    # b_ref: (1, 3D) f32; q/k/v_ref: (1, heads, bp, d) bf16.
    heads = q_ref.shape[1]
    d = q_ref.shape[3]
    D = heads * d

    x = x_ref[0]
    y = jnp.dot(x, w_ref[...], preferred_element_type=jnp.float32) + b_ref[...]
    y = y.astype(q_ref.dtype)                       # (bp, 3D) bf16

    # Column blocks are 128-lane aligned (d % 128 == 0): pure vreg-column
    # selection, no relayout / transpose.
    for h in range(heads):                          # static unroll
        q_ref[0, h] = y[:, h * d:(h + 1) * d]
        k_ref[0, h] = y[:, D + h * d:D + (h + 1) * d]
        v_ref[0, h] = y[:, 2 * D + h * d:2 * D + (h + 1) * d]


# ----------------------------------------------------------------------------
# Kernel 2a: single-pass attention (full per-head K/V in VMEM) + output projection
# ----------------------------------------------------------------------------
def _attn_full_kv_kernel(q_ref, k_ref, v_ref, wout_ref, bout_ref, o_ref):
    # grid = (B, q_tiles, heads); output block (1, bq, D) f32 is resident across
    # the heads axis (its index_map ignores h) and used as the accumulator.
    h = pl.program_id(2)

    @pl.when(h == 0)
    def _():
        o_ref[0] = jnp.broadcast_to(bout_ref[...], o_ref.shape[1:]).astype(o_ref.dtype)

    q = q_ref[0, 0]          # (bq, d) bf16, already scaled by head_dim**-0.5
    k = k_ref[0, 0]          # (N,  d) bf16
    v = v_ref[0, 0]          # (N,  d) bf16

    s = lax.dot_general(q, k, (((1,), (1,)), ((), ())),
                        preferred_element_type=jnp.float32)       # (bq, N) f32
    m = jnp.max(s, axis=-1, keepdims=True)
    p = jnp.exp(s - m)
    l = jnp.sum(p, axis=-1, keepdims=True)
    pv = jnp.dot(p.astype(v.dtype), v, preferred_element_type=jnp.float32)  # (bq, d)

    head_out = (pv * pl.reciprocal(l, approx=False)).astype(wout_ref.dtype)
    o_ref[0] += jnp.dot(head_out, wout_ref[...], preferred_element_type=jnp.float32)


# ----------------------------------------------------------------------------
# Kernel 2b: flash attention (online softmax over kv tiles) + output projection
# ----------------------------------------------------------------------------
def _flash_attn_kernel(q_ref, k_ref, v_ref, wout_ref, bout_ref, o_ref,
                       m_scr, l_scr, acc_scr):
    # grid = (B, q_tiles, heads, kv_tiles)
    h = pl.program_id(2)
    ki = pl.program_id(3)
    n_kv = pl.num_programs(3)

    # The output block is resident across (h, ki); initialize it with the bias once.
    @pl.when(jnp.logical_and(h == 0, ki == 0))
    def _():
        o_ref[0] = jnp.broadcast_to(bout_ref[...], o_ref.shape[1:]).astype(o_ref.dtype)

    # Reset online-softmax state at the start of each (batch, q_tile, head).
    @pl.when(ki == 0)
    def _():
        m_scr[...] = jnp.full(m_scr.shape, -jnp.inf, dtype=m_scr.dtype)
        l_scr[...] = jnp.zeros_like(l_scr)
        acc_scr[...] = jnp.zeros_like(acc_scr)

    q = q_ref[0, 0]          # (bq, d) bf16, pre-scaled
    k = k_ref[0, 0]          # (bk, d) bf16
    v = v_ref[0, 0]          # (bk, d) bf16

    s = lax.dot_general(q, k, (((1,), (1,)), ((), ())),
                        preferred_element_type=jnp.float32)       # (bq, bk) f32

    m_prev = m_scr[...]
    m_new = jnp.maximum(m_prev, jnp.max(s, axis=-1, keepdims=True))
    alpha = jnp.exp(m_prev - m_new)
    p = jnp.exp(s - m_new)

    l_scr[...] = alpha * l_scr[...] + jnp.sum(p, axis=-1, keepdims=True)
    acc_scr[...] = alpha * acc_scr[...] + jnp.dot(
        p.astype(v.dtype), v, preferred_element_type=jnp.float32)
    m_scr[...] = m_new

    # After the last kv tile: normalize (exact reciprocal, off the inner loop) and
    # project this head's output into the resident f32 output block.
    @pl.when(ki == n_kv - 1)
    def _():
        inv_l = pl.reciprocal(l_scr[...], approx=False)
        head_out = (acc_scr[...] * inv_l).astype(wout_ref.dtype)
        o_ref[0] += jnp.dot(head_out, wout_ref[...],
                            preferred_element_type=jnp.float32)


# ----------------------------------------------------------------------------
# Helpers
# ----------------------------------------------------------------------------
def _physical_vmem_bytes():
    default = 64 * 1024 * 1024
    try:
        info = pltpu.get_tpu_info()
    except Exception:
        return default
    for attr in ("vmem_capacity_bytes", "vmem_bytes", "vmem_size_bytes"):
        try:
            v = int(getattr(info, attr))
        except (AttributeError, TypeError, ValueError):
            continue
        if v > 0:
            return v
    return default


def _vmem_limit(needed_bytes, phys_bytes):
    # Generation-aware ceiling: ~102 MiB on v5e/v6e (128 MiB physical),
    # ~51 MiB on v7x (64 MiB physical), with a 32 MiB floor.
    ceiling = max(32 * 1024 * 1024, int(phys_bytes * 0.8))
    want = max(32 * 1024 * 1024, int(1.5 * needed_bytes))
    return int(min(ceiling, want))


def _pick_block(n, target, multiple=8):
    target = min(target, n)
    for c in range(target, 0, -1):
        if n % c == 0 and c % multiple == 0:
            return c
    return n  # full extent is always a legal block


# ----------------------------------------------------------------------------
# Wrapper
# ----------------------------------------------------------------------------
def self_attention_3d(x, w_qkv, b_qkv, w_out, b_out, *, heads,
                      block_q=256, block_kv=512, block_proj=512,
                      full_kv_max_seq=1024):
    """x: (B, N, D).  w_qkv: (3D, D) (PyTorch Linear layout), b_qkv: (3D,),
    w_out: (D, D), b_out: (D,)."""
    B, N, D = x.shape
    assert D % heads == 0
    d = D // heads
    assert d % 128 == 0, "head_dim must be a multiple of 128 for lane-dense tiles"

    bp = _pick_block(N, block_proj)
    bq = _pick_block(N, block_q)

    scale = d ** (-0.5)
    w = jnp.asarray(w_qkv, jnp.float32).T                    # (D, 3D) (in, out)
    bias = jnp.asarray(b_qkv, jnp.float32)
    # Fold the softmax scale into the Q projection (columns 0..D-1 of (D, 3D)).
    w = w.at[:, :D].multiply(scale)
    bias = bias.at[:D].multiply(scale)

    wqkv_t = w.astype(jnp.bfloat16)                          # (D, 3D)
    bqkv2 = bias.reshape(1, 3 * D)                           # f32
    wout_t = jnp.asarray(w_out, jnp.float32).T.astype(jnp.bfloat16)   # (D, D)
    bout2 = jnp.asarray(b_out, jnp.float32).reshape(1, D)    # f32

    x_bf = x.astype(jnp.bfloat16)
    phys_vmem = _physical_vmem_bytes()

    # ---------------- Kernel 1: qkv projection -> head-major Q/K/V ----------------
    proj_need = (2 * bp * D * 2                # x block (bf16), double-buffered
                 + 2 * D * 3 * D * 2           # resident (D, 3D) weight, 2 buffers
                 + 2 * 3 * D * 4               # bias
                 + 3 * 2 * bp * D * 2          # q/k/v output blocks
                 + bp * 3 * D * 6              # f32 matmul result + bf16 copy
                 + (1 << 20))                  # slack
    q_hm, k_hm, v_hm = pl.pallas_call(
        _qkv_proj_kernel,
        out_shape=(jax.ShapeDtypeStruct((B, heads, N, d), jnp.bfloat16),
                   jax.ShapeDtypeStruct((B, heads, N, d), jnp.bfloat16),
                   jax.ShapeDtypeStruct((B, heads, N, d), jnp.bfloat16)),
        grid_spec=pltpu.PrefetchScalarGridSpec(
            num_scalar_prefetch=0,
            grid=(B, N // bp),
            in_specs=[
                pl.BlockSpec((1, bp, D), lambda b_, i: (b_, i, 0)),
                pl.BlockSpec((D, 3 * D), lambda b_, i: (0, 0)),
                pl.BlockSpec((1, 3 * D), lambda b_, i: (0, 0)),
            ],
            out_specs=(
                pl.BlockSpec((1, heads, bp, d), lambda b_, i: (b_, 0, i, 0)),
                pl.BlockSpec((1, heads, bp, d), lambda b_, i: (b_, 0, i, 0)),
                pl.BlockSpec((1, heads, bp, d), lambda b_, i: (b_, 0, i, 0)),
            ),
        ),
        compiler_params=pltpu.CompilerParams(
            dimension_semantics=("parallel", "parallel"),
            vmem_limit_bytes=_vmem_limit(proj_need, phys_vmem)),
    )(x_bf, wqkv_t, bqkv2)

    # ------- Kernel 2: attention + output projection (f32 output accumulator) -------
    if N <= full_kv_max_seq:
        # Single pass: full per-head K/V resident; no online-softmax rescale.
        attn_need = (2 * bq * d * 2            # q block
                     + 2 * 2 * N * d * 2       # full K, V planes (double-buffered)
                     + 2 * d * D * 2           # W_out head slice
                     + 2 * D * 4               # bias
                     + 2 * bq * D * 4          # resident f32 output block
                     + 3 * bq * N * 4          # s, p (f32) + bf16 copy temporaries
                     + bq * d * 4              # pv
                     + (1 << 20))
        out_f32 = pl.pallas_call(
            _attn_full_kv_kernel,
            out_shape=jax.ShapeDtypeStruct((B, N, D), jnp.float32),
            grid_spec=pltpu.PrefetchScalarGridSpec(
                num_scalar_prefetch=0,
                grid=(B, N // bq, heads),
                in_specs=[
                    pl.BlockSpec((1, 1, bq, d), lambda b_, qi, h: (b_, h, qi, 0)),
                    pl.BlockSpec((1, 1, N, d), lambda b_, qi, h: (b_, h, 0, 0)),
                    pl.BlockSpec((1, 1, N, d), lambda b_, qi, h: (b_, h, 0, 0)),
                    pl.BlockSpec((d, D), lambda b_, qi, h: (h, 0)),
                    pl.BlockSpec((1, D), lambda b_, qi, h: (0, 0)),
                ],
                out_specs=pl.BlockSpec((1, bq, D), lambda b_, qi, h: (b_, qi, 0)),
            ),
            compiler_params=pltpu.CompilerParams(
                dimension_semantics=("parallel", "parallel", "arbitrary"),
                vmem_limit_bytes=_vmem_limit(attn_need, phys_vmem)),
        )(q_hm, k_hm, v_hm, wout_t, bout2)
    else:
        bk = _pick_block(N, block_kv)
        attn_need = (2 * bq * d * 2            # q block
                     + 2 * 2 * bk * d * 2      # K, V tiles
                     + 2 * d * D * 2           # W_out head slice
                     + 2 * D * 4               # bias
                     + 2 * bq * D * 4          # resident f32 output block
                     + 3 * bq * bk * 4         # s, p temporaries
                     + bq * d * 4              # PV accumulator
                     + 2 * bq * 128 * 4        # m, l scratch (lane-padded)
                     + (1 << 20))
        out_f32 = pl.pallas_call(
            _flash_attn_kernel,
            out_shape=jax.ShapeDtypeStruct((B, N, D), jnp.float32),
            grid_spec=pltpu.PrefetchScalarGridSpec(
                num_scalar_prefetch=0,
                grid=(B, N // bq, heads, N // bk),
                in_specs=[
                    pl.BlockSpec((1, 1, bq, d), lambda b_, qi, h, ki: (b_, h, qi, 0)),
                    pl.BlockSpec((1, 1, bk, d), lambda b_, qi, h, ki: (b_, h, ki, 0)),
                    pl.BlockSpec((1, 1, bk, d), lambda b_, qi, h, ki: (b_, h, ki, 0)),
                    pl.BlockSpec((d, D), lambda b_, qi, h, ki: (h, 0)),
                    pl.BlockSpec((1, D), lambda b_, qi, h, ki: (0, 0)),
                ],
                out_specs=pl.BlockSpec((1, bq, D),
                                       lambda b_, qi, h, ki: (b_, qi, 0)),
                scratch_shapes=[
                    pltpu.VMEM((bq, 1), jnp.float32),   # running max
                    pltpu.VMEM((bq, 1), jnp.float32),   # running sum
                    pltpu.VMEM((bq, d), jnp.float32),   # per-head PV accumulator
                ],
            ),
            compiler_params=pltpu.CompilerParams(
                dimension_semantics=("parallel", "parallel",
                                     "arbitrary", "arbitrary"),
                vmem_limit_bytes=_vmem_limit(attn_need, phys_vmem)),
        )(q_hm, k_hm, v_hm, wout_t, bout2)

    return out_f32 if x.dtype == jnp.float32 else out_f32.astype(x.dtype)


# ----------------------------------------------------------------------------
# Pure-JAX reference (mirrors the PyTorch forward exactly, f32)
# ----------------------------------------------------------------------------
def _reference(x, w_qkv, b_qkv, w_out, b_out, heads):
    B, N, D = x.shape
    d = D // heads
    scale = d ** (-0.5)
    qkv = x @ w_qkv.T + b_qkv                     # (B, N, 3D)
    q, k, v = jnp.split(qkv, 3, axis=-1)

    def rearr(t):                                  # 'b n (h d) -> b h n d'
        return t.reshape(B, N, heads, d).transpose(0, 2, 1, 3)

    q, k, v = rearr(q), rearr(k), rearr(v)
    dots = jnp.einsum("bhnd,bhmd->bhnm", q, k) * scale
    attn = jax.nn.softmax(dots, axis=-1)
    out = jnp.einsum("bhnm,bhmd->bhnd", attn, v)
    out = out.transpose(0, 2, 1, 3).reshape(B, N, D)   # 'b h n d -> b n (h d)'
    return out @ w_out.T + b_out


if __name__ == "__main__":
    # Small but hardware-aligned shapes: head_dim = 128.
    B, N, D, HEADS = 2, 256, 256, 2

    key = jax.random.PRNGKey(0)
    kx, k1, k2, k3, k4 = jax.random.split(key, 5)

    x = jax.random.normal(kx, (B, N, D), dtype=jnp.float32)
    w_qkv = jax.random.normal(k1, (3 * D, D), dtype=jnp.float32) * (D ** -0.5)
    b_qkv = jax.random.normal(k2, (3 * D,), dtype=jnp.float32) * 0.02
    w_out = jax.random.normal(k3, (D, D), dtype=jnp.float32) * (D ** -0.5)
    b_out = jax.random.normal(k4, (D,), dtype=jnp.float32) * 0.02

    ref = _reference(x, w_qkv, b_qkv, w_out, b_out, HEADS)
    ref_scale = max(float(jnp.max(jnp.abs(ref))), 1.0)

    # Path 1: full-KV single-pass attention kernel (N <= full_kv_max_seq).
    out1 = self_attention_3d(x, w_qkv, b_qkv, w_out, b_out, heads=HEADS)
    out1 = jax.block_until_ready(out1)
    assert out1.shape == (B, N, D)
    err1 = float(jnp.max(jnp.abs(out1 - ref)))
    assert err1 <= 5e-2 * ref_scale, f"full-kv mismatch: max_err={err1}"

    # Path 2: force the online-softmax flash kernel (multiple kv tiles).
    out2 = self_attention_3d(x, w_qkv, b_qkv, w_out, b_out, heads=HEADS,
                             block_q=128, block_kv=128, full_kv_max_seq=0)
    out2 = jax.block_until_ready(out2)
    assert out2.shape == (B, N, D)
    err2 = float(jnp.max(jnp.abs(out2 - ref)))
    assert err2 <= 5e-2 * ref_scale, f"flash mismatch: max_err={err2}"

    print("KERNEL_OK")
</pallas_src>

<mosaic_0001>
module attributes {stable_mosaic.version = 11 : i64} {
  func.func @_qkv_proj_kernel(%arg0: i32, %arg1: i32, %arg2: memref<1x256x256xbf16, #tpu.memory_space<vmem>>, %arg3: memref<256x768xbf16, #tpu.memory_space<vmem>>, %arg4: memref<1x768xf32, #tpu.memory_space<vmem>>, %arg5: memref<1x2x256x128xbf16, #tpu.memory_space<vmem>>, %arg6: memref<1x2x256x128xbf16, #tpu.memory_space<vmem>>, %arg7: memref<1x2x256x128xbf16, #tpu.memory_space<vmem>>) attributes {dimension_semantics = [#tpu.dimension_semantics<parallel>, #tpu.dimension_semantics<parallel>], iteration_bounds = array<i64: 2, 1>, scalar_prefetch = 0 : i64, scratch_operands = 0 : i64, tpu.core_type = #tpu.core_type<tc>, window_params = [{transform_indices = @transform_0, window_bounds = array<i64: 1, 256, 256>}, {pipeline_mode = #tpu.pipeline_mode<synchronous>, transform_indices = @transform_1, window_bounds = array<i64: 256, 768>}, {pipeline_mode = #tpu.pipeline_mode<synchronous>, transform_indices = @transform_2, window_bounds = array<i64: 1, 768>}, {transform_indices = @transform_3, window_bounds = array<i64: 1, 2, 256, 128>}, {transform_indices = @transform_4, window_bounds = array<i64: 1, 2, 256, 128>}, {transform_indices = @transform_5, window_bounds = array<i64: 1, 2, 256, 128>}]} {
    %c0 = arith.constant 0 : index
    %c0_0 = arith.constant 0 : index
    %c0_1 = arith.constant 0 : index
    %0 = vector.load %arg2[%c0, %c0_0, %c0_1] : memref<1x256x256xbf16, #tpu.memory_space<vmem>>, vector<1x256x256xbf16>
    %1 = vector.shape_cast %0 : vector<1x256x256xbf16> to vector<256x256xbf16>
    %c0_2 = arith.constant 0 : index
    %c0_3 = arith.constant 0 : index
    %2 = vector.load %arg3[%c0_2, %c0_3] : memref<256x768xbf16, #tpu.memory_space<vmem>>, vector<256x768xbf16>
    %cst = arith.constant dense<0.000000e+00> : vector<256x768xf32>
    %3 = tpu.matmul %1, %2, %cst {dimension_numbers = #tpu.dot_dimension_numbers<[1], [0], [0], [1], [0, 0, 1, 1], [], []>} : vector<256x256xbf16>, vector<256x768xbf16>, vector<256x768xf32> -> vector<256x768xf32>
    %c0_4 = arith.constant 0 : index
    %c0_5 = arith.constant 0 : index
    %4 = vector.load %arg4[%c0_4, %c0_5] : memref<1x768xf32, #tpu.memory_space<vmem>>, vector<1x768xf32>
    %5 = vector.broadcast %4 : vector<1x768xf32> to vector<256x768xf32>
    %6 = arith.addf %3, %5 : vector<256x768xf32>
    %7 = arith.truncf %6 : vector<256x768xf32> to vector<256x768xbf16>
    %8 = vector.extract_strided_slice %7 {offsets = [0, 0], sizes = [256, 128], strides = [1, 1]} : vector<256x768xbf16> to vector<256x128xbf16>
    %c0_6 = arith.constant 0 : index
    %c0_7 = arith.constant 0 : index
    %c0_8 = arith.constant 0 : index
    %c0_9 = arith.constant 0 : index
    %9 = vector.load %arg5[%c0_6, %c0_7, %c0_8, %c0_9] : memref<1x2x256x128xbf16, #tpu.memory_space<vmem>>, vector<1x1x256x128xbf16>
    %10 = vector.shape_cast %9 : vector<1x1x256x128xbf16> to vector<256x128xbf16>
    %11 = vector.shape_cast %8 : vector<256x128xbf16> to vector<1x1x256x128xbf16>
    tpu.vector_store %arg5[%c0_6, %c0_7, %c0_8, %c0_9], %11 {strides = array<i32>} : memref<1x2x256x128xbf16, #tpu.memory_space<vmem>>, vector<1x1x256x128xbf16>,
    %12 = vector.extract_strided_slice %7 {offsets = [0, 256], sizes = [256, 128], strides = [1, 1]} : vector<256x768xbf16> to vector<256x128xbf16>
    %c0_10 = arith.constant 0 : index
    %c0_11 = arith.constant 0 : index
    %c0_12 = arith.constant 0 : index
    %c0_13 = arith.constant 0 : index
    %13 = vector.load %arg6[%c0_10, %c0_11, %c0_12, %c0_13] : memref<1x2x256x128xbf16, #tpu.memory_space<vmem>>, vector<1x1x256x128xbf16>
    %14 = vector.shape_cast %13 : vector<1x1x256x128xbf16> to vector<256x128xbf16>
    %15 = vector.shape_cast %12 : vector<256x128xbf16> to vector<1x1x256x128xbf16>
    tpu.vector_store %arg6[%c0_10, %c0_11, %c0_12, %c0_13], %15 {strides = array<i32>} : memref<1x2x256x128xbf16, #tpu.memory_space<vmem>>, vector<1x1x256x128xbf16>,
    %16 = vector.extract_strided_slice %7 {offsets = [0, 512], sizes = [256, 128], strides = [1, 1]} : vector<256x768xbf16> to vector<256x128xbf16>
    %c0_14 = arith.constant 0 : index
    %c0_15 = arith.constant 0 : index
    %c0_16 = arith.constant 0 : index
    %c0_17 = arith.constant 0 : index
    %17 = vector.load %arg7[%c0_14, %c0_15, %c0_16, %c0_17] : memref<1x2x256x128xbf16, #tpu.memory_space<vmem>>, vector<1x1x256x128xbf16>
    %18 = vector.shape_cast %17 : vector<1x1x256x128xbf16> to vector<256x128xbf16>
    %19 = vector.shape_cast %16 : vector<256x128xbf16> to vector<1x1x256x128xbf16>
    tpu.vector_store %arg7[%c0_14, %c0_15, %c0_16, %c0_17], %19 {strides = array<i32>} : memref<1x2x256x128xbf16, #tpu.memory_space<vmem>>, vector<1x1x256x128xbf16>,
    %20 = vector.extract_strided_slice %7 {offsets = [0, 128], sizes = [256, 128], strides = [1, 1]} : vector<256x768xbf16> to vector<256x128xbf16>
    %c0_18 = arith.constant 0 : index
    %c1 = arith.constant 1 : index
    %c0_19 = arith.constant 0 : index
    %c0_20 = arith.constant 0 : index
    %21 = vector.load %arg5[%c0_18, %c1, %c0_19, %c0_20] : memref<1x2x256x128xbf16, #tpu.memory_space<vmem>>, vector<1x1x256x128xbf16>
    %22 = vector.shape_cast %21 : vector<1x1x256x128xbf16> to vector<256x128xbf16>
    %23 = vector.shape_cast %20 : vector<256x128xbf16> to vector<1x1x256x128xbf16>
    tpu.vector_store %arg5[%c0_18, %c1, %c0_19, %c0_20], %23 {strides = array<i32>} : memref<1x2x256x128xbf16, #tpu.memory_space<vmem>>, vector<1x1x256x128xbf16>,
    %24 = vector.extract_strided_slice %7 {offsets = [0, 384], sizes = [256, 128], strides = [1, 1]} : vector<256x768xbf16> to vector<256x128xbf16>
    %c0_21 = arith.constant 0 : index
    %c1_22 = arith.constant 1 : index
    %c0_23 = arith.constant 0 : index
    %c0_24 = arith.constant 0 : index
    %25 = vector.load %arg6[%c0_21, %c1_22, %c0_23, %c0_24] : memref<1x2x256x128xbf16, #tpu.memory_space<vmem>>, vector<1x1x256x128xbf16>
    %26 = vector.shape_cast %25 : vector<1x1x256x128xbf16> to vector<256x128xbf16>
    %27 = vector.shape_cast %24 : vector<256x128xbf16> to vector<1x1x256x128xbf16>
    tpu.vector_store %arg6[%c0_21, %c1_22, %c0_23, %c0_24], %27 {strides = array<i32>} : memref<1x2x256x128xbf16, #tpu.memory_space<vmem>>, vector<1x1x256x128xbf16>,
    %28 = vector.extract_strided_slice %7 {offsets = [0, 640], sizes = [256, 128], strides = [1, 1]} : vector<256x768xbf16> to vector<256x128xbf16>
    %c0_25 = arith.constant 0 : index
    %c1_26 = arith.constant 1 : index
    %c0_27 = arith.constant 0 : index
    %c0_28 = arith.constant 0 : index
    %29 = vector.load %arg7[%c0_25, %c1_26, %c0_27, %c0_28] : memref<1x2x256x128xbf16, #tpu.memory_space<vmem>>, vector<1x1x256x128xbf16>
    %30 = vector.shape_cast %29 : vector<1x1x256x128xbf16> to vector<256x128xbf16>
    %31 = vector.shape_cast %28 : vector<256x128xbf16> to vector<1x1x256x128xbf16>
    tpu.vector_store %arg7[%c0_25, %c1_26, %c0_27, %c0_28], %31 {strides = array<i32>} : memref<1x2x256x128xbf16, #tpu.memory_space<vmem>>, vector<1x1x256x128xbf16>,
    return
  }
  func.func @transform_0(%arg0: i32, %arg1: i32) -> (i32, i32, i32) {
    %c0_i32 = arith.constant 0 : i32
    %c0_i32_0 = arith.constant 0 : i32
    return %arg0, %arg1, %c0_i32 : i32, i32, i32
  }
  func.func @transform_1(%arg0: i32, %arg1: i32) -> (i32, i32) {
    %c0_i32 = arith.constant 0 : i32
    %c0_i32_0 = arith.constant 0 : i32
    %c0_i32_1 = arith.constant 0 : i32
    return %c0_i32, %c0_i32_0 : i32, i32
  }
  func.func @transform_2(%arg0: i32, %arg1: i32) -> (i32, i32) {
    %c0_i32 = arith.constant 0 : i32
    %c0_i32_0 = arith.constant 0 : i32
    %c0_i32_1 = arith.constant 0 : i32
    return %c0_i32, %c0_i32_0 : i32, i32
  }
  func.func @transform_3(%arg0: i32, %arg1: i32) -> (i32, i32, i32, i32) {
    %c0_i32 = arith.constant 0 : i32
    %c0_i32_0 = arith.constant 0 : i32
    %c0_i32_1 = arith.constant 0 : i32
    return %arg0, %c0_i32, %arg1, %c0_i32_0 : i32, i32, i32, i32
  }
  func.func @transform_4(%arg0: i32, %arg1: i32) -> (i32, i32, i32, i32) {
    %c0_i32 = arith.constant 0 : i32
    %c0_i32_0 = arith.constant 0 : i32
    %c0_i32_1 = arith.constant 0 : i32
    return %arg0, %c0_i32, %arg1, %c0_i32_0 : i32, i32, i32, i32
  }
  func.func @transform_5(%arg0: i32, %arg1: i32) -> (i32, i32, i32, i32) {
    %c0_i32 = arith.constant 0 : i32
    %c0_i32_0 = arith.constant 0 : i32
    %c0_i32_1 = arith.constant 0 : i32
    return %arg0, %c0_i32, %arg1, %c0_i32_0 : i32, i32, i32, i32
  }
}

</mosaic_0001>

<bundles_post_ra>
// kernel: tpu_custom_call.1
= control target key start
LH: loop header
LB: loop body
LE: loop exit
PB: predicated region body
PF: predicated region fallthrough
CT: control target
= control target key end

     0   :  { %s5309_s0 = inlined_call_operand.hbm [shape: bf16[2,256,256], index: 0, kind: input, shape index: {}]   ;;  %s5310_s1 = inlined_call_operand.hbm [shape: bf16[256,768], index: 1, kind: input, shape index: {}]   ;;  %s5311_s2 = inlined_call_operand.hbm [shape: f32[1,768], index: 2, kind: input, shape index: {}]   ;;  %s5312_s3 = inlined_call_operand.hbm [shape: bf16[2,2,256,128], index: 3, kind: output, shape index: {0}]   ;;  %s5313_s4 = inlined_call_operand.hbm [shape: bf16[2,2,256,128], index: 4, kind: output, shape index: {1}]   ;;  %s5314_s5 = inlined_call_operand.hbm [shape: bf16[2,2,256,128], index: 5, kind: output, shape index: {2}]  }
   0x1   :  { %5317 = sst [smem:[#allocation17_spill]] %s5310_s1 }
   0x2   :  { %5318 = sst [smem:[#allocation18_spill]] %s5311_s2 }
   0x3   :  { %11 = vsyncpa [#allocation3], 0 }
   0x4   :  { %13 = vsyncpa [#allocation3 + $0x1], 0 }
   0x5   :  { %14 = vsyncpa [#allocation6], 0 }
   0x6   :  { %15 = vsyncpa [#allocation4], 0 }
   0x7   :  { %17 = vsyncpa [#allocation4 + $0x1], 0 }
   0x8   :  { %18 = vsyncpa [#allocation10], 0 }
   0x9   :  { %20 = vsyncpa [#allocation10 + $0x1], 0  ;;  %s4419_s18 = smov 0   ;;  %s4421_s19 = smov 0  }
   0xa   :  { %s4423_s20 = smov 0   ;;  %s4425_s21 = smov 0  }
   0xb   :  { %s4427_s22 = smov 0   ;;  %s4429_s23 = smov 0  }
   0xc LB: > { %s4450_s24 = sadd.s32 4294967295, %s4379_s23   ;;  %s5315_s25 = sadd.s32 4294967294, %s4379_s23   ;;  %s4379_s23 = sphi %s4429_s23, %s26_s23   ;;  %s4375_s22 = sphi %s4427_s22, %s5333_s22   ;;  %s4371_s21 = sphi %s4425_s21, %s5332_s21   ;;  %s4367_s20 = sphi %s4423_s20, %s5331_s20   ;;  %s4363_s19 = sphi %s4421_s19, %s5330_s19   ;;  %s4359_s18 = sphi %s4419_s18, %s5329_s18  }
   0xd   : > { %p60_p0 = scmp.ne.s32.totalorder %s4363_s19, %s4359_s18  ;;  %p61_p1 = scmp.eq.s32.totalorder %s4450_s24, 0 }
   0xe   : > { %p128_p2 = scmp.eq.s32.totalorder %s4450_s24, 1  ;;  %p134_p3 = scmp.eq.s32.totalorder %s5315_s25, 1 }
   0xf   : > { %p4461_p4 = por %p61_p1, %p60_p0  ;;  %p2993_p5 = scmp.ge.s32.totalorder %s4379_s23, 1 }
  0x10   : > { %p4466_p6 = por %p134_p3, %p60_p0  ;;  %p197_p7 = scmp.lt.s32.totalorder %s4379_s23, 3 }
  0x11   : > { %s5321_s1 = sld [smem:[#allocation17_spill]]  ;;  %s4381_s7 = smov [#allocation5]  }
  0x12   : > { %p4474_p8 = pnand %p2993_p5, %p197_p7  ;;  %s210_s8 = sshll.u32 %s4381_s7, 4  ;;  %s211_s8 = int_to_ptr.vmem [resolvable:$true] %s210_s8 }
  0x13   : > { %p2996_p11 = scmp.ge.s32.totalorder %s4379_s23, 2  ;;  %s5323_s2 = sld [smem:[#allocation18_spill]] }
  0x14   : > { %p4059_p9 = pneg %p4474_p8  ;;  %s4382_s12 = smov 384  }
  0x15   : > { %s4383_s13 = smov 24   ;;  %s4384_s14 = smov [#allocation7]  }
  0x16   : > { %p4060_p10 = pnand %p4059_p9, %p61_p1  ;;  %s225_s15 = sshll.u32 %s4384_s14, 4  ;;  %s226_s15 = int_to_ptr.vmem [resolvable:$true] %s225_s15 }
  0x17   : > { %s208_s30 = sshll.u32 %s5321_s1, 4  ;;  %s38_s16 = sadd.s32 1, %s4375_s22  ;;  %s209_s30 = int_to_ptr.hbm [resolvable:$true] %s208_s30 }
  0x18   : > { %4062 = dma.hbm_to_vmem [thread:$0]  (!%p4060_p10), %s209_s30, 12288, %s211_s8, [#allocation6], %s4382_s12, %s4382_s12, %s4383_s13  }
  0x19   : > { %s223_s11 = sshll.u32 %s5323_s2, 4  ;;  %s47_s17 = sadd.s32 1, %s4367_s20  ;;  %s224_s11 = int_to_ptr.hbm [resolvable:$true] %s223_s11 }
  0x1a   : > { %4065 = dma.hbm_to_vmem [thread:$0]  (!%p4060_p10), %s224_s11, 96, %s226_s15, [#allocation6]  }
  0x1b   : > { %p40_p12 = scmp.ge.s32.totalorder %s38_s16, 2  ;;  %p54_p13 = scmp.ne.s32.totalorder %s4367_s20, %s4363_s19 }
  0x1c   : > { %p55_p0 = scmp.eq.s32.totalorder %s4379_s23, 0  ;;  %p4082_p3 = scmp.lt.s32.totalorder %s4379_s23, 2 }
  0x1d   : > { %s5335_s16 = smov (%p40_p12, %s38_s16), 0  ;;  %p4500_p7 = por %p128_p2, %p54_p13 }
  0x1e   : > { %5324 = sst [smem:[#allocation16_spill]] %s5335_s16  ;;  %p4494_p5 = por %p55_p0, %p54_p13 }
  0x1f   : > { %s42_s30 = ssub.s32 %s4375_s22, %s5335_s16  ;;  %s236_s7 = sand.u32 1, %s4367_s20  }
  0x20   : > { %p45_p9 = scmp.eq.s32.totalorder %s42_s30, 0  ;;  %s2997_s8 = sshll.u32 %s236_s7, 8 }
  0x21   : > { %s3626_s9 = sshll.u32 %s4375_s22, 8  ;;  %s240_s15 = scalar_lea.vmem [#allocation2], %s2997_s8 }
  0x22   : > { %s4509_s10 = scalar_select %p45_p9, %s4367_s20, %s47_s17  }
  0x23   : > { %s248_s13 = scalar_lea.hbm %s5309_s0, %s3626_s9  ;;  %s251_s25 = sshll.u32 %s240_s15, 4  ;;  %s252_s25 = int_to_ptr.vmem [resolvable:$true] %s251_s25 }
  0x24   : > { %s249_s14 = sshll.u32 %s248_s13, 4  ;;  %p4067_p2 = pnand %p4082_p3, %p4494_p5  ;;  %s250_s14 = int_to_ptr.hbm [resolvable:$true] %s249_s14 }
  0x25   : > { %s237_s1 = scalar_lea.sflag [#allocation3], %s236_s7  ;;  %s4385_s2 = smov 128  }
  0x26   : > { %s4386_s16 = smov 8   ;;  %263 = sbr.rel (%p4474_p8) target bundleno = 991 (0x3df), region = 32 }
  0x27   : > { %4069 = dma.hbm_to_vmem [thread:$0]  (!%p4067_p2), %s250_s14, 4096, %s252_s25, %s237_s1, %s4385_s2, %s4385_s2, %s4386_s16  }
  0x28   : > { %s4521_s17 = sand.u32 (!%p4474_p8), 1, %s4363_s19  }
  0x29   : > { %s4524_s30 = sshll.u32 (!%p4474_p8), %s4521_s17, 8  ;;  %s266_s8 = scalar_lea.sflag (!%p4474_p8), [#allocation3], %s4521_s17 }
  0x2a   : > { %s4528_s28 = scalar_lea.vmem (!%p4474_p8), [#allocation2], %s4524_s30 }
  0x2b   : > { %4342 = dma.done.wait (%p4461_p4), %s266_s8, 4096  }
  0x2c   : > { %4344 = vsyncadd (%p4461_p4), %s266_s8, 4294963200 }
  0x2d   : > { %4346 = dma.done.wait (%p61_p1), [#allocation6], 12384  }
  0x2e   : > { %4348 = vsyncadd (%p61_p1), [#allocation6], 4294954912  ;;  %v3305_v0 = vld [vmem:[#allocation5 + $0x150] sm:$0xf]  ;;  %v3704_v1 = vld [vmem:[#allocation5 + $0x164] sm:$0xf0] }
  0x2f   : > { %v3497_v2 = vld [vmem:[#allocation5 + $0x2d0] sm:$0xf]  ;;  %v3306_v3 = vor.u32 %v3704_v1, %v3305_v0  ;;  %v3752_v4 = vld [vmem:[#allocation5 + $0x2e4] sm:$0xf0]  ;;  %v3701_v5 = vld [vmem:[#allocation5 + $0x154] sm:$0xf] }
  0x30   : > { %v3307_v6 = vld [vmem:[#allocation5 + $0x168] sm:$0xf0]  ;;  %v3498_v7 = vor.u32 %v3752_v4, %v3497_v2  ;;  %v3749_v9 = vld [vmem:[#allocation5 + $0x2d4] sm:$0xf]  ;;  %v3281_v11 = vld [vmem:[#allocation5 + $0x120] sm:$0xf] }
  0x31   : > { %v3310_v8 = vor.u32 %v3701_v5, %v3307_v6  ;;  %v3499_v10 = vld [vmem:[#allocation5 + $0x2e8] sm:$0xf0]  ;;  %1103 = vmatpush.bf16.msra.mxu0 %v3306_v3  ;;  %v3698_v13 = vld [vmem:[#allocation5 + $0x134] sm:$0xf0]  ;;  %v3473_v14 = vld [vmem:[#allocation5 + $0x2a0] sm:$0xf] }
  0x32   : > { %v3502_v12 = vor.u32 %v3749_v9, %v3499_v10  ;;  %v3746_v15 = vld [vmem:[#allocation5 + $0x2b4] sm:$0xf0]  ;;  %1192 = vmatpush.bf16.msra.mxu1 %v3498_v7  ;;  %v3282_v16 = vor.u32 %v3698_v13, %v3281_v11  ;;  %v3695_v18 = vld [vmem:[#allocation5 + $0x124] sm:$0xf]  ;;  %v3283_v19 = vld [vmem:[#allocation5 + $0x138] sm:$0xf0] }
  0x33   : > { %1281 = vmatpush.bf16.msra.mxu2 %v3310_v8  ;;  %v3474_v17 = vor.u32 %v3746_v15, %v3473_v14  ;;  %v3743_v20 = vld [vmem:[#allocation5 + $0x2a4] sm:$0xf]  ;;  %v3286_v21 = vor.u32 %v3695_v18, %v3283_v19  ;;  %v3475_v22 = vld [vmem:[#allocation5 + $0x2b8] sm:$0xf0]  ;;  %v3257_v23 = vld [vmem:[#allocation5 + $0xf0] sm:$0xf] }
  0x34   : > { %1370 = vmatpush.bf16.msra.mxu3 %v3502_v12  ;;  %v3692_v24 = vld [vmem:[#allocation5 + $0x104] sm:$0xf0]  ;;  %v3478_v25 = vor.u32 %v3743_v20, %v3475_v22  ;;  %v3449_v26 = vld [vmem:[#allocation5 + $0x270] sm:$0xf]  ;;  %v3689_v28 = vld [vmem:[#allocation5 + $0xf4] sm:$0xf] }
  0x35   : > { %v3740_v27 = vld [vmem:[#allocation5 + $0x284] sm:$0xf0]  ;;  %1104 = vmatpush.bf16.msra.mxu0 %v3282_v16  ;;  %v3258_v29 = vor.u32 %v3692_v24, %v3257_v23  ;;  %v3259_v30 = vld [vmem:[#allocation5 + $0x108] sm:$0xf0]  ;;  %v3737_v31 = vld [vmem:[#allocation5 + $0x274] sm:$0xf] }
  0x36   : > { %v3451_v32 = vld [vmem:[#allocation5 + $0x288] sm:$0xf0]  ;;  %1193 = vmatpush.bf16.msra.mxu1 %v3474_v17  ;;  %v3450_v33 = vor.u32 %v3740_v27, %v3449_v26  ;;  %v3262_v34 = vor.u32 %v3689_v28, %v3259_v30  ;;  %v3233_v35 = vld [vmem:[#allocation5 + $0xc0] sm:$0xf]  ;;  %v3686_v36 = vld [vmem:[#allocation5 + $0xd4] sm:$0xf0] }
  0x37   : > { %1282 = vmatpush.bf16.msra.mxu2 %v3286_v21  ;;  %v3425_v37 = vld [vmem:[#allocation5 + $0x240] sm:$0xf]  ;;  %v3454_v38 = vor.u32 %v3737_v31, %v3451_v32  ;;  %v3734_v39 = vld [vmem:[#allocation5 + $0x254] sm:$0xf0]  ;;  %v3683_v40 = vld [vmem:[#allocation5 + $0xc4] sm:$0xf]  ;;  %v3234_v44 = vor.u32 %v3686_v36, %v3233_v35 }
  0x38   : > { %1371 = vmatpush.bf16.msra.mxu3 %v3478_v25  ;;  %v3235_v41 = vld [vmem:[#allocation5 + $0xd8] sm:$0xf0]  ;;  %v3731_v42 = vld [vmem:[#allocation5 + $0x244] sm:$0xf]  ;;  %v3426_v45 = vor.u32 %v3734_v39, %v3425_v37  ;;  %v3209_v47 = vld [vmem:[#allocation5 + $0x90] sm:$0xf] }
  0x39   : > { %v3427_v43 = vld [vmem:[#allocation5 + $0x258] sm:$0xf0]  ;;  %1105 = vmatpush.bf16.msra.mxu0 %v3258_v29  ;;  %v3238_v46 = vor.u32 %v3683_v40, %v3235_v41  ;;  %v3680_v48 = vld [vmem:[#allocation5 + $0xa4] sm:$0xf0]  ;;  %v3401_v49 = vld [vmem:[#allocation5 + $0x210] sm:$0xf] }
  0x3a   : > { %1194 = vmatpush.bf16.msra.mxu1 %v3450_v33  ;;  %v3430_v50 = vor.u32 %v3731_v42, %v3427_v43  ;;  %v3728_v51 = vld [vmem:[#allocation5 + $0x224] sm:$0xf0]  ;;  %v3677_v52 = vld [vmem:[#allocation5 + $0x94] sm:$0xf]  ;;  %v3211_v53 = vld [vmem:[#allocation5 + $0xa8] sm:$0xf0]  ;;  %v3210_v56 = vor.u32 %v3680_v48, %v3209_v47 }
  0x3b   : > { %1283 = vmatpush.bf16.msra.mxu2 %v3262_v34  ;;  %v3725_v54 = vld [vmem:[#allocation5 + $0x214] sm:$0xf]  ;;  %v3403_v55 = vld [vmem:[#allocation5 + $0x228] sm:$0xf0]  ;;  %v3402_v57 = vor.u32 %v3728_v51, %v3401_v49  ;;  %v3214_v58 = vor.u32 %v3677_v52, %v3211_v53  ;;  %v3185_v59 = vld [vmem:[#allocation5 + $0x60] sm:$0xf] }
  0x3c   : > { %1372 = vmatpush.bf16.msra.mxu3 %v3454_v38  ;;  %v3674_v60 = vld [vmem:[#allocation5 + $0x74] sm:$0xf0]  ;;  %v3377_v61 = vld [vmem:[#allocation5 + $0x1e0] sm:$0xf]  ;;  %v3406_v62 = vor.u32 %v3725_v54, %v3403_v55  ;;  %v3671_v0 = vld [vmem:[#allocation5 + $0x64] sm:$0xf] }
  0x3d   : > { %1106 = vmatpush.bf16.msra.mxu0 %v3234_v44  ;;  %v3722_v63 = vld [vmem:[#allocation5 + $0x1f4] sm:$0xf0]  ;;  %v3187_v1 = vld [vmem:[#allocation5 + $0x78] sm:$0xf0]  ;;  %v3719_v2 = vld [vmem:[#allocation5 + $0x1e4] sm:$0xf]  ;;  %v3186_v4 = vor.u32 %v3674_v60, %v3185_v59 }
  0x3e   : > { %1195 = vmatpush.bf16.msra.mxu1 %v3426_v45  ;;  %v3379_v3 = vld [vmem:[#allocation5 + $0x1f8] sm:$0xf0]  ;;  %v3378_v5 = vor.u32 %v3722_v63, %v3377_v61  ;;  %v3190_v6 = vor.u32 %v3671_v0, %v3187_v1  ;;  %v3161_v7 = vld [vmem:[#allocation5 + $0x30] sm:$0xf]  ;;  %v3668_v8 = vld [vmem:[#allocation5 + $0x44] sm:$0xf0] }
  0x3f   : > { %1284 = vmatpush.bf16.msra.mxu2 %v3238_v46  ;;  %v3353_v9 = vld [vmem:[#allocation5 + $0x1b0] sm:$0xf]  ;;  %v3382_v10 = vor.u32 %v3719_v2, %v3379_v3  ;;  %v3716_v11 = vld [vmem:[#allocation5 + $0x1c4] sm:$0xf0]  ;;  %v3665_v12 = vld [vmem:[#allocation5 + $0x34] sm:$0xf]  ;;  %v3162_v16 = vor.u32 %v3668_v8, %v3161_v7 }
  0x40   : > { %1373 = vmatpush.bf16.msra.mxu3 %v3430_v50  ;;  %v3163_v13 = vld [vmem:[#allocation5 + $0x48] sm:$0xf0]  ;;  %v3713_v14 = vld [vmem:[#allocation5 + $0x1b4] sm:$0xf]  ;;  %v3137_v17 = vld [vmem:[#allocation5] sm:$0xf]  ;;  %v3354_v19 = vor.u32 %v3716_v11, %v3353_v9 }
  0x41   : > { %1107 = vmatpush.bf16.msra.mxu0 %v3210_v56  ;;  %v3355_v15 = vld [vmem:[#allocation5 + $0x1c8] sm:$0xf0]  ;;  %v3662_v18 = vld [vmem:[#allocation5 + $0x14] sm:$0xf0]  ;;  %v3166_v20 = vor.u32 %v3665_v12, %v3163_v13  ;;  %v3329_v21 = vld [vmem:[#allocation5 + $0x180] sm:$0xf] }
  0x42   : > { %1196 = vmatpush.bf16.msra.mxu1 %v3402_v57  ;;  %v3710_v22 = vld [vmem:[#allocation5 + $0x194] sm:$0xf0]  ;;  %v3659_v23 = vld [vmem:[#allocation5 + $0x4] sm:$0xf]  ;;  %v3358_v24 = vor.u32 %v3713_v14, %v3355_v15  ;;  %v3139_v25 = vld [vmem:[#allocation5 + $0x18] sm:$0xf0]  ;;  %v3138_v31 = vor.u32 %v3662_v18, %v3137_v17 }
  0x43   : > { %1285 = vmatpush.bf16.msra.mxu2 %v3214_v58  ;;  %v3707_v26 = vld [vmem:[#allocation5 + $0x184] sm:$0xf]  ;;  %v3331_v27 = vld [vmem:[#allocation5 + $0x198] sm:$0xf0]  ;;  %v3009_v28 = vld [vmem:[%s4528_s28] sm:$0xf]  ;;  %v3330_v35 = vor.u32 %v3710_v22, %v3329_v21  ;;  %v3142_v36 = vor.u32 %v3659_v23, %v3139_v25 }
  0x44   : > { %1374 = vmatpush.bf16.msra.mxu3 %v3406_v62  ;;  %v3702_v29 = vld [vmem:[#allocation5 + $0x15c] sm:$0xf]  ;;  %v3315_v30 = vld [vmem:[#allocation5 + $0x170] sm:$0xf0]  ;;  %v3628_v32 = vld [vmem:[%s4528_s28 + $0x4] sm:$0xf0]  ;;  %v3334_v39 = vor.u32 %v3707_v26, %v3331_v27 }
  0x45   : > { %1108 = vmatpush.bf16.msra.mxu0 %v3186_v4  ;;  %v3750_v33 = vld [vmem:[#allocation5 + $0x2dc] sm:$0xf]  ;;  %v3507_v34 = vld [vmem:[#allocation5 + $0x2f0] sm:$0xf0]  ;;  %v3627_v37 = vld [vmem:[%s4528_s28 + $0x4] sm:$0xf]  ;;  %v3318_v40 = vor.u32 %v3702_v29, %v3315_v30  ;;  %v4542_v43 = vor.u32 %v3628_v32, %v3009_v28 }
  0x46   : > { %1197 = vmatpush.bf16.msra.mxu1 %v3378_v5  ;;  %v3011_v38 = vld [vmem:[%s4528_s28 + $0x8] sm:$0xf0]  ;;  %v3313_v41 = vld [vmem:[#allocation5 + $0x158] sm:$0xf]  ;;  %v3705_v42 = vld [vmem:[#allocation5 + $0x16c] sm:$0xf0]  ;;  %v3510_v44 = vor.u32 %v3750_v33, %v3507_v34 }
  0x47   : > { %1286 = vmatpush.bf16.msra.mxu2 %v3190_v6  ;;  %v3505_v45 = vld [vmem:[#allocation5 + $0x2d8] sm:$0xf]  ;;  %v3753_v46 = vld [vmem:[#allocation5 + $0x2ec] sm:$0xf0]  ;;  %v4544_v47 = vor.u32 %v3627_v37, %v3011_v38  ;;  %v3314_v48 = vor.u32 %v3705_v42, %v3313_v41  ;;  %v3696_v50 = vld [vmem:[#allocation5 + $0x12c] sm:$0xf] }
  0x48   : > { %1375 = vmatpush.bf16.msra.mxu3 %v3382_v10  ;;  %v3506_v49 = vor.u32 %v3753_v46, %v3505_v45  ;;  %v3291_v51 = vld [vmem:[#allocation5 + $0x140] sm:$0xf0]  ;;  %v3744_v52 = vld [vmem:[#allocation5 + $0x2ac] sm:$0xf]  ;;  %v3289_v55 = vld [vmem:[#allocation5 + $0x128] sm:$0xf] }
  0x49   : > { %1109 = vmatpush.bf16.msra.mxu0 %v3162_v16  ;;  %v3294_v53 = vor.u32 %v3696_v50, %v3291_v51  ;;  %v3483_v54 = vld [vmem:[#allocation5 + $0x2c0] sm:$0xf0]  ;;  %v3699_v56 = vld [vmem:[#allocation5 + $0x13c] sm:$0xf0]  ;;  %v3481_v59 = vld [vmem:[#allocation5 + $0x2a8] sm:$0xf] }
  0x4a   : > { %1198 = vmatpush.bf16.msra.mxu1 %v3354_v19  ;;  %v3486_v57 = vor.u32 %v3744_v52, %v3483_v54  ;;  %v3290_v58 = vor.u32 %v3699_v56, %v3289_v55  ;;  %v3747_v60 = vld [vmem:[#allocation5 + $0x2bc] sm:$0xf0]  ;;  %v3017_v62 = vld [vmem:[%s4528_s28 + $0x10] sm:$0xf]  ;;  %v3630_v63 = vld [vmem:[%s4528_s28 + $0x14] sm:$0xf0] }
  0x4b   : > { %1287 = vmatpush.bf16.msra.mxu2 %v3166_v20  ;;  %v3482_v61 = vor.u32 %v3747_v60, %v3481_v59  ;;  %v3629_v0 = vld [vmem:[%s4528_s28 + $0x14] sm:$0xf]  ;;  %v3019_v1 = vld [vmem:[%s4528_s28 + $0x18] sm:$0xf0]  ;;  %v4554_v2 = vor.u32 %v3630_v63, %v3017_v62  ;;  %v3025_v4 = vld [vmem:[%s4528_s28 + $0x20] sm:$0xf] }
  0x4c   : > { %1376 = vmatpush.bf16.msra.mxu3 %v3358_v24  ;;  %v4556_v3 = vor.u32 %v3629_v0, %v3019_v1  ;;  %v3632_v5 = vld [vmem:[%s4528_s28 + $0x24] sm:$0xf0]  ;;  %v3631_v6 = vld [vmem:[%s4528_s28 + $0x24] sm:$0xf]  ;;  %v3027_v7 = vld [vmem:[%s4528_s28 + $0x28] sm:$0xf0] }
  0x4d   : > { %1110 = vmatpush.bf16.msra.mxu0 %v3138_v31  ;;  %v4566_v8 = vor.u32 %v3632_v5, %v3025_v4  ;;  %v4568_v9 = vor.u32 %v3631_v6, %v3027_v7  ;;  %v3690_v10 = vld [vmem:[#allocation5 + $0xfc] sm:$0xf]  ;;  %v3267_v11 = vld [vmem:[#allocation5 + $0x110] sm:$0xf0]  ;;  %v3265_v15 = vld [vmem:[#allocation5 + $0xf8] sm:$0xf] }
  0x4e   : > { %1199 = vmatpush.bf16.msra.mxu1 %v3330_v35  ;;  %v3738_v12 = vld [vmem:[#allocation5 + $0x27c] sm:$0xf]  ;;  %v3270_v13 = vor.u32 %v3690_v10, %v3267_v11  ;;  %v3459_v14 = vld [vmem:[#allocation5 + $0x290] sm:$0xf0]  ;;  %v3693_v16 = vld [vmem:[#allocation5 + $0x10c] sm:$0xf0] }
  0x4f   : > { %1288 = vmatpush.bf16.msra.mxu2 %v3142_v36  ;;  %v3462_v17 = vor.u32 %v3738_v12, %v3459_v14  ;;  %v3266_v18 = vor.u32 %v3693_v16, %v3265_v15  ;;  %v3457_v19 = vld [vmem:[#allocation5 + $0x278] sm:$0xf]  ;;  %v3741_v20 = vld [vmem:[#allocation5 + $0x28c] sm:$0xf0]  ;;  %v3633_v24 = vld [vmem:[%s4528_s28 + $0x34] sm:$0xf] }
  0x50   : > { %1377 = vmatpush.bf16.msra.mxu3 %v3334_v39  ;;  %1111 = vmatmul.bf16.vlgmr.msra.gmra.mxu0 %v4542_v43  ;;  %v3458_v21 = vor.u32 %v3741_v20, %v3457_v19  ;;  %v3033_v22 = vld [vmem:[%s4528_s28 + $0x30] sm:$0xf]  ;;  %v3634_v23 = vld [vmem:[%s4528_s28 + $0x34] sm:$0xf0]  ;;  %v3035_v25 = vld [vmem:[%s4528_s28 + $0x38] sm:$0xf0] }
  0x51   : > { %1200 = vmatmul.bf16.vlgmr.msra.gmra.mxu1 %v4544_v47  ;;  %1459 = vmatpush.bf16.msrb.mxu0 %v3314_v48  ;;  %v4578_v26 = vor.u32 %v3634_v23, %v3033_v22  ;;  %v4580_v27 = vor.u32 %v3633_v24, %v3035_v25  ;;  %v3041_v28 = vld [vmem:[%s4528_s28 + $0x40] sm:$0xf]  ;;  %v3636_v29 = vld [vmem:[%s4528_s28 + $0x44] sm:$0xf0]  ;;  %v3635_v30 = vld [vmem:[%s4528_s28 + $0x44] sm:$0xf] }
  0x52   : > { %1289 = vmatmul.bf16.vlgmr.msra.gmra.mxu2 %v4542_v43  ;;  %1548 = vmatpush.bf16.msrb.mxu1 %v3506_v49  ;;  %v3043_v31 = vld [vmem:[%s4528_s28 + $0x48] sm:$0xf0]  ;;  %v4590_v32 = vor.u32 %v3636_v29, %v3041_v28  ;;  %v3243_v35 = vld [vmem:[#allocation5 + $0xe0] sm:$0xf0]  ;;  %v3241_v39 = vld [vmem:[#allocation5 + $0xc8] sm:$0xf] }
  0x53   : > { %1637 = vmatpush.bf16.msrb.mxu2 %v3318_v40  ;;  %1378 = vmatmul.bf16.vlgmr.msra.gmra.mxu3 %v4544_v47  ;;  %v4592_v33 = vor.u32 %v3635_v30, %v3043_v31  ;;  %v3684_v34 = vld [vmem:[#allocation5 + $0xcc] sm:$0xf]  ;;  %v3435_v38 = vld [vmem:[#allocation5 + $0x260] sm:$0xf0]  ;;  %v3687_v40 = vld [vmem:[#allocation5 + $0xdc] sm:$0xf0] }
  0x54   : > { %1726 = vmatpush.bf16.msrb.mxu3 %v3510_v44  ;;  %v3732_v36 = vld [vmem:[#allocation5 + $0x24c] sm:$0xf]  ;;  %v3246_v37 = vor.u32 %v3684_v34, %v3243_v35  ;;  %v3242_v42 = vor.u32 %v3687_v40, %v3241_v39  ;;  %v3433_v44 = vld [vmem:[#allocation5 + $0x248] sm:$0xf]  ;;  %v3735_v45 = vld [vmem:[#allocation5 + $0x25c] sm:$0xf0] }
  0x55   : > { %1460 = vmatpush.bf16.msrb.mxu0 %v3290_v58  ;;  %v3438_v41 = vor.u32 %v3732_v36, %v3435_v38  ;;  %v3434_v46 = vor.u32 %v3735_v45, %v3433_v44  ;;  %v3049_v48 = vld [vmem:[%s4528_s28 + $0x50] sm:$0xf]  ;;  %v3638_v49 = vld [vmem:[%s4528_s28 + $0x54] sm:$0xf0]  ;;  %v3637_v50 = vld [vmem:[%s4528_s28 + $0x54] sm:$0xf] }
  0x56   : > { %1549 = vmatpush.bf16.msrb.mxu1 %v3482_v61  ;;  %v3051_v51 = vld [vmem:[%s4528_s28 + $0x58] sm:$0xf0]  ;;  %v4602_v52 = vor.u32 %v3638_v49, %v3049_v48  ;;  %v3057_v54 = vld [vmem:[%s4528_s28 + $0x60] sm:$0xf]  ;;  %v3640_v55 = vld [vmem:[%s4528_s28 + $0x64] sm:$0xf0] }
  0x57   : > { %1638 = vmatpush.bf16.msrb.mxu2 %v3294_v53  ;;  %v4604_v53 = vor.u32 %v3637_v50, %v3051_v51  ;;  %v3639_v56 = vld [vmem:[%s4528_s28 + $0x64] sm:$0xf]  ;;  %v4614_v58 = vor.u32 %v3640_v55, %v3057_v54  ;;  %v3678_v60 = vld [vmem:[#allocation5 + $0x9c] sm:$0xf]  ;;  %v3219_v61 = vld [vmem:[#allocation5 + $0xb0] sm:$0xf0] }
  0x58   : > { %1727 = vmatpush.bf16.msrb.mxu3 %v3486_v57  ;;  %v3059_v57 = vld [vmem:[%s4528_s28 + $0x68] sm:$0xf0]  ;;  %v3726_v62 = vld [vmem:[#allocation5 + $0x21c] sm:$0xf]  ;;  %v3222_v63 = vor.u32 %v3678_v60, %v3219_v61  ;;  %v3411_v0 = vld [vmem:[#allocation5 + $0x230] sm:$0xf0] }
  0x59   : > { %1461 = vmatpush.bf16.msrb.mxu0 %v3266_v18  ;;  %v4616_v59 = vor.u32 %v3639_v56, %v3059_v57  ;;  %v3414_v1 = vor.u32 %v3726_v62, %v3411_v0  ;;  %v3065_v4 = vld [vmem:[%s4528_s28 + $0x70] sm:$0xf]  ;;  %v3642_v5 = vld [vmem:[%s4528_s28 + $0x74] sm:$0xf0]  ;;  %v3641_v6 = vld [vmem:[%s4528_s28 + $0x74] sm:$0xf] }
  0x5a   : > { %1550 = vmatpush.bf16.msrb.mxu1 %v3458_v21  ;;  %v3067_v7 = vld [vmem:[%s4528_s28 + $0x78] sm:$0xf0]  ;;  %v4626_v10 = vor.u32 %v3642_v5, %v3065_v4  ;;  %v3217_v12 = vld [vmem:[#allocation5 + $0x98] sm:$0xf]  ;;  %v3729_v16 = vld [vmem:[#allocation5 + $0x22c] sm:$0xf0] }
  0x5b   : > { %1639 = vmatpush.bf16.msrb.mxu2 %v3270_v13  ;;  %v4628_v11 = vor.u32 %v3641_v6, %v3067_v7  ;;  %v3681_v13 = vld [vmem:[#allocation5 + $0xac] sm:$0xf0]  ;;  %v3409_v14 = vld [vmem:[#allocation5 + $0x218] sm:$0xf]  ;;  %v3073_v18 = vld [vmem:[%s4528_s28 + $0x80] sm:$0xf] }
  0x5c   : > { %1728 = vmatpush.bf16.msrb.mxu3 %v3462_v17  ;;  %v3218_v15 = vor.u32 %v3681_v13, %v3217_v12  ;;  %v3410_v17 = vor.u32 %v3729_v16, %v3409_v14  ;;  %v3644_v19 = vld [vmem:[%s4528_s28 + $0x84] sm:$0xf0]  ;;  %v449_v20 = vld [vmem:[#allocation7] sm:$0x3f]  ;;  %v3075_v22 = vld [vmem:[%s4528_s28 + $0x88] sm:$0xf0] }
  0x5d   : > { %1462 = vmatpush.bf16.msrb.mxu0 %v3242_v42  ;;  %v3643_v21 = vld [vmem:[%s4528_s28 + $0x84] sm:$0xf]  ;;  %v4638_v23 = vor.u32 %v3644_v19, %v3073_v18  ;;  %v4640_v24 = vperm.slane %v449_v20, 0  ;;  %v4648_v31 = vperm.slane %v449_v20, 1  ;;  %v3672_v39 = vld [vmem:[#allocation5 + $0x6c] sm:$0xf] }
  0x5e   : > { %1551 = vmatpush.bf16.msrb.mxu1 %v3434_v46  ;;  %v4642_v28 = vor.u32 %v3643_v21, %v3075_v22  ;;  %v3195_v40 = vld [vmem:[#allocation5 + $0x80] sm:$0xf0]  ;;  %v3081_v54 = vld [vmem:[%s4528_s28 + $0x90] sm:$0xf]  ;;  %v3646_v55 = vld [vmem:[%s4528_s28 + $0x94] sm:$0xf0] }
  0x5f   : > { %1640 = vmatpush.bf16.msrb.mxu2 %v3246_v37  ;;  %v3198_v45 = vor.u32 %v3672_v39, %v3195_v40  ;;  %v3387_v46 = vld [vmem:[#allocation5 + $0x200] sm:$0xf0]  ;;  %v3645_v57 = vld [vmem:[%s4528_s28 + $0x94] sm:$0xf]  ;;  %v3083_v60 = vld [vmem:[%s4528_s28 + $0x98] sm:$0xf0] }
  0x60   : > { %1116 = vmatmul.bf16.gmra.mxu0 %v4554_v2  ;;  %1729 = vmatpush.bf16.msrb.mxu3 %v3438_v41  ;;  %v3720_v41 = vld [vmem:[#allocation5 + $0x1ec] sm:$0xf]  ;;  %s4658_s1 = scalar_lea.vmem [#allocation8], %s4524_s30  ;;  %v4665_v5 = vor.u32 %v3645_v57, %v3083_v60  ;;  %v3193_v6 = vld [vmem:[#allocation5 + $0x68] sm:$0xf]  ;;  %s4897_s2 = scalar_lea.vmem [#allocation9], %s4524_s30 }
  0x61   : > { %1205 = vmatmul.bf16.gmra.mxu1 %v4556_v3  ;;  %1463 = vmatpush.bf16.msrb.mxu0 %v3218_v15  ;;  %v3390_v49 = vor.u32 %v3720_v41, %v3387_v46  ;;  %v3675_v7 = vld [vmem:[#allocation5 + $0x7c] sm:$0xf0]  ;;  %v3385_v14 = vld [vmem:[#allocation5 + $0x1e8] sm:$0xf]  ;;  %s5082_s25 = scalar_lea.vmem [#allocation11], %s4524_s30  ;;  %s5166_s26 = sshll.u32 %s4371_s21, 8 }
  0x62   : > { %1294 = vmatmul.bf16.gmra.mxu2 %v4554_v2  ;;  %1552 = vmatpush.bf16.msrb.mxu1 %v3410_v17  ;;  %v3194_v13 = vor.u32 %v3675_v7, %v3193_v6  ;;  %v3723_v15 = vld [vmem:[#allocation5 + $0x1fc] sm:$0xf0]  ;;  %v3648_v40 = vld [vmem:[%s4528_s28 + $0xa4] sm:$0xf0]  ;;  %v3666_v7 = vld [vmem:[#allocation5 + $0x3c] sm:$0xf]  ;;  %s2793_s7 = scalar_lea.hbm %s5313_s4, %s5166_s26 }
  0x63   : > { %1383 = vmatmul.bf16.gmra.mxu3 %v4556_v3  ;;  %1641 = vmatpush.bf16.msrb.mxu2 %v3222_v63  ;;  %v4661_v63 = vor.u32 %v3646_v55, %v3081_v54  ;;  %v3386_v17 = vor.u32 %v3723_v15, %v3385_v14  ;;  %v3089_v39 = vld [vmem:[%s4528_s28 + $0xa0] sm:$0xf]  ;;  %s2755_s9 = sand.u32 1, %s4450_s24   ;;  %s2794_s11 = sshll.u32 %s4897_s2, 4  ;;  %s2795_s11 = int_to_ptr.vmem [resolvable:$true] %s2794_s11 }
  0x64   : > { %1730 = vmatpush.bf16.msrb.mxu3 %v3414_v1  ;;  %s2796_s21 = sshll.u32 %s2793_s7, 4  ;;  %s5177_s12 = scalar_lea.sflag [#allocation10], %s2755_s9  ;;  %s2797_s21 = int_to_ptr.hbm [resolvable:$true] %s2796_s21 }
  0x65   : > { %1464 = vmatpush.bf16.msrb.mxu0 %v3194_v13  ;;  %s4247_s24 = sshra.s32 %s2797_s21, 4  ;;  %s4253_s30 = scalar_lea.hbm %s5313_s4, 512  ;;  %s4248_s24 = int_to_ptr.hbm [resolvable:$true] %s4247_s24 }
  0x66   : > { %1553 = vmatpush.bf16.msrb.mxu1 %v3386_v17  ;;  %v3363_v17 = vld [vmem:[#allocation5 + $0x1d0] sm:$0xf0]  ;;  %s4249_s13 = scalar_lea.hbm %s4248_s24, 256  ;;  %p4254_p10 = scmp.lt.s32.totalorder %s4248_s24, %s5313_s4 }
  0x67   : > { %1642 = vmatpush.bf16.msrb.mxu2 %v3198_v45  ;;  %p4250_p1 = scmp.ne.s32.totalorder %s4248_s24, %s4249_s13  ;;  %p4255_p12 = scmp.lt.s32.totalorder %s4253_s30, %s4249_s13 }
  0x68   : > { %1731 = vmatpush.bf16.msrb.mxu3 %v3390_v49 }
  0x69   : > { %p4251_p4 = pnand %p4250_p1, %p4500_p7  ;;  %p4256_p13 = por %p4255_p12, %p4254_p10 }
  0x6b   : > { %p4252_p8 = pneg %p4251_p4 }
  0x6d   : > { %p4257_p0 = pnand %p4256_p13, %p4252_p8 }
  0x70   : > { %1121 = vmatmul.bf16.gmra.mxu0 %v4566_v8 }
  0x71   : > { %1210 = vmatmul.bf16.gmra.mxu1 %v4568_v9 }
  0x72   : > { %1299 = vmatmul.bf16.gmra.mxu2 %v4566_v8 }
  0x73   : > { %1388 = vmatmul.bf16.gmra.mxu3 %v4568_v9 }
  0x80   : > { %1126 = vmatmul.bf16.gmra.mxu0 %v4578_v26 }
  0x81   : > { %1215 = vmatmul.bf16.gmra.mxu1 %v4580_v27 }
  0x82   : > { %1304 = vmatmul.bf16.gmra.mxu2 %v4578_v26 }
  0x83   : > { %1393 = vmatmul.bf16.gmra.mxu3 %v4580_v27 }
  0x90   : > { %1131 = vmatmul.bf16.gmra.mxu0 %v4590_v32 }
  0x91   : > { %1220 = vmatmul.bf16.gmra.mxu1 %v4592_v33 }
  0x92   : > { %1309 = vmatmul.bf16.gmra.mxu2 %v4590_v32 }
  0x93   : > { %1398 = vmatmul.bf16.gmra.mxu3 %v4592_v33 }
  0xa0   : > { %1136 = vmatmul.bf16.gmra.mxu0 %v4602_v52 }
  0xa1   : > { %1225 = vmatmul.bf16.gmra.mxu1 %v4604_v53 }
  0xa2   : > { %1314 = vmatmul.bf16.gmra.mxu2 %v4602_v52 }
  0xa3   : > { %1403 = vmatmul.bf16.gmra.mxu3 %v4604_v53 }
  0xb0   : > { %1141 = vmatmul.bf16.gmra.mxu0 %v4614_v58 }
  0xb1   : > { %1230 = vmatmul.bf16.gmra.mxu1 %v4616_v59 }
  0xb2   : > { %1319 = vmatmul.bf16.gmra.mxu2 %v4614_v58 }
  0xb3   : > { %1408 = vmatmul.bf16.gmra.mxu3 %v4616_v59 }
  0xc0   : > { %1146 = vmatmul.bf16.gmra.mxu0 %v4626_v10 }
  0xc1   : > { %1235 = vmatmul.bf16.gmra.mxu1 %v4628_v11 }
  0xc2   : > { %1324 = vmatmul.bf16.gmra.mxu2 %v4626_v10 }
  0xc3   : > { %1413 = vmatmul.bf16.gmra.mxu3 %v4628_v11 }
  0xcd   : > { %v1112_v25 = vpop.f32.mrf.mxu0 }
  0xce   : > { %v1201_v29 = vpop.f32.mrf.mxu1  ;;  %v1113_v30 = vadd.f32 %v1112_v25, %v4640_v24 }
  0xd0   : > { %1151 = vmatmul.bf16.gmra.mxu0 %v4638_v23  ;;  %v1202_v35 = vadd.f32 %v1201_v29, %v1113_v30 }
  0xd1   : > { %1240 = vmatmul.bf16.gmra.mxu1 %v4642_v28 }
  0xd2   : > { %1329 = vmatmul.bf16.gmra.mxu2 %v4638_v23 }
  0xd3   : > { %1418 = vmatmul.bf16.gmra.mxu3 %v4642_v28 }
  0xd5   : > { %v1290_v34 = vpop.f32.mrf.mxu2  ;;  %v1114_v38 = vpop.f32.mrf.mxu0 }
  0xd6   : > { %v1291_v36 = vadd.f32 %v1290_v34, %v4648_v31  ;;  %v1379_v37 = vpop.f32.mrf.mxu3  ;;  %v1115_v42 = vadd.f32 %v1114_v38, %v4640_v24  ;;  %v1203_v44 = vpop.f32.mrf.mxu1 }
  0xd8   : > { %v1380_v48 = vadd.f32 %v1379_v37, %v1291_v36  ;;  %v1204_v50 = vadd.f32 %v1203_v44, %v1115_v42  ;;  %v3647_v42 = vld [vmem:[%s4528_s28 + $0xa4] sm:$0xf]  ;;  %v3091_v44 = vld [vmem:[%s4528_s28 + $0xa8] sm:$0xf0] }
  0xd9   : > { %v4684_v54 = vor.u32 %v3647_v42, %v3091_v44  ;;  %v3169_v42 = vld [vmem:[#allocation5 + $0x38] sm:$0xf]  ;;  %v3669_v44 = vld [vmem:[#allocation5 + $0x4c] sm:$0xf0] }
  0xda   : > { %v2171_v51 = vpack.c.bf16 %v1380_v48, %v1202_v35  ;;  %v3761_v56 = vpack.c.bf16 %v1204_v50, %v1202_v35  ;;  %v4680_v48 = vor.u32 %v3648_v40, %v3089_v39 }
  0xdc   : > { %v2395_v61 = vrot.slane %v2171_v51, 4  ;;  %3762 = vst [vmem:[%s4658_s1] sm:$0xff] %v3761_v56  }
  0xdd   : > { %v1292_v62 = vpop.f32.mrf.mxu2  ;;  %v1117_v4 = vpop.f32.mrf.mxu0 }
  0xde   : > { %3519 = vst [vmem:[%s4658_s1 + $0x80] sm:$0xf] %v2395_v61  ;;  %v1293_v0 = vadd.f32 %v1292_v62, %v4648_v31  ;;  %v1381_v1 = vpop.f32.mrf.mxu3  ;;  %v1206_v12 = vpop.f32.mrf.mxu1  ;;  %v1118_v19 = vadd.f32 %v1117_v4, %v4640_v24 }
  0xe0   : > { %v1382_v16 = vadd.f32 %v1381_v1, %v1293_v0  ;;  %1156 = vmatmul.bf16.gmra.mxu0 %v4661_v63  ;;  %v1207_v22 = vadd.f32 %v1206_v12, %v1118_v19  ;;  %v3171_v12 = vld [vmem:[#allocation5 + $0x50] sm:$0xf0] }
  0xe1   : > { %1245 = vmatmul.bf16.gmra.mxu1 %v4665_v5  ;;  %v3174_v15 = vor.u32 %v3666_v7, %v3171_v12 }
  0xe2   : > { %v2174_v18 = vpack.c.bf16 %v1382_v16, %v1204_v50  ;;  %1334 = vmatmul.bf16.gmra.mxu2 %v4661_v63  ;;  %v3714_v16 = vld [vmem:[#allocation5 + $0x1bc] sm:$0xf] }
  0xe3   : > { %1423 = vmatmul.bf16.gmra.mxu3 %v4665_v5  ;;  %v3366_v19 = vor.u32 %v3714_v16, %v3363_v17  ;;  %1643 = vmatpush.bf16.msrb.mxu2 %v3174_v15  ;;  %v3105_v15 = vld [vmem:[%s4528_s28 + $0xc0] sm:$0xf]  ;;  %v3652_v16 = vld [vmem:[%s4528_s28 + $0xc4] sm:$0xf0] }
  0xe4   : > { %v2396_v20 = vrot.slane %v2174_v18, 4 }
  0xe5   : > { %v1295_v21 = vpop.f32.mrf.mxu2  ;;  %v1119_v30 = vpop.f32.mrf.mxu0  ;;  %1732 = vmatpush.bf16.msrb.mxu3 %v3366_v19  ;;  %v3107_v19 = vld [vmem:[%s4528_s28 + $0xc8] sm:$0xf0] }
  0xe6   : > { %3520 = vst [vmem:[%s4658_s1 + $0x84] sm:$0xf] %v2396_v20  ;;  %v1296_v25 = vadd.f32 %v1295_v21, %v4648_v31  ;;  %v1384_v29 = vpop.f32.mrf.mxu3  ;;  %v1120_v34 = vadd.f32 %v1119_v30, %v4640_v24  ;;  %v1208_v35 = vpop.f32.mrf.mxu1  ;;  %v3649_v30 = vld [vmem:[%s4528_s28 + $0xb4] sm:$0xf] }
  0xe8   : > { %v1385_v36 = vadd.f32 %v1384_v29, %v1296_v25  ;;  %v1209_v37 = vadd.f32 %v1208_v35, %v1120_v34  ;;  %v3650_v25 = vld [vmem:[%s4528_s28 + $0xb4] sm:$0xf0]  ;;  %v3099_v34 = vld [vmem:[%s4528_s28 + $0xb8] sm:$0xf0] }
  0xea   : > { %v2177_v38 = vpack.c.bf16 %v1385_v36, %v1207_v22  ;;  %v3766_v41 = vpack.c.bf16 %v1209_v37, %v1207_v22  ;;  %v3097_v22 = vld [vmem:[%s4528_s28 + $0xb0] sm:$0xf] }
  0xec   : > { %v2397_v45 = vrot.slane %v2177_v38, 4  ;;  %3998 = vst [vmem:[%s4658_s1 + $0x8] sm:$0xff] %v3766_v41   ;;  %v4703_v41 = vor.u32 %v3649_v30, %v3099_v34 }
  0xed   : > { %v1297_v46 = vpop.f32.mrf.mxu2  ;;  %v1122_v51 = vpop.f32.mrf.mxu0 }
  0xee   : > { %3521 = vst [vmem:[%s4658_s1 + $0x88] sm:$0xf] %v2397_v45  ;;  %v1298_v49 = vadd.f32 %v1297_v46, %v4648_v31  ;;  %v1386_v50 = vpop.f32.mrf.mxu3  ;;  %v1211_v55 = vpop.f32.mrf.mxu1  ;;  %v1123_v60 = vadd.f32 %v1122_v51, %v4640_v24  ;;  %v3170_v46 = vor.u32 %v3669_v44, %v3169_v42 }
  0xf0   : > { %v1387_v56 = vadd.f32 %v1386_v50, %v1298_v49  ;;  %1161 = vmatmul.bf16.gmra.mxu0 %v4680_v48  ;;  %v1212_v0 = vadd.f32 %v1211_v55, %v1123_v60  ;;  %v3361_v49 = vld [vmem:[#allocation5 + $0x1b8] sm:$0xf]  ;;  %v3717_v50 = vld [vmem:[#allocation5 + $0x1cc] sm:$0xf0] }
  0xf1   : > { %1250 = vmatmul.bf16.gmra.mxu1 %v4684_v54  ;;  %v3362_v55 = vor.u32 %v3717_v50, %v3361_v49  ;;  %1465 = vmatpush.bf16.msrb.mxu0 %v3170_v46  ;;  %v3660_v50 = vld [vmem:[#allocation5 + $0xc] sm:$0xf] }
  0xf2   : > { %v2180_v57 = vpack.c.bf16 %v1387_v56, %v1209_v37  ;;  %1339 = vmatmul.bf16.gmra.mxu2 %v4680_v48  ;;  %v4699_v37 = vor.u32 %v3650_v25, %v3097_v22  ;;  %v4718_v22 = vor.u32 %v3652_v16, %v3105_v15 }
  0xf3   : > { %1428 = vmatmul.bf16.gmra.mxu3 %v4684_v54  ;;  %1554 = vmatpush.bf16.msrb.mxu1 %v3362_v55 }
  0xf4   : > { %v2398_v61 = vrot.slane %v2180_v57, 4 }
  0xf5   : > { %v1300_v62 = vpop.f32.mrf.mxu2  ;;  %v1124_v6 = vpop.f32.mrf.mxu0 }
  0xf6   : > { %3522 = vst [vmem:[%s4658_s1 + $0x8c] sm:$0xf] %v2398_v61  ;;  %v1301_v1 = vadd.f32 %v1300_v62, %v4648_v31  ;;  %v1389_v4 = vpop.f32.mrf.mxu3  ;;  %v1125_v13 = vadd.f32 %v1124_v6, %v4640_v24  ;;  %v1213_v14 = vpop.f32.mrf.mxu1 }
  0xf8   : > { %v1390_v18 = vadd.f32 %v1389_v4, %v1301_v1  ;;  %v1214_v20 = vadd.f32 %v1213_v14, %v1125_v13 }
  0xfa   : > { %v2183_v21 = vpack.c.bf16 %v1390_v18, %v1212_v0  ;;  %v3771_v29 = vpack.c.bf16 %v1214_v20, %v1212_v0  ;;  %v3651_v18 = vld [vmem:[%s4528_s28 + $0xc4] sm:$0xf] }
  0xfb   : > { %v4722_v34 = vor.u32 %v3651_v18, %v3107_v19 }
  0xfc   : > { %v2399_v35 = vrot.slane %v2183_v21, 4  ;;  %3999 = vst [vmem:[%s4658_s1 + $0x10] sm:$0xff] %v3771_v29  }
  0xfd   : > { %v1302_v36 = vpop.f32.mrf.mxu2  ;;  %v1127_v40 = vpop.f32.mrf.mxu0 }
  0xfe   : > { %3523 = vst [vmem:[%s4658_s1 + $0x90] sm:$0xf] %v2399_v35  ;;  %v1303_v38 = vadd.f32 %v1302_v36, %v4648_v31  ;;  %v1391_v39 = vpop.f32.mrf.mxu3  ;;  %v1216_v45 = vpop.f32.mrf.mxu1  ;;  %v1128_v57 = vadd.f32 %v1127_v40, %v4640_v24 }
 0x100   : > { %v1392_v51 = vadd.f32 %v1391_v39, %v1303_v38  ;;  %1166 = vmatmul.bf16.gmra.mxu0 %v4699_v37  ;;  %v1217_v62 = vadd.f32 %v1216_v45, %v1128_v57 }
 0x101   : > { %1255 = vmatmul.bf16.gmra.mxu1 %v4703_v41 }
 0x102   : > { %v2186_v56 = vpack.c.bf16 %v1392_v51, %v1214_v20  ;;  %1344 = vmatmul.bf16.gmra.mxu2 %v4699_v37  ;;  %v3147_v51 = vld [vmem:[#allocation5 + $0x20] sm:$0xf0] }
 0x103   : > { %1433 = vmatmul.bf16.gmra.mxu3 %v4703_v41  ;;  %v3150_v57 = vor.u32 %v3660_v50, %v3147_v51 }
 0x104   : > { %v2400_v60 = vrot.slane %v2186_v56, 4 }
 0x105   : > { %v1305_v61 = vpop.f32.mrf.mxu2  ;;  %v1129_v4 = vpop.f32.mrf.mxu0  ;;  %1644 = vmatpush.bf16.msrb.mxu2 %v3150_v57 }
 0x106   : > { %3524 = vst [vmem:[%s4658_s1 + $0x94] sm:$0xf] %v2400_v60  ;;  %v1306_v0 = vadd.f32 %v1305_v61, %v4648_v31  ;;  %v1394_v1 = vpop.f32.mrf.mxu3  ;;  %v1130_v6 = vadd.f32 %v1129_v4, %v4640_v24  ;;  %v1218_v7 = vpop.f32.mrf.mxu1  ;;  %v3708_v60 = vld [vmem:[#allocation5 + $0x18c] sm:$0xf]  ;;  %v3339_v61 = vld [vmem:[#allocation5 + $0x1a0] sm:$0xf0] }
 0x108   : > { %v1395_v12 = vadd.f32 %v1394_v1, %v1306_v0  ;;  %v1219_v13 = vadd.f32 %v1218_v7, %v1130_v6  ;;  %v3342_v0 = vor.u32 %v3708_v60, %v3339_v61  ;;  %v3113_v6 = vld [vmem:[%s4528_s28 + $0xd0] sm:$0xf]  ;;  %v3654_v7 = vld [vmem:[%s4528_s28 + $0xd4] sm:$0xf0] }
 0x10a   : > { %v2189_v14 = vpack.c.bf16 %v1395_v12, %v1217_v62  ;;  %v3776_v17 = vpack.c.bf16 %v1219_v13, %v1217_v62  ;;  %1733 = vmatpush.bf16.msrb.mxu3 %v3342_v0  ;;  %v3121_v0 = vld [vmem:[%s4528_s28 + $0xe0] sm:$0xf] }
 0x10c   : > { %v2401_v20 = vrot.slane %v2189_v14, 4  ;;  %4000 = vst [vmem:[%s4658_s1 + $0x18] sm:$0xff] %v3776_v17   ;;  %v3115_v14 = vld [vmem:[%s4528_s28 + $0xd8] sm:$0xf0]  ;;  %v4737_v17 = vor.u32 %v3654_v7, %v3113_v6  ;;  %v3655_v6 = vld [vmem:[%s4528_s28 + $0xe4] sm:$0xf] }
 0x10d   : > { %v1307_v21 = vpop.f32.mrf.mxu2  ;;  %v1132_v30 = vpop.f32.mrf.mxu0  ;;  %v3123_v7 = vld [vmem:[%s4528_s28 + $0xe8] sm:$0xf0] }
 0x10e   : > { %3525 = vst [vmem:[%s4658_s1 + $0x98] sm:$0xf] %v2401_v20  ;;  %v1308_v25 = vadd.f32 %v1307_v21, %v4648_v31  ;;  %v1396_v29 = vpop.f32.mrf.mxu3  ;;  %v1221_v35 = vpop.f32.mrf.mxu1  ;;  %v1133_v39 = vadd.f32 %v1132_v30, %v4640_v24 }
 0x110   : > { %v1397_v36 = vadd.f32 %v1396_v29, %v1308_v25  ;;  %1171 = vmatmul.bf16.gmra.mxu0 %v4718_v22  ;;  %v1222_v44 = vadd.f32 %v1221_v35, %v1133_v39  ;;  %v3145_v25 = vld [vmem:[#allocation5 + $0x8] sm:$0xf]  ;;  %v3663_v29 = vld [vmem:[#allocation5 + $0x1c] sm:$0xf0] }
 0x111   : > { %1260 = vmatmul.bf16.gmra.mxu1 %v4722_v34  ;;  %v3146_v35 = vor.u32 %v3663_v29, %v3145_v25 }
 0x112   : > { %v2192_v38 = vpack.c.bf16 %v1397_v36, %v1219_v13  ;;  %1349 = vmatmul.bf16.gmra.mxu2 %v4718_v22  ;;  %v3653_v13 = vld [vmem:[%s4528_s28 + $0xd4] sm:$0xf]  ;;  %v3337_v36 = vld [vmem:[#allocation5 + $0x188] sm:$0xf] }
 0x113   : > { %1438 = vmatmul.bf16.gmra.mxu3 %v4722_v34  ;;  %v4741_v21 = vor.u32 %v3653_v13, %v3115_v14  ;;  %1466 = vmatpush.bf16.msrb.mxu0 %v3146_v35 }
 0x114   : > { %v2402_v40 = vrot.slane %v2192_v38, 4  ;;  %v3711_v38 = vld [vmem:[#allocation5 + $0x19c] sm:$0xf0] }
 0x115   : > { %v1310_v42 = vpop.f32.mrf.mxu2  ;;  %v1134_v49 = vpop.f32.mrf.mxu0 }
 0x116   : > { %3526 = vst [vmem:[%s4658_s1 + $0x9c] sm:$0xf] %v2402_v40  ;;  %v1311_v45 = vadd.f32 %v1310_v42, %v4648_v31  ;;  %v1399_v46 = vpop.f32.mrf.mxu3  ;;  %v1135_v55 = vadd.f32 %v1134_v49, %v4640_v24  ;;  %v1223_v56 = vpop.f32.mrf.mxu1  ;;  %v3338_v40 = vor.u32 %v3711_v38, %v3337_v36 }
 0x118   : > { %v1400_v62 = vadd.f32 %v1399_v46, %v1311_v45  ;;  %v1224_v1 = vadd.f32 %v1223_v56, %v1135_v55  ;;  %1555 = vmatpush.bf16.msrb.mxu1 %v3338_v40 }
 0x11a   : > { %v2195_v4 = vpack.c.bf16 %v1400_v62, %v1222_v44  ;;  %v3781_v12 = vpack.c.bf16 %v1224_v1, %v1222_v44 }
 0x11c   : > { %v2403_v15 = vrot.slane %v2195_v4, 4  ;;  %4001 = vst [vmem:[%s4658_s1 + $0x20] sm:$0xff] %v3781_v12  }
 0x11d   : > { %v1312_v16 = vpop.f32.mrf.mxu2  ;;  %v1137_v20 = vpop.f32.mrf.mxu0 }
 0x11e   : > { %3527 = vst [vmem:[%s4658_s1 + $0xa0] sm:$0xf] %v2403_v15  ;;  %v1313_v18 = vadd.f32 %v1312_v16, %v4648_v31  ;;  %v1401_v19 = vpop.f32.mrf.mxu3  ;;  %v1226_v30 = vpop.f32.mrf.mxu1  ;;  %v1138_v44 = vadd.f32 %v1137_v20, %v4640_v24 }
 0x120   : > { %v1402_v39 = vadd.f32 %v1401_v19, %v1313_v18  ;;  %1176 = vmatmul.bf16.gmra.mxu0 %v4737_v17  ;;  %v1227_v49 = vadd.f32 %v1226_v30, %v1138_v44  ;;  %v4760_v19 = vor.u32 %v3655_v6, %v3123_v7  ;;  %v3703_v44 = vld [vmem:[#allocation5 + $0x164] sm:$0xf]  ;;  %v3131_v6 = vld [vmem:[%s4528_s28 + $0xf8] sm:$0xf0] }
 0x121   : > { %1265 = vmatmul.bf16.gmra.mxu1 %v4741_v21 }
 0x122   : > { %v2198_v42 = vpack.c.bf16 %v1402_v39, %v1224_v1  ;;  %1354 = vmatmul.bf16.gmra.mxu2 %v4737_v17  ;;  %v3656_v1 = vld [vmem:[%s4528_s28 + $0xe4] sm:$0xf0] }
 0x123   : > { %1443 = vmatmul.bf16.gmra.mxu3 %v4741_v21  ;;  %v4756_v14 = vor.u32 %v3656_v1, %v3121_v0  ;;  %v3658_v0 = vld [vmem:[%s4528_s28 + $0xf4] sm:$0xf0] }
 0x124   : > { %v2404_v45 = vrot.slane %v2198_v42, 4 }
 0x125   : > { %v1315_v46 = vpop.f32.mrf.mxu2  ;;  %v1139_v55 = vpop.f32.mrf.mxu0 }
 0x126   : > { %3528 = vst [vmem:[%s4658_s1 + $0xa4] sm:$0xf] %v2404_v45  ;;  %v1316_v50 = vadd.f32 %v1315_v46, %v4648_v31  ;;  %v1404_v51 = vpop.f32.mrf.mxu3  ;;  %v1140_v56 = vadd.f32 %v1139_v55, %v4640_v24  ;;  %v1228_v57 = vpop.f32.mrf.mxu1  ;;  %v3323_v45 = vld [vmem:[#allocation5 + $0x178] sm:$0xf0] }
 0x127   : > { %v3515_v55 = vld [vmem:[#allocation5 + $0x2f8] sm:$0xf0] }
 0x128   : > { %v1405_v60 = vadd.f32 %v1404_v51, %v1316_v50  ;;  %v1229_v61 = vadd.f32 %v1228_v57, %v1140_v56  ;;  %v3326_v50 = vor.u32 %v3703_v44, %v3323_v45  ;;  %v3751_v51 = vld [vmem:[#allocation5 + $0x2e4] sm:$0xf] }
 0x129   : > { %v3518_v57 = vor.u32 %v3751_v51, %v3515_v55 }
 0x12a   : > { %v2201_v62 = vpack.c.bf16 %v1405_v60, %v1227_v49  ;;  %v3786_v4 = vpack.c.bf16 %v1229_v61, %v1227_v49  ;;  %1993 = vmatpush.bf16.msra.mxu2 %v3326_v50 }
 0x12b   : > { %2082 = vmatpush.bf16.msra.mxu3 %v3518_v57 }
 0x12c   : > { %v2405_v12 = vrot.slane %v2201_v62, 4  ;;  %4002 = vst [vmem:[%s4658_s1 + $0x28] sm:$0xff] %v3786_v4   ;;  %v3129_v62 = vld [vmem:[%s4528_s28 + $0xf0] sm:$0xf]  ;;  %v3657_v4 = vld [vmem:[%s4528_s28 + $0xf4] sm:$0xf] }
 0x12d   : > { %v1317_v13 = vpop.f32.mrf.mxu2  ;;  %v1142_v18 = vpop.f32.mrf.mxu0 }
 0x12e   : > { %3529 = vst [vmem:[%s4658_s1 + $0xa8] sm:$0xf] %v2405_v12  ;;  %v1318_v15 = vadd.f32 %v1317_v13, %v4648_v31  ;;  %v1406_v16 = vpop.f32.mrf.mxu3  ;;  %v1231_v20 = vpop.f32.mrf.mxu1  ;;  %v1143_v30 = vadd.f32 %v1142_v18, %v4640_v24  ;;  %v4775_v13 = vor.u32 %v3658_v0, %v3129_v62 }
 0x130   : > { %v1407_v25 = vadd.f32 %v1406_v16, %v1318_v15  ;;  %1181 = vmatmul.bf16.gmra.mxu0 %v4756_v14  ;;  %v1232_v38 = vadd.f32 %v1231_v20, %v1143_v30  ;;  %v4779_v20 = vor.u32 %v3657_v4, %v3131_v6 }
 0x131   : > { %1270 = vmatmul.bf16.gmra.mxu1 %v4760_v19 }
 0x132   : > { %v2204_v29 = vpack.c.bf16 %v1407_v25, %v1229_v61  ;;  %1359 = vmatmul.bf16.gmra.mxu2 %v4756_v14  ;;  %v3321_v25 = vld [vmem:[#allocation5 + $0x160] sm:$0xf] }
 0x133   : > { %1448 = vmatmul.bf16.gmra.mxu3 %v4760_v19 }
 0x134   : > { %v2406_v35 = vrot.slane %v2204_v29, 4  ;;  %v3706_v29 = vld [vmem:[#allocation5 + $0x174] sm:$0xf0] }
 0x135   : > { %v1320_v36 = vpop.f32.mrf.mxu2  ;;  %v1144_v42 = vpop.f32.mrf.mxu0 }
 0x136   : > { %3530 = vst [vmem:[%s4658_s1 + $0xac] sm:$0xf] %v2406_v35  ;;  %v1321_v39 = vadd.f32 %v1320_v36, %v4648_v31  ;;  %v1409_v40 = vpop.f32.mrf.mxu3  ;;  %v1145_v46 = vadd.f32 %v1144_v42, %v4640_v24  ;;  %v1233_v49 = vpop.f32.mrf.mxu1  ;;  %v3322_v35 = vor.u32 %v3706_v29, %v3321_v25  ;;  %v3513_v36 = vld [vmem:[#allocation5 + $0x2e0] sm:$0xf] }
 0x138   : > { %v1410_v56 = vadd.f32 %v1409_v40, %v1321_v39  ;;  %v1234_v60 = vadd.f32 %v1233_v49, %v1145_v46  ;;  %1815 = vmatpush.bf16.msra.mxu0 %v3322_v35 }
 0x13a   : > { %v2207_v61 = vpack.c.bf16 %v1410_v56, %v1232_v38  ;;  %v3791_v1 = vpack.c.bf16 %v1234_v60, %v1232_v38  ;;  %v3754_v38 = vld [vmem:[#allocation5 + $0x2f4] sm:$0xf0] }
 0x13b   : > { %v3514_v40 = vor.u32 %v3754_v38, %v3513_v36 }
 0x13c   : > { %v2407_v7 = vrot.slane %v2207_v61, 4  ;;  %4003 = vst [vmem:[%s4658_s1 + $0x30] sm:$0xff] %v3791_v1  }
 0x13d   : > { %v1322_v12 = vpop.f32.mrf.mxu2  ;;  %v1147_v18 = vpop.f32.mrf.mxu0  ;;  %1904 = vmatpush.bf16.msra.mxu1 %v3514_v40  ;;  %v3697_v40 = vld [vmem:[#allocation5 + $0x134] sm:$0xf] }
 0x13e   : > { %3531 = vst [vmem:[%s4658_s1 + $0xb0] sm:$0xf] %v2407_v7  ;;  %v1323_v15 = vadd.f32 %v1322_v12, %v4648_v31  ;;  %v1411_v16 = vpop.f32.mrf.mxu3  ;;  %v1236_v30 = vpop.f32.mrf.mxu1  ;;  %v1148_v44 = vadd.f32 %v1147_v18, %v4640_v24 }
 0x140   : > { %v1412_v39 = vadd.f32 %v1411_v16, %v1323_v15  ;;  %1186 = vmatmul.bf16.gmra.mxu0 %v4775_v13  ;;  %v1237_v49 = vadd.f32 %v1236_v30, %v1148_v44 }
 0x141   : > { %1275 = vmatmul.bf16.gmra.mxu1 %v4779_v20 }
 0x142   : > { %v2210_v42 = vpack.c.bf16 %v1412_v39, %v1234_v60  ;;  %1364 = vmatmul.bf16.gmra.mxu2 %v4775_v13 }
 0x143   : > { %1453 = vmatmul.bf16.gmra.mxu3 %v4779_v20 }
 0x144   : > { %v2408_v45 = vrot.slane %v2210_v42, 4  ;;  %v3299_v42 = vld [vmem:[#allocation5 + $0x148] sm:$0xf0] }
 0x145   : > { %v1325_v46 = vpop.f32.mrf.mxu2  ;;  %v1149_v55 = vpop.f32.mrf.mxu0 }
 0x146   : > { %3532 = vst [vmem:[%s4658_s1 + $0xb4] sm:$0xf] %v2408_v45  ;;  %v1326_v50 = vadd.f32 %v1325_v46, %v4648_v31  ;;  %v1414_v51 = vpop.f32.mrf.mxu3  ;;  %v1150_v56 = vadd.f32 %v1149_v55, %v4640_v24  ;;  %v1238_v57 = vpop.f32.mrf.mxu1  ;;  %v3302_v46 = vor.u32 %v3697_v40, %v3299_v42 }
 0x148   : > { %v1415_v60 = vadd.f32 %v1414_v51, %v1326_v50  ;;  %v1239_v61 = vadd.f32 %v1238_v57, %v1150_v56  ;;  %v3491_v50 = vld [vmem:[#allocation5 + $0x2c8] sm:$0xf0]  ;;  %1994 = vmatpush.bf16.msra.mxu2 %v3302_v46 }
 0x14a   : > { %v2213_v62 = vpack.c.bf16 %v1415_v60, %v1237_v49  ;;  %v3796_v0 = vpack.c.bf16 %v1239_v61, %v1237_v49  ;;  %v3745_v49 = vld [vmem:[#allocation5 + $0x2b4] sm:$0xf] }
 0x14b   : > { %v3494_v55 = vor.u32 %v3745_v49, %v3491_v50 }
 0x14c   : > { %v2409_v1 = vrot.slane %v2213_v62, 4  ;;  %4004 = vst [vmem:[%s4658_s1 + $0x38] sm:$0xff] %v3796_v0  }
 0x14d   : > { %v1327_v4 = vpop.f32.mrf.mxu2  ;;  %v1152_v12 = vpop.f32.mrf.mxu0  ;;  %2083 = vmatpush.bf16.msra.mxu3 %v3494_v55 }
 0x14e   : > { %3533 = vst [vmem:[%s4658_s1 + $0xb8] sm:$0xf] %v2409_v1  ;;  %v1328_v6 = vadd.f32 %v1327_v4, %v4648_v31  ;;  %v1416_v7 = vpop.f32.mrf.mxu3  ;;  %v1241_v15 = vpop.f32.mrf.mxu1  ;;  %v1153_v25 = vadd.f32 %v1152_v12, %v4640_v24 }
 0x150   : > { %v1417_v16 = vadd.f32 %v1416_v7, %v1328_v6  ;;  %1467 = vmatmul.bf16.vlgmr.msrb.gmra.mxu0 %v4542_v43  ;;  %v1242_v35 = vadd.f32 %v1241_v15, %v1153_v25  ;;  %v3297_v6 = vld [vmem:[#allocation5 + $0x130] sm:$0xf]  ;;  %v3700_v7 = vld [vmem:[#allocation5 + $0x144] sm:$0xf0] }
 0x151   : > { %1556 = vmatmul.bf16.vlgmr.msrb.gmra.mxu1 %v4544_v47  ;;  %v3298_v15 = vor.u32 %v3700_v7, %v3297_v6 }
 0x152   : > { %v2216_v18 = vpack.c.bf16 %v1417_v16, %v1239_v61  ;;  %1645 = vmatmul.bf16.vlgmr.msrb.gmra.mxu2 %v4542_v43  ;;  %v3489_v16 = vld [vmem:[#allocation5 + $0x2b0] sm:$0xf] }
 0x153   : > { %1734 = vmatmul.bf16.vlgmr.msrb.gmra.mxu3 %v4544_v47  ;;  %1816 = vmatpush.bf16.msra.mxu0 %v3298_v15 }
 0x154   : > { %v2410_v29 = vrot.slane %v2216_v18, 4  ;;  %v3748_v18 = vld [vmem:[#allocation5 + $0x2c4] sm:$0xf0] }
 0x155   : > { %v1330_v30 = vpop.f32.mrf.mxu2  ;;  %v1154_v39 = vpop.f32.mrf.mxu0 }
 0x156   : > { %3534 = vst [vmem:[%s4658_s1 + $0xbc] sm:$0xf] %v2410_v29  ;;  %v1331_v36 = vadd.f32 %v1330_v30, %v4648_v31  ;;  %v1419_v38 = vpop.f32.mrf.mxu3  ;;  %v1155_v44 = vadd.f32 %v1154_v39, %v4640_v24  ;;  %v1243_v45 = vpop.f32.mrf.mxu1  ;;  %v3490_v29 = vor.u32 %v3748_v18, %v3489_v16 }
 0x158   : > { %v1420_v51 = vadd.f32 %v1419_v38, %v1331_v36  ;;  %v1244_v56 = vadd.f32 %v1243_v45, %v1155_v44  ;;  %1905 = vmatpush.bf16.msra.mxu1 %v3490_v29  ;;  %v3691_v29 = vld [vmem:[#allocation5 + $0x104] sm:$0xf] }
 0x15a   : > { %v2219_v57 = vpack.c.bf16 %v1420_v51, %v1242_v35  ;;  %v3801_v60 = vpack.c.bf16 %v1244_v56, %v1242_v35 }
 0x15c   : > { %v2411_v61 = vrot.slane %v2219_v57, 4  ;;  %4005 = vst [vmem:[%s4658_s1 + $0x40] sm:$0xff] %v3801_v60  }
 0x15d   : > { %v1332_v62 = vpop.f32.mrf.mxu2  ;;  %v1157_v4 = vpop.f32.mrf.mxu0 }
 0x15e   : > { %3535 = vst [vmem:[%s4658_s1 + $0xc0] sm:$0xf] %v2411_v61  ;;  %v1333_v0 = vadd.f32 %v1332_v62, %v4648_v31  ;;  %v1421_v1 = vpop.f32.mrf.mxu3  ;;  %v1246_v12 = vpop.f32.mrf.mxu1  ;;  %v1158_v35 = vadd.f32 %v1157_v4, %v4640_v24 }
 0x160   : > { %v1422_v25 = vadd.f32 %v1421_v1, %v1333_v0  ;;  %1472 = vmatmul.bf16.gmra.mxu0 %v4554_v2  ;;  %v1247_v39 = vadd.f32 %v1246_v12, %v1158_v35 }
 0x161   : > { %1561 = vmatmul.bf16.gmra.mxu1 %v4556_v3 }
 0x162   : > { %v2222_v30 = vpack.c.bf16 %v1422_v25, %v1244_v56  ;;  %1650 = vmatmul.bf16.gmra.mxu2 %v4554_v2 }
 0x163   : > { %1739 = vmatmul.bf16.gmra.mxu3 %v4556_v3 }
 0x164   : > { %v2412_v36 = vrot.slane %v2222_v30, 4  ;;  %v3275_v30 = vld [vmem:[#allocation5 + $0x118] sm:$0xf0] }
 0x165   : > { %v1335_v38 = vpop.f32.mrf.mxu2  ;;  %v1159_v44 = vpop.f32.mrf.mxu0 }
 0x166   : > { %3536 = vst [vmem:[%s4658_s1 + $0xc4] sm:$0xf] %v2412_v36  ;;  %v1336_v40 = vadd.f32 %v1335_v38, %v4648_v31  ;;  %v1424_v42 = vpop.f32.mrf.mxu3  ;;  %v1160_v45 = vadd.f32 %v1159_v44, %v4640_v24  ;;  %v1248_v46 = vpop.f32.mrf.mxu1  ;;  %v3278_v38 = vor.u32 %v3691_v29, %v3275_v30 }
 0x168   : > { %v1425_v49 = vadd.f32 %v1424_v42, %v1336_v40  ;;  %v1249_v50 = vadd.f32 %v1248_v46, %v1160_v45  ;;  %v3467_v40 = vld [vmem:[#allocation5 + $0x298] sm:$0xf0]  ;;  %1995 = vmatpush.bf16.msra.mxu2 %v3278_v38 }
 0x16a   : > { %v2225_v51 = vpack.c.bf16 %v1425_v49, %v1247_v39  ;;  %v3806_v55 = vpack.c.bf16 %v1249_v50, %v1247_v39  ;;  %v3739_v39 = vld [vmem:[#allocation5 + $0x284] sm:$0xf] }
 0x16b   : > { %v3470_v44 = vor.u32 %v3739_v39, %v3467_v40 }
 0x16c   : > { %v2413_v56 = vrot.slane %v2225_v51, 4  ;;  %4006 = vst [vmem:[%s4658_s1 + $0x48] sm:$0xff] %v3806_v55  }
 0x16d   : > { %v1337_v57 = vpop.f32.mrf.mxu2  ;;  %v1162_v62 = vpop.f32.mrf.mxu0  ;;  %2084 = vmatpush.bf16.msra.mxu3 %v3470_v44 }
 0x16e   : > { %3537 = vst [vmem:[%s4658_s1 + $0xc8] sm:$0xf] %v2413_v56  ;;  %v1338_v60 = vadd.f32 %v1337_v57, %v4648_v31  ;;  %v1426_v61 = vpop.f32.mrf.mxu3  ;;  %v1251_v0 = vpop.f32.mrf.mxu1  ;;  %v1163_v6 = vadd.f32 %v1162_v62, %v4640_v24 }
 0x170   : > { %v1427_v1 = vadd.f32 %v1426_v61, %v1338_v60  ;;  %1477 = vmatmul.bf16.gmra.mxu0 %v4566_v8  ;;  %v1252_v15 = vadd.f32 %v1251_v0, %v1163_v6  ;;  %v3273_v60 = vld [vmem:[#allocation5 + $0x100] sm:$0xf]  ;;  %v3694_v61 = vld [vmem:[#allocation5 + $0x114] sm:$0xf0] }
 0x171   : > { %1566 = vmatmul.bf16.gmra.mxu1 %v4568_v9  ;;  %v3274_v0 = vor.u32 %v3694_v61, %v3273_v60 }
 0x172   : > { %v2228_v4 = vpack.c.bf16 %v1427_v1, %v1249_v50  ;;  %1655 = vmatmul.bf16.gmra.mxu2 %v4566_v8  ;;  %v3465_v1 = vld [vmem:[#allocation5 + $0x280] sm:$0xf] }
 0x173   : > { %1744 = vmatmul.bf16.gmra.mxu3 %v4568_v9  ;;  %1817 = vmatpush.bf16.msra.mxu0 %v3274_v0 }
 0x174   : > { %v2414_v7 = vrot.slane %v2228_v4, 4  ;;  %v3742_v4 = vld [vmem:[#allocation5 + $0x294] sm:$0xf0] }
 0x175   : > { %v1340_v12 = vpop.f32.mrf.mxu2  ;;  %v1164_v25 = vpop.f32.mrf.mxu0 }
 0x176   : > { %3538 = vst [vmem:[%s4658_s1 + $0xcc] sm:$0xf] %v2414_v7  ;;  %v1341_v16 = vadd.f32 %v1340_v12, %v4648_v31  ;;  %v1429_v18 = vpop.f32.mrf.mxu3  ;;  %v1165_v35 = vadd.f32 %v1164_v25, %v4640_v24  ;;  %v1253_v36 = vpop.f32.mrf.mxu1  ;;  %v3466_v7 = vor.u32 %v3742_v4, %v3465_v1 }
 0x178   : > { %v1430_v42 = vadd.f32 %v1429_v18, %v1341_v16  ;;  %v1254_v45 = vadd.f32 %v1253_v36, %v1165_v35  ;;  %1906 = vmatpush.bf16.msra.mxu1 %v3466_v7  ;;  %v3685_v7 = vld [vmem:[#allocation5 + $0xd4] sm:$0xf] }
 0x17a   : > { %v2231_v46 = vpack.c.bf16 %v1430_v42, %v1252_v15  ;;  %v3811_v49 = vpack.c.bf16 %v1254_v45, %v1252_v15 }
 0x17c   : > { %v2415_v50 = vrot.slane %v2231_v46, 4  ;;  %4007 = vst [vmem:[%s4658_s1 + $0x50] sm:$0xff] %v3811_v49  }
 0x17d   : > { %v1342_v51 = vpop.f32.mrf.mxu2  ;;  %v1167_v57 = vpop.f32.mrf.mxu0 }
 0x17e   : > { %3539 = vst [vmem:[%s4658_s1 + $0xd0] sm:$0xf] %v2415_v50  ;;  %v1343_v55 = vadd.f32 %v1342_v51, %v4648_v31  ;;  %v1431_v56 = vpop.f32.mrf.mxu3  ;;  %v1256_v62 = vpop.f32.mrf.mxu1  ;;  %v1168_v15 = vadd.f32 %v1167_v57, %v4640_v24 }
 0x180   : > { %v1432_v6 = vadd.f32 %v1431_v56, %v1343_v55  ;;  %1482 = vmatmul.bf16.gmra.mxu0 %v4578_v26  ;;  %v1257_v25 = vadd.f32 %v1256_v62, %v1168_v15 }
 0x181   : > { %1571 = vmatmul.bf16.gmra.mxu1 %v4580_v27 }
 0x182   : > { %v2234_v12 = vpack.c.bf16 %v1432_v6, %v1254_v45  ;;  %1660 = vmatmul.bf16.gmra.mxu2 %v4578_v26 }
 0x183   : > { %1749 = vmatmul.bf16.gmra.mxu3 %v4580_v27 }
 0x184   : > { %v2416_v16 = vrot.slane %v2234_v12, 4  ;;  %v3251_v12 = vld [vmem:[#allocation5 + $0xe8] sm:$0xf0] }
 0x185   : > { %v1345_v18 = vpop.f32.mrf.mxu2  ;;  %v1169_v35 = vpop.f32.mrf.mxu0 }
 0x186   : > { %3540 = vst [vmem:[%s4658_s1 + $0xd4] sm:$0xf] %v2416_v16  ;;  %v1346_v29 = vadd.f32 %v1345_v18, %v4648_v31  ;;  %v1434_v30 = vpop.f32.mrf.mxu3  ;;  %v1170_v36 = vadd.f32 %v1169_v35, %v4640_v24  ;;  %v1258_v38 = vpop.f32.mrf.mxu1  ;;  %v3254_v18 = vor.u32 %v3685_v7, %v3251_v12 }
 0x188   : > { %v1435_v39 = vadd.f32 %v1434_v30, %v1346_v29  ;;  %v1259_v40 = vadd.f32 %v1258_v38, %v1170_v36  ;;  %v3443_v29 = vld [vmem:[#allocation5 + $0x268] sm:$0xf0]  ;;  %1996 = vmatpush.bf16.msra.mxu2 %v3254_v18 }
 0x18a   : > { %v2237_v42 = vpack.c.bf16 %v1435_v39, %v1257_v25  ;;  %v3816_v44 = vpack.c.bf16 %v1259_v40, %v1257_v25  ;;  %v3733_v25 = vld [vmem:[#allocation5 + $0x254] sm:$0xf] }
 0x18b   : > { %v3446_v35 = vor.u32 %v3733_v25, %v3443_v29 }
 0x18c   : > { %v2417_v45 = vrot.slane %v2237_v42, 4  ;;  %4008 = vst [vmem:[%s4658_s1 + $0x58] sm:$0xff] %v3816_v44  }
 0x18d   : > { %v1347_v46 = vpop.f32.mrf.mxu2  ;;  %v1172_v51 = vpop.f32.mrf.mxu0  ;;  %2085 = vmatpush.bf16.msra.mxu3 %v3446_v35 }
 0x18e   : > { %3541 = vst [vmem:[%s4658_s1 + $0xd8] sm:$0xf] %v2417_v45  ;;  %v1348_v49 = vadd.f32 %v1347_v46, %v4648_v31  ;;  %v1436_v50 = vpop.f32.mrf.mxu3  ;;  %v1261_v55 = vpop.f32.mrf.mxu1  ;;  %v1173_v60 = vadd.f32 %v1172_v51, %v4640_v24 }
 0x190   : > { %v1437_v56 = vadd.f32 %v1436_v50, %v1348_v49  ;;  %1487 = vmatmul.bf16.gmra.mxu0 %v4590_v32  ;;  %v1262_v0 = vadd.f32 %v1261_v55, %v1173_v60  ;;  %v3249_v49 = vld [vmem:[#allocation5 + $0xd0] sm:$0xf]  ;;  %v3688_v50 = vld [vmem:[#allocation5 + $0xe4] sm:$0xf0] }
 0x191   : > { %1576 = vmatmul.bf16.gmra.mxu1 %v4592_v33  ;;  %v3250_v55 = vor.u32 %v3688_v50, %v3249_v49 }
 0x192   : > { %v2240_v57 = vpack.c.bf16 %v1437_v56, %v1259_v40  ;;  %1665 = vmatmul.bf16.gmra.mxu2 %v4590_v32  ;;  %v3441_v56 = vld [vmem:[#allocation5 + $0x250] sm:$0xf] }
 0x193   : > { %1754 = vmatmul.bf16.gmra.mxu3 %v4592_v33  ;;  %1818 = vmatpush.bf16.msra.mxu0 %v3250_v55 }
 0x194   : > { %v2418_v61 = vrot.slane %v2240_v57, 4  ;;  %v3736_v57 = vld [vmem:[#allocation5 + $0x264] sm:$0xf0] }
 0x195   : > { %v1350_v62 = vpop.f32.mrf.mxu2  ;;  %v1174_v6 = vpop.f32.mrf.mxu0 }
 0x196   : > { %3542 = vst [vmem:[%s4658_s1 + $0xdc] sm:$0xf] %v2418_v61  ;;  %v1351_v1 = vadd.f32 %v1350_v62, %v4648_v31  ;;  %v1439_v4 = vpop.f32.mrf.mxu3  ;;  %v1175_v15 = vadd.f32 %v1174_v6, %v4640_v24  ;;  %v1263_v16 = vpop.f32.mrf.mxu1  ;;  %v3442_v61 = vor.u32 %v3736_v57, %v3441_v56 }
 0x198   : > { %v1440_v30 = vadd.f32 %v1439_v4, %v1351_v1  ;;  %v1264_v36 = vadd.f32 %v1263_v16, %v1175_v15  ;;  %1907 = vmatpush.bf16.msra.mxu1 %v3442_v61  ;;  %v3679_v61 = vld [vmem:[#allocation5 + $0xa4] sm:$0xf] }
 0x19a   : > { %v2243_v38 = vpack.c.bf16 %v1440_v30, %v1262_v0  ;;  %v3821_v39 = vpack.c.bf16 %v1264_v36, %v1262_v0 }
 0x19c   : > { %v2419_v40 = vrot.slane %v2243_v38, 4  ;;  %4009 = vst [vmem:[%s4658_s1 + $0x60] sm:$0xff] %v3821_v39  }
 0x19d   : > { %v1352_v42 = vpop.f32.mrf.mxu2  ;;  %v1177_v46 = vpop.f32.mrf.mxu0 }
 0x19e   : > { %3543 = vst [vmem:[%s4658_s1 + $0xe0] sm:$0xf] %v2419_v40  ;;  %v1353_v44 = vadd.f32 %v1352_v42, %v4648_v31  ;;  %v1441_v45 = vpop.f32.mrf.mxu3  ;;  %v1266_v51 = vpop.f32.mrf.mxu1  ;;  %v1178_v0 = vadd.f32 %v1177_v46, %v4640_v24 }
 0x1a0   : > { %v1442_v60 = vadd.f32 %v1441_v45, %v1353_v44  ;;  %1492 = vmatmul.bf16.gmra.mxu0 %v4602_v52  ;;  %v1267_v6 = vadd.f32 %v1266_v51, %v1178_v0 }
 0x1a1   : > { %1581 = vmatmul.bf16.gmra.mxu1 %v4604_v53 }
 0x1a2   : > { %v2246_v62 = vpack.c.bf16 %v1442_v60, %v1264_v36  ;;  %1670 = vmatmul.bf16.gmra.mxu2 %v4602_v52 }
 0x1a3   : > { %1759 = vmatmul.bf16.gmra.mxu3 %v4604_v53 }
 0x1a4   : > { %v2420_v1 = vrot.slane %v2246_v62, 4  ;;  %v3227_v62 = vld [vmem:[#allocation5 + $0xb8] sm:$0xf0] }
 0x1a5   : > { %v1355_v4 = vpop.f32.mrf.mxu2  ;;  %v1179_v15 = vpop.f32.mrf.mxu0 }
 0x1a6   : > { %3544 = vst [vmem:[%s4658_s1 + $0xe4] sm:$0xf] %v2420_v1  ;;  %v1356_v7 = vadd.f32 %v1355_v4, %v4648_v31  ;;  %v1444_v12 = vpop.f32.mrf.mxu3  ;;  %v1180_v16 = vadd.f32 %v1179_v15, %v4640_v24  ;;  %v1268_v18 = vpop.f32.mrf.mxu1  ;;  %v3230_v4 = vor.u32 %v3679_v61, %v3227_v62 }
 0x1a8   : > { %v1445_v25 = vadd.f32 %v1444_v12, %v1356_v7  ;;  %v1269_v29 = vadd.f32 %v1268_v18, %v1180_v16  ;;  %v3419_v7 = vld [vmem:[#allocation5 + $0x238] sm:$0xf0]  ;;  %1997 = vmatpush.bf16.msra.mxu2 %v3230_v4 }
 0x1aa   : > { %v2249_v30 = vpack.c.bf16 %v1445_v25, %v1267_v6  ;;  %v3826_v35 = vpack.c.bf16 %v1269_v29, %v1267_v6  ;;  %v3727_v6 = vld [vmem:[#allocation5 + $0x224] sm:$0xf] }
 0x1ab   : > { %v3422_v15 = vor.u32 %v3727_v6, %v3419_v7 }
 0x1ac   : > { %v2421_v36 = vrot.slane %v2249_v30, 4  ;;  %4010 = vst [vmem:[%s4658_s1 + $0x68] sm:$0xff] %v3826_v35  }
 0x1ad   : > { %v1357_v38 = vpop.f32.mrf.mxu2  ;;  %v1182_v42 = vpop.f32.mrf.mxu0  ;;  %2086 = vmatpush.bf16.msra.mxu3 %v3422_v15 }
 0x1ae   : > { %3545 = vst [vmem:[%s4658_s1 + $0xe8] sm:$0xf] %v2421_v36  ;;  %v1358_v39 = vadd.f32 %v1357_v38, %v4648_v31  ;;  %v1446_v40 = vpop.f32.mrf.mxu3  ;;  %v1271_v44 = vpop.f32.mrf.mxu1  ;;  %v1183_v49 = vadd.f32 %v1182_v42, %v4640_v24 }
 0x1b0   : > { %v1447_v45 = vadd.f32 %v1446_v40, %v1358_v39  ;;  %1497 = vmatmul.bf16.gmra.mxu0 %v4614_v58  ;;  %v1272_v55 = vadd.f32 %v1271_v44, %v1183_v49  ;;  %v3225_v39 = vld [vmem:[#allocation5 + $0xa0] sm:$0xf]  ;;  %v3682_v40 = vld [vmem:[#allocation5 + $0xb4] sm:$0xf0] }
 0x1b1   : > { %1586 = vmatmul.bf16.gmra.mxu1 %v4616_v59  ;;  %v3226_v44 = vor.u32 %v3682_v40, %v3225_v39 }
 0x1b2   : > { %v2252_v46 = vpack.c.bf16 %v1447_v45, %v1269_v29  ;;  %1675 = vmatmul.bf16.gmra.mxu2 %v4614_v58  ;;  %v3417_v45 = vld [vmem:[#allocation5 + $0x220] sm:$0xf] }
 0x1b3   : > { %1764 = vmatmul.bf16.gmra.mxu3 %v4616_v59  ;;  %1819 = vmatpush.bf16.msra.mxu0 %v3226_v44 }
 0x1b4   : > { %v2422_v50 = vrot.slane %v2252_v46, 4  ;;  %v3730_v46 = vld [vmem:[#allocation5 + $0x234] sm:$0xf0] }
 0x1b5   : > { %v1360_v51 = vpop.f32.mrf.mxu2  ;;  %v1184_v60 = vpop.f32.mrf.mxu0 }
 0x1b6   : > { %3546 = vst [vmem:[%s4658_s1 + $0xec] sm:$0xf] %v2422_v50  ;;  %v1361_v56 = vadd.f32 %v1360_v51, %v4648_v31  ;;  %v1449_v57 = vpop.f32.mrf.mxu3  ;;  %v1185_v0 = vadd.f32 %v1184_v60, %v4640_v24  ;;  %v1273_v1 = vpop.f32.mrf.mxu1  ;;  %v3418_v50 = vor.u32 %v3730_v46, %v3417_v45 }
 0x1b8   : > { %v1450_v12 = vadd.f32 %v1449_v57, %v1361_v56  ;;  %v1274_v16 = vadd.f32 %v1273_v1, %v1185_v0  ;;  %1908 = vmatpush.bf16.msra.mxu1 %v3418_v50 }
 0x1ba   : > { %v2255_v18 = vpack.c.bf16 %v1450_v12, %v1272_v55  ;;  %v3831_v25 = vpack.c.bf16 %v1274_v16, %v1272_v55 }
 0x1bc   : > { %v2423_v29 = vrot.slane %v2255_v18, 4  ;;  %4011 = vst [vmem:[%s4658_s1 + $0x70] sm:$0xff] %v3831_v25  }
 0x1bd   : > { %v1362_v30 = vpop.f32.mrf.mxu2  ;;  %v1187_v38 = vpop.f32.mrf.mxu0 }
 0x1be   : > { %3547 = vst [vmem:[%s4658_s1 + $0xf0] sm:$0xf] %v2423_v29  ;;  %v1363_v35 = vadd.f32 %v1362_v30, %v4648_v31  ;;  %v1451_v36 = vpop.f32.mrf.mxu3  ;;  %v1276_v42 = vpop.f32.mrf.mxu1  ;;  %v1188_v55 = vadd.f32 %v1187_v38, %v4640_v24  ;;  %v4880_v30 = vld [vmem:[#allocation7] sm:$0x3f] }
 0x1c0   : > { %v1452_v49 = vadd.f32 %v1451_v36, %v1363_v35  ;;  %1502 = vmatmul.bf16.gmra.mxu0 %v4626_v10  ;;  %v1277_v60 = vadd.f32 %v1276_v42, %v1188_v55  ;;  %v4883_v35 = vperm.slane %v4880_v30, 2  ;;  %v3203_v55 = vld [vmem:[#allocation5 + $0x88] sm:$0xf0] }
 0x1c1   : > { %1591 = vmatmul.bf16.gmra.mxu1 %v4628_v11 }
 0x1c2   : > { %v2258_v51 = vpack.c.bf16 %v1452_v49, %v1274_v16  ;;  %1680 = vmatmul.bf16.gmra.mxu2 %v4626_v10 }
 0x1c3   : > { %1769 = vmatmul.bf16.gmra.mxu3 %v4628_v11 }
 0x1c4   : > { %v2424_v56 = vrot.slane %v2258_v51, 4  ;;  %v3673_v51 = vld [vmem:[#allocation5 + $0x74] sm:$0xf] }
 0x1c5   : > { %v1365_v57 = vpop.f32.mrf.mxu2  ;;  %v1189_v0 = vpop.f32.mrf.mxu0 }
 0x1c6   : > { %3548 = vst [vmem:[%s4658_s1 + $0xf4] sm:$0xf] %v2424_v56  ;;  %v1366_v61 = vadd.f32 %v1365_v57, %v4648_v31  ;;  %v1454_v62 = vpop.f32.mrf.mxu3  ;;  %v1190_v1 = vadd.f32 %v1189_v0, %v4640_v24  ;;  %v1278_v4 = vpop.f32.mrf.mxu1 }
 0x1c8   : > { %v1455_v6 = vadd.f32 %v1454_v62, %v1366_v61  ;;  %v1279_v7 = vadd.f32 %v1278_v4, %v1190_v1  ;;  %v3721_v61 = vld [vmem:[#allocation5 + $0x1f4] sm:$0xf]  ;;  %v3395_v62 = vld [vmem:[#allocation5 + $0x208] sm:$0xf0] }
 0x1c9   : > { %v3398_v1 = vor.u32 %v3721_v61, %v3395_v62 }
 0x1ca   : > { %v2261_v12 = vpack.c.bf16 %v1455_v6, %v1277_v60  ;;  %v3836_v15 = vpack.c.bf16 %v1279_v7, %v1277_v60  ;;  %v3206_v60 = vor.u32 %v3673_v51, %v3203_v55 }
 0x1cb   : > { %2087 = vmatpush.bf16.msra.mxu3 %v3398_v1 }
 0x1cc   : > { %v2425_v16 = vrot.slane %v2261_v12, 4  ;;  %4012 = vst [vmem:[%s4658_s1 + $0x78] sm:$0xff] %v3836_v15   ;;  %1998 = vmatpush.bf16.msra.mxu2 %v3206_v60 }
 0x1cd   : > { %v1367_v18 = vpop.f32.mrf.mxu2  ;;  %v1468_v36 = vpop.f32.mrf.mxu0 }
 0x1ce   : > { %3549 = vst [vmem:[%s4658_s1 + $0xf8] sm:$0xf] %v2425_v16  ;;  %v1368_v25 = vadd.f32 %v1367_v18, %v4648_v31  ;;  %v1456_v29 = vpop.f32.mrf.mxu3  ;;  %v1557_v24 = vpop.f32.mrf.mxu1  ;;  %v1469_v40 = vadd.f32 %v1468_v36, %v4883_v35  ;;  %v4890_v31 = vperm.slane %v4880_v30, 3  ;;  %v3676_v36 = vld [vmem:[#allocation5 + $0x84] sm:$0xf0] }
 0x1d0   : > { %v1457_v38 = vadd.f32 %v1456_v29, %v1368_v25  ;;  %1507 = vmatmul.bf16.gmra.mxu0 %v4638_v23  ;;  %v1558_v45 = vadd.f32 %v1557_v24, %v1469_v40  ;;  %v3201_v29 = vld [vmem:[#allocation5 + $0x70] sm:$0xf]  ;;  %v3724_v40 = vld [vmem:[#allocation5 + $0x204] sm:$0xf0] }
 0x1d1   : > { %1596 = vmatmul.bf16.gmra.mxu1 %v4642_v28 }
 0x1d2   : > { %v2264_v39 = vpack.c.bf16 %v1457_v38, %v1279_v7  ;;  %1685 = vmatmul.bf16.gmra.mxu2 %v4638_v23  ;;  %v3202_v38 = vor.u32 %v3676_v36, %v3201_v29 }
 0x1d3   : > { %1774 = vmatmul.bf16.gmra.mxu3 %v4642_v28 }
 0x1d4   : > { %v2426_v42 = vrot.slane %v2264_v39, 4  ;;  %v3393_v39 = vld [vmem:[#allocation5 + $0x1f0] sm:$0xf]  ;;  %1820 = vmatpush.bf16.msra.mxu0 %v3202_v38 }
 0x1d5   : > { %v1646_v44 = vpop.f32.mrf.mxu2  ;;  %v1470_v50 = vpop.f32.mrf.mxu0 }
 0x1d6   : > { %3550 = vst [vmem:[%s4658_s1 + $0xfc] sm:$0xf] %v2426_v42  ;;  %v1647_v46 = vadd.f32 %v1646_v44, %v4890_v31  ;;  %v1735_v49 = vpop.f32.mrf.mxu3  ;;  %v1471_v56 = vadd.f32 %v1470_v50, %v4883_v35  ;;  %v1559_v57 = vpop.f32.mrf.mxu1  ;;  %v3394_v44 = vor.u32 %v3724_v40, %v3393_v39 }
 0x1d8   : > { %v1736_v0 = vadd.f32 %v1735_v49, %v1647_v46  ;;  %v1560_v4 = vadd.f32 %v1559_v57, %v1471_v56  ;;  %1909 = vmatpush.bf16.msra.mxu1 %v3394_v44 }
 0x1da   : > { %v2172_v6 = vpack.c.bf16 %v1736_v0, %v1558_v45  ;;  %v3841_v7 = vpack.c.bf16 %v1560_v4, %v1558_v45 }
 0x1dc   : > { %v2524_v12 = vrot.slane %v2172_v6, 4  ;;  %3842 = vst [vmem:[%s4897_s2] sm:$0xff] %v3841_v7  }
 0x1dd   : > { %v1648_v15 = vpop.f32.mrf.mxu2  ;;  %v1473_v25 = vpop.f32.mrf.mxu0 }
 0x1de   : > { %3551 = vst [vmem:[%s4897_s2 + $0x80] sm:$0xf] %v2524_v12  ;;  %v1649_v16 = vadd.f32 %v1648_v15, %v4890_v31  ;;  %v1737_v18 = vpop.f32.mrf.mxu3  ;;  %v1562_v24 = vpop.f32.mrf.mxu1  ;;  %v1474_v46 = vadd.f32 %v1473_v25, %v4883_v35 }
 0x1e0   : > { %v1738_v42 = vadd.f32 %v1737_v18, %v1649_v16  ;;  %1512 = vmatmul.bf16.gmra.mxu0 %v4661_v63  ;;  %v1563_v51 = vadd.f32 %v1562_v24, %v1474_v46  ;;  %v3179_v46 = vld [vmem:[#allocation5 + $0x58] sm:$0xf0] }
 0x1e1   : > { %1601 = vmatmul.bf16.gmra.mxu1 %v4665_v5 }
 0x1e2   : > { %v2175_v45 = vpack.c.bf16 %v1738_v42, %v1560_v4  ;;  %1690 = vmatmul.bf16.gmra.mxu2 %v4661_v63 }
 0x1e3   : > { %1779 = vmatmul.bf16.gmra.mxu3 %v4665_v5 }
 0x1e4   : > { %v2525_v49 = vrot.slane %v2175_v45, 4  ;;  %v3667_v45 = vld [vmem:[#allocation5 + $0x44] sm:$0xf] }
 0x1e5   : > { %v1651_v50 = vpop.f32.mrf.mxu2  ;;  %v1475_v57 = vpop.f32.mrf.mxu0 }
 0x1e6   : > { %3552 = vst [vmem:[%s4897_s2 + $0x84] sm:$0xf] %v2525_v49  ;;  %v1652_v55 = vadd.f32 %v1651_v50, %v4890_v31  ;;  %v1740_v56 = vpop.f32.mrf.mxu3  ;;  %v1476_v60 = vadd.f32 %v1475_v57, %v4883_v35  ;;  %v1564_v61 = vpop.f32.mrf.mxu1 }
 0x1e8   : > { %v1741_v62 = vadd.f32 %v1740_v56, %v1652_v55  ;;  %v1565_v0 = vadd.f32 %v1564_v61, %v1476_v60  ;;  %v3715_v55 = vld [vmem:[#allocation5 + $0x1c4] sm:$0xf]  ;;  %v3371_v56 = vld [vmem:[#allocation5 + $0x1d8] sm:$0xf0] }
 0x1e9   : > { %v3374_v60 = vor.u32 %v3715_v55, %v3371_v56 }
 0x1ea   : > { %v2178_v1 = vpack.c.bf16 %v1741_v62, %v1563_v51  ;;  %v3846_v4 = vpack.c.bf16 %v1565_v0, %v1563_v51  ;;  %v3182_v51 = vor.u32 %v3667_v45, %v3179_v46 }
 0x1eb   : > { %2088 = vmatpush.bf16.msra.mxu3 %v3374_v60 }
 0x1ec   : > { %v2526_v6 = vrot.slane %v2178_v1, 4  ;;  %4013 = vst [vmem:[%s4897_s2 + $0x8] sm:$0xff] %v3846_v4   ;;  %1999 = vmatpush.bf16.msra.mxu2 %v3182_v51 }
 0x1ed   : > { %v1653_v7 = vpop.f32.mrf.mxu2  ;;  %v1478_v16 = vpop.f32.mrf.mxu0 }
 0x1ee   : > { %3553 = vst [vmem:[%s4897_s2 + $0x88] sm:$0xf] %v2526_v6  ;;  %v1654_v12 = vadd.f32 %v1653_v7, %v4890_v31  ;;  %v1742_v15 = vpop.f32.mrf.mxu3  ;;  %v1567_v18 = vpop.f32.mrf.mxu1  ;;  %v1479_v36 = vadd.f32 %v1478_v16, %v4883_v35  ;;  %v3670_v16 = vld [vmem:[#allocation5 + $0x54] sm:$0xf0] }
 0x1f0   : > { %v1743_v25 = vadd.f32 %v1742_v15, %v1654_v12  ;;  %1517 = vmatmul.bf16.gmra.mxu0 %v4680_v48  ;;  %v1568_v39 = vadd.f32 %v1567_v18, %v1479_v36  ;;  %v3177_v15 = vld [vmem:[#allocation5 + $0x40] sm:$0xf]  ;;  %v3718_v36 = vld [vmem:[#allocation5 + $0x1d4] sm:$0xf0] }
 0x1f1   : > { %1606 = vmatmul.bf16.gmra.mxu1 %v4684_v54 }
 0x1f2   : > { %v2181_v29 = vpack.c.bf16 %v1743_v25, %v1565_v0  ;;  %1695 = vmatmul.bf16.gmra.mxu2 %v4680_v48  ;;  %v3178_v25 = vor.u32 %v3670_v16, %v3177_v15 }
 0x1f3   : > { %1784 = vmatmul.bf16.gmra.mxu3 %v4684_v54 }
 0x1f4   : > { %v2527_v24 = vrot.slane %v2181_v29, 4  ;;  %v3369_v29 = vld [vmem:[#allocation5 + $0x1c0] sm:$0xf]  ;;  %1821 = vmatpush.bf16.msra.mxu0 %v3178_v25 }
 0x1f5   : > { %v1656_v38 = vpop.f32.mrf.mxu2  ;;  %v1480_v44 = vpop.f32.mrf.mxu0 }
 0x1f6   : > { %3554 = vst [vmem:[%s4897_s2 + $0x8c] sm:$0xf] %v2527_v24  ;;  %v1657_v40 = vadd.f32 %v1656_v38, %v4890_v31  ;;  %v1745_v42 = vpop.f32.mrf.mxu3  ;;  %v1481_v49 = vadd.f32 %v1480_v44, %v4883_v35  ;;  %v1569_v50 = vpop.f32.mrf.mxu1  ;;  %v3370_v38 = vor.u32 %v3718_v36, %v3369_v29 }
 0x1f8   : > { %v1746_v57 = vadd.f32 %v1745_v42, %v1657_v40  ;;  %v1570_v61 = vadd.f32 %v1569_v50, %v1481_v49  ;;  %1910 = vmatpush.bf16.msra.mxu1 %v3370_v38 }
 0x1fa   : > { %v2184_v62 = vpack.c.bf16 %v1746_v57, %v1568_v39  ;;  %v3851_v0 = vpack.c.bf16 %v1570_v61, %v1568_v39 }
 0x1fc   : > { %v2528_v1 = vrot.slane %v2184_v62, 4  ;;  %4014 = vst [vmem:[%s4897_s2 + $0x10] sm:$0xff] %v3851_v0  }
 0x1fd   : > { %v1658_v4 = vpop.f32.mrf.mxu2  ;;  %v1483_v12 = vpop.f32.mrf.mxu0 }
 0x1fe   : > { %3555 = vst [vmem:[%s4897_s2 + $0x90] sm:$0xf] %v2528_v1  ;;  %v1659_v6 = vadd.f32 %v1658_v4, %v4890_v31  ;;  %v1747_v7 = vpop.f32.mrf.mxu3  ;;  %v1572_v18 = vpop.f32.mrf.mxu1  ;;  %v1484_v40 = vadd.f32 %v1483_v12, %v4883_v35 }
 0x200   : > { %v1748_v24 = vadd.f32 %v1747_v7, %v1659_v6  ;;  %1522 = vmatmul.bf16.gmra.mxu0 %v4699_v37  ;;  %v1573_v45 = vadd.f32 %v1572_v18, %v1484_v40  ;;  %v3155_v40 = vld [vmem:[#allocation5 + $0x28] sm:$0xf0] }
 0x201   : > { %1611 = vmatmul.bf16.gmra.mxu1 %v4703_v41 }
 0x202   : > { %v2187_v39 = vpack.c.bf16 %v1748_v24, %v1570_v61  ;;  %1700 = vmatmul.bf16.gmra.mxu2 %v4699_v37 }
 0x203   : > { %1789 = vmatmul.bf16.gmra.mxu3 %v4703_v41 }
 0x204   : > { %v2529_v42 = vrot.slane %v2187_v39, 4  ;;  %v3661_v39 = vld [vmem:[#allocation5 + $0x14] sm:$0xf] }
 0x205   : > { %v1661_v44 = vpop.f32.mrf.mxu2  ;;  %v1485_v50 = vpop.f32.mrf.mxu0 }
 0x206   : > { %3556 = vst [vmem:[%s4897_s2 + $0x94] sm:$0xf] %v2529_v42  ;;  %v1662_v46 = vadd.f32 %v1661_v44, %v4890_v31  ;;  %v1750_v49 = vpop.f32.mrf.mxu3  ;;  %v1486_v51 = vadd.f32 %v1485_v50, %v4883_v35  ;;  %v1574_v55 = vpop.f32.mrf.mxu1 }
 0x208   : > { %v1751_v56 = vadd.f32 %v1750_v49, %v1662_v46  ;;  %v1575_v57 = vadd.f32 %v1574_v55, %v1486_v51  ;;  %v3709_v46 = vld [vmem:[#allocation5 + $0x194] sm:$0xf]  ;;  %v3347_v49 = vld [vmem:[#allocation5 + $0x1a8] sm:$0xf0] }
 0x209   : > { %v3350_v51 = vor.u32 %v3709_v46, %v3347_v49 }
 0x20a   : > { %v2190_v60 = vpack.c.bf16 %v1751_v56, %v1573_v45  ;;  %v3856_v61 = vpack.c.bf16 %v1575_v57, %v1573_v45  ;;  %v3158_v45 = vor.u32 %v3661_v39, %v3155_v40 }
 0x20b   : > { %2089 = vmatpush.bf16.msra.mxu3 %v3350_v51 }
 0x20c   : > { %v2530_v62 = vrot.slane %v2190_v60, 4  ;;  %4015 = vst [vmem:[%s4897_s2 + $0x18] sm:$0xff] %v3856_v61   ;;  %2000 = vmatpush.bf16.msra.mxu2 %v3158_v45 }
 0x20d   : > { %v1663_v0 = vpop.f32.mrf.mxu2  ;;  %v1488_v6 = vpop.f32.mrf.mxu0 }
 0x20e   : > { %3557 = vst [vmem:[%s4897_s2 + $0x98] sm:$0xf] %v2530_v62  ;;  %v1664_v1 = vadd.f32 %v1663_v0, %v4890_v31  ;;  %v1752_v4 = vpop.f32.mrf.mxu3  ;;  %v1577_v7 = vpop.f32.mrf.mxu1  ;;  %v1489_v16 = vadd.f32 %v1488_v6, %v4883_v35  ;;  %v3664_v6 = vld [vmem:[#allocation5 + $0x24] sm:$0xf0] }
 0x210   : > { %v1753_v12 = vadd.f32 %v1752_v4, %v1664_v1  ;;  %1527 = vmatmul.bf16.gmra.mxu0 %v4718_v22  ;;  %v1578_v29 = vadd.f32 %v1577_v7, %v1489_v16  ;;  %v3153_v4 = vld [vmem:[#allocation5 + $0x10] sm:$0xf]  ;;  %v3712_v16 = vld [vmem:[#allocation5 + $0x1a4] sm:$0xf0] }
 0x211   : > { %1616 = vmatmul.bf16.gmra.mxu1 %v4722_v34 }
 0x212   : > { %v2193_v15 = vpack.c.bf16 %v1753_v12, %v1575_v57  ;;  %1705 = vmatmul.bf16.gmra.mxu2 %v4718_v22  ;;  %v3154_v12 = vor.u32 %v3664_v6, %v3153_v4 }
 0x213   : > { %1794 = vmatmul.bf16.gmra.mxu3 %v4722_v34 }
 0x214   : > { %v2531_v18 = vrot.slane %v2193_v15, 4  ;;  %v3345_v15 = vld [vmem:[#allocation5 + $0x190] sm:$0xf]  ;;  %1822 = vmatpush.bf16.msra.mxu0 %v3154_v12 }
 0x215   : > { %v1666_v25 = vpop.f32.mrf.mxu2  ;;  %v1490_v38 = vpop.f32.mrf.mxu0 }
 0x216   : > { %3558 = vst [vmem:[%s4897_s2 + $0x9c] sm:$0xf] %v2531_v18  ;;  %v1667_v36 = vadd.f32 %v1666_v25, %v4890_v31  ;;  %v1755_v24 = vpop.f32.mrf.mxu3  ;;  %v1491_v42 = vadd.f32 %v1490_v38, %v4883_v35  ;;  %v1579_v44 = vpop.f32.mrf.mxu1  ;;  %v3346_v25 = vor.u32 %v3712_v16, %v3345_v15 }
 0x218   : > { %v1756_v50 = vadd.f32 %v1755_v24, %v1667_v36  ;;  %v1580_v55 = vadd.f32 %v1579_v44, %v1491_v42  ;;  %1911 = vmatpush.bf16.msra.mxu1 %v3346_v25 }
 0x21a   : > { %v2196_v56 = vpack.c.bf16 %v1756_v50, %v1578_v29  ;;  %v3861_v57 = vpack.c.bf16 %v1580_v55, %v1578_v29 }
 0x21c   : > { %v2532_v60 = vrot.slane %v2196_v56, 4  ;;  %4016 = vst [vmem:[%s4897_s2 + $0x20] sm:$0xff] %v3861_v57  }
 0x21d   : > { %v1668_v61 = vpop.f32.mrf.mxu2  ;;  %v1493_v1 = vpop.f32.mrf.mxu0 }
 0x21e   : > { %3559 = vst [vmem:[%s4897_s2 + $0xa0] sm:$0xf] %v2532_v60  ;;  %v1669_v62 = vadd.f32 %v1668_v61, %v4890_v31  ;;  %v1757_v0 = vpop.f32.mrf.mxu3  ;;  %v1582_v7 = vpop.f32.mrf.mxu1  ;;  %v1494_v36 = vadd.f32 %v1493_v1, %v4883_v35 }
 0x220   : > { %v1758_v18 = vadd.f32 %v1757_v0, %v1669_v62  ;;  %1532 = vmatmul.bf16.gmra.mxu0 %v4737_v17  ;;  %v1583_v39 = vadd.f32 %v1582_v7, %v1494_v36 }
 0x221   : > { %1621 = vmatmul.bf16.gmra.mxu1 %v4741_v21 }
 0x222   : > { %v2199_v29 = vpack.c.bf16 %v1758_v18, %v1580_v55  ;;  %1710 = vmatmul.bf16.gmra.mxu2 %v4737_v17 }
 0x223   : > { %1799 = vmatmul.bf16.gmra.mxu3 %v4741_v21 }
 0x224   : > { %v2533_v24 = vrot.slane %v2199_v29, 4 }
 0x225   : > { %v1671_v38 = vpop.f32.mrf.mxu2  ;;  %v1495_v44 = vpop.f32.mrf.mxu0 }
 0x226   : > { %3560 = vst [vmem:[%s4897_s2 + $0xa4] sm:$0xf] %v2533_v24  ;;  %v1672_v40 = vadd.f32 %v1671_v38, %v4890_v31  ;;  %v1760_v42 = vpop.f32.mrf.mxu3  ;;  %v1496_v45 = vadd.f32 %v1495_v44, %v4883_v35  ;;  %v1584_v46 = vpop.f32.mrf.mxu1 }
 0x228   : > { %v1761_v49 = vadd.f32 %v1760_v42, %v1672_v40  ;;  %v1585_v50 = vadd.f32 %v1584_v46, %v1496_v45 }
 0x22a   : > { %v2202_v51 = vpack.c.bf16 %v1761_v49, %v1583_v39  ;;  %v3866_v55 = vpack.c.bf16 %v1585_v50, %v1583_v39 }
 0x22c   : > { %v2534_v56 = vrot.slane %v2202_v51, 4  ;;  %4017 = vst [vmem:[%s4897_s2 + $0x28] sm:$0xff] %v3866_v55  }
 0x22d   : > { %v1673_v57 = vpop.f32.mrf.mxu2  ;;  %v1498_v62 = vpop.f32.mrf.mxu0 }
 0x22e   : > { %3561 = vst [vmem:[%s4897_s2 + $0xa8] sm:$0xf] %v2534_v56  ;;  %v1674_v60 = vadd.f32 %v1673_v57, %v4890_v31  ;;  %v1762_v61 = vpop.f32.mrf.mxu3  ;;  %v1587_v0 = vpop.f32.mrf.mxu1  ;;  %v1499_v6 = vadd.f32 %v1498_v62, %v4883_v35 }
 0x230   : > { %v1763_v1 = vadd.f32 %v1762_v61, %v1674_v60  ;;  %1537 = vmatmul.bf16.gmra.mxu0 %v4756_v14  ;;  %v1588_v15 = vadd.f32 %v1587_v0, %v1499_v6 }
 0x231   : > { %1626 = vmatmul.bf16.gmra.mxu1 %v4760_v19 }
 0x232   : > { %v2205_v4 = vpack.c.bf16 %v1763_v1, %v1585_v50  ;;  %1715 = vmatmul.bf16.gmra.mxu2 %v4756_v14 }
 0x233   : > { %1804 = vmatmul.bf16.gmra.mxu3 %v4760_v19 }
 0x234   : > { %v2535_v7 = vrot.slane %v2205_v4, 4 }
 0x235   : > { %v1676_v12 = vpop.f32.mrf.mxu2  ;;  %v1500_v25 = vpop.f32.mrf.mxu0 }
 0x236   : > { %3562 = vst [vmem:[%s4897_s2 + $0xac] sm:$0xf] %v2535_v7  ;;  %v1677_v16 = vadd.f32 %v1676_v12, %v4890_v31  ;;  %v1765_v18 = vpop.f32.mrf.mxu3  ;;  %v1501_v29 = vadd.f32 %v1500_v25, %v4883_v35  ;;  %v1589_v36 = vpop.f32.mrf.mxu1 }
 0x238   : > { %v1766_v24 = vadd.f32 %v1765_v18, %v1677_v16  ;;  %v1590_v38 = vadd.f32 %v1589_v36, %v1501_v29 }
 0x23a   : > { %v2208_v39 = vpack.c.bf16 %v1766_v24, %v1588_v15  ;;  %v3871_v40 = vpack.c.bf16 %v1590_v38, %v1588_v15 }
 0x23c   : > { %v2536_v42 = vrot.slane %v2208_v39, 4  ;;  %4018 = vst [vmem:[%s4897_s2 + $0x30] sm:$0xff] %v3871_v40  }
 0x23d   : > { %v1678_v44 = vpop.f32.mrf.mxu2  ;;  %v1503_v49 = vpop.f32.mrf.mxu0 }
 0x23e   : > { %3563 = vst [vmem:[%s4897_s2 + $0xb0] sm:$0xf] %v2536_v42  ;;  %v1679_v45 = vadd.f32 %v1678_v44, %v4890_v31  ;;  %v1767_v46 = vpop.f32.mrf.mxu3  ;;  %v1592_v50 = vpop.f32.mrf.mxu1  ;;  %v1504_v56 = vadd.f32 %v1503_v49, %v4883_v35 }
 0x240   : > { %v1768_v51 = vadd.f32 %v1767_v46, %v1679_v45  ;;  %1542 = vmatmul.bf16.gmra.mxu0 %v4775_v13  ;;  %v1593_v61 = vadd.f32 %v1592_v50, %v1504_v56 }
 0x241   : > { %1631 = vmatmul.bf16.gmra.mxu1 %v4779_v20 }
 0x242   : > { %v2211_v55 = vpack.c.bf16 %v1768_v51, %v1590_v38  ;;  %1720 = vmatmul.bf16.gmra.mxu2 %v4775_v13 }
 0x243   : > { %1809 = vmatmul.bf16.gmra.mxu3 %v4779_v20 }
 0x244   : > { %v2537_v57 = vrot.slane %v2211_v55, 4 }
 0x245   : > { %v1681_v60 = vpop.f32.mrf.mxu2  ;;  %v1505_v1 = vpop.f32.mrf.mxu0 }
 0x246   : > { %3564 = vst [vmem:[%s4897_s2 + $0xb4] sm:$0xf] %v2537_v57  ;;  %v1682_v62 = vadd.f32 %v1681_v60, %v4890_v31  ;;  %v1770_v0 = vpop.f32.mrf.mxu3  ;;  %v1506_v4 = vadd.f32 %v1505_v1, %v4883_v35  ;;  %v1594_v6 = vpop.f32.mrf.mxu1 }
 0x248   : > { %v1771_v7 = vadd.f32 %v1770_v0, %v1682_v62  ;;  %v1595_v12 = vadd.f32 %v1594_v6, %v1506_v4 }
 0x24a   : > { %v2214_v15 = vpack.c.bf16 %v1771_v7, %v1593_v61  ;;  %v3876_v16 = vpack.c.bf16 %v1595_v12, %v1593_v61 }
 0x24c   : > { %v2538_v18 = vrot.slane %v2214_v15, 4  ;;  %4019 = vst [vmem:[%s4897_s2 + $0x38] sm:$0xff] %v3876_v16  }
 0x24d   : > { %v1683_v25 = vpop.f32.mrf.mxu2  ;;  %v1508_v24 = vpop.f32.mrf.mxu0 }
 0x24e   : > { %3565 = vst [vmem:[%s4897_s2 + $0xb8] sm:$0xf] %v2538_v18  ;;  %v1684_v29 = vadd.f32 %v1683_v25, %v4890_v31  ;;  %v1772_v36 = vpop.f32.mrf.mxu3  ;;  %v1597_v38 = vpop.f32.mrf.mxu1  ;;  %v1509_v42 = vadd.f32 %v1508_v24, %v4883_v35 }
 0x250   : > { %v1773_v39 = vadd.f32 %v1772_v36, %v1684_v29  ;;  %1823 = vmatmul.bf16.vlgmr.msra.gmra.mxu0 %v4542_v43  ;;  %v1598_v46 = vadd.f32 %v1597_v38, %v1509_v42 }
 0x251   : > { %1912 = vmatmul.bf16.vlgmr.msra.gmra.mxu1 %v4544_v47 }
 0x252   : > { %v2217_v40 = vpack.c.bf16 %v1773_v39, %v1595_v12  ;;  %2001 = vmatmul.bf16.vlgmr.msra.gmra.mxu2 %v4542_v43 }
 0x253   : > { %2090 = vmatmul.bf16.vlgmr.msra.gmra.mxu3 %v4544_v47 }
 0x254   : > { %v2539_v44 = vrot.slane %v2217_v40, 4 }
 0x255   : > { %v1686_v45 = vpop.f32.mrf.mxu2  ;;  %v1510_v51 = vpop.f32.mrf.mxu0 }
 0x256   : > { %3566 = vst [vmem:[%s4897_s2 + $0xbc] sm:$0xf] %v2539_v44  ;;  %v1687_v49 = vadd.f32 %v1686_v45, %v4890_v31  ;;  %v1775_v50 = vpop.f32.mrf.mxu3  ;;  %v1511_v55 = vadd.f32 %v1510_v51, %v4883_v35  ;;  %v1599_v56 = vpop.f32.mrf.mxu1 }
 0x258   : > { %v1776_v57 = vadd.f32 %v1775_v50, %v1687_v49  ;;  %v1600_v60 = vadd.f32 %v1599_v56, %v1511_v55 }
 0x25a   : > { %v2220_v61 = vpack.c.bf16 %v1776_v57, %v1598_v46  ;;  %v3881_v62 = vpack.c.bf16 %v1600_v60, %v1598_v46 }
 0x25c   : > { %v2540_v43 = vrot.slane %v2220_v61, 4  ;;  %4020 = vst [vmem:[%s4897_s2 + $0x40] sm:$0xff] %v3881_v62  }
 0x25d   : > { %v1688_v47 = vpop.f32.mrf.mxu2  ;;  %v1513_v4 = vpop.f32.mrf.mxu0 }
 0x25e   : > { %3567 = vst [vmem:[%s4897_s2 + $0xc0] sm:$0xf] %v2540_v43  ;;  %v1689_v0 = vadd.f32 %v1688_v47, %v4890_v31  ;;  %v1777_v1 = vpop.f32.mrf.mxu3  ;;  %v1602_v6 = vpop.f32.mrf.mxu1  ;;  %v1514_v15 = vadd.f32 %v1513_v4, %v4883_v35 }
 0x260   : > { %v1778_v7 = vadd.f32 %v1777_v1, %v1689_v0  ;;  %1828 = vmatmul.bf16.gmra.mxu0 %v4554_v2  ;;  %v1603_v25 = vadd.f32 %v1602_v6, %v1514_v15 }
 0x261   : > { %1917 = vmatmul.bf16.gmra.mxu1 %v4556_v3 }
 0x262   : > { %v2223_v12 = vpack.c.bf16 %v1778_v7, %v1600_v60  ;;  %2006 = vmatmul.bf16.gmra.mxu2 %v4554_v2 }
 0x263   : > { %2095 = vmatmul.bf16.gmra.mxu3 %v4556_v3 }
 0x264   : > { %v2541_v16 = vrot.slane %v2223_v12, 4 }
 0x265   : > { %v1691_v18 = vpop.f32.mrf.mxu2  ;;  %v1515_v24 = vpop.f32.mrf.mxu0 }
 0x266   : > { %3568 = vst [vmem:[%s4897_s2 + $0xc4] sm:$0xf] %v2541_v16  ;;  %v1692_v29 = vadd.f32 %v1691_v18, %v4890_v31  ;;  %v1780_v36 = vpop.f32.mrf.mxu3  ;;  %v1516_v38 = vadd.f32 %v1515_v24, %v4883_v35  ;;  %v1604_v39 = vpop.f32.mrf.mxu1 }
 0x268   : > { %v1781_v40 = vadd.f32 %v1780_v36, %v1692_v29  ;;  %v1605_v42 = vadd.f32 %v1604_v39, %v1516_v38 }
 0x26a   : > { %v2226_v44 = vpack.c.bf16 %v1781_v40, %v1603_v25  ;;  %v3886_v45 = vpack.c.bf16 %v1605_v42, %v1603_v25 }
 0x26c   : > { %v2542_v2 = vrot.slane %v2226_v44, 4  ;;  %4021 = vst [vmem:[%s4897_s2 + $0x48] sm:$0xff] %v3886_v45  }
 0x26d   : > { %v1693_v3 = vpop.f32.mrf.mxu2  ;;  %v1518_v50 = vpop.f32.mrf.mxu0 }
 0x26e   : > { %3569 = vst [vmem:[%s4897_s2 + $0xc8] sm:$0xf] %v2542_v2  ;;  %v1694_v46 = vadd.f32 %v1693_v3, %v4890_v31  ;;  %v1782_v49 = vpop.f32.mrf.mxu3  ;;  %v1607_v51 = vpop.f32.mrf.mxu1  ;;  %v1519_v57 = vadd.f32 %v1518_v50, %v4883_v35 }
 0x270   : > { %v1783_v55 = vadd.f32 %v1782_v49, %v1694_v46  ;;  %1833 = vmatmul.bf16.gmra.mxu0 %v4566_v8  ;;  %v1608_v62 = vadd.f32 %v1607_v51, %v1519_v57 }
 0x271   : > { %1922 = vmatmul.bf16.gmra.mxu1 %v4568_v9 }
 0x272   : > { %v2229_v56 = vpack.c.bf16 %v1783_v55, %v1605_v42  ;;  %2011 = vmatmul.bf16.gmra.mxu2 %v4566_v8 }
 0x273   : > { %2100 = vmatmul.bf16.gmra.mxu3 %v4568_v9 }
 0x274   : > { %v2543_v60 = vrot.slane %v2229_v56, 4 }
 0x275   : > { %v1696_v61 = vpop.f32.mrf.mxu2  ;;  %v1520_v0 = vpop.f32.mrf.mxu0 }
 0x276   : > { %3570 = vst [vmem:[%s4897_s2 + $0xcc] sm:$0xf] %v2543_v60  ;;  %v1697_v43 = vadd.f32 %v1696_v61, %v4890_v31  ;;  %v1785_v47 = vpop.f32.mrf.mxu3  ;;  %v1521_v1 = vadd.f32 %v1520_v0, %v4883_v35  ;;  %v1609_v4 = vpop.f32.mrf.mxu1 }
 0x278   : > { %v1786_v6 = vadd.f32 %v1785_v47, %v1697_v43  ;;  %v1610_v7 = vadd.f32 %v1609_v4, %v1521_v1 }
 0x27a   : > { %v2232_v12 = vpack.c.bf16 %v1786_v6, %v1608_v62  ;;  %v3891_v15 = vpack.c.bf16 %v1610_v7, %v1608_v62 }
 0x27c   : > { %v2544_v8 = vrot.slane %v2232_v12, 4  ;;  %4022 = vst [vmem:[%s4897_s2 + $0x50] sm:$0xff] %v3891_v15  }
 0x27d   : > { %v1698_v9 = vpop.f32.mrf.mxu2  ;;  %v1523_v25 = vpop.f32.mrf.mxu0 }
 0x27e   : > { %3571 = vst [vmem:[%s4897_s2 + $0xd0] sm:$0xf] %v2544_v8  ;;  %v1699_v16 = vadd.f32 %v1698_v9, %v4890_v31  ;;  %v1787_v18 = vpop.f32.mrf.mxu3  ;;  %v1612_v29 = vpop.f32.mrf.mxu1  ;;  %v1524_v38 = vadd.f32 %v1523_v25, %v4883_v35 }
 0x280   : > { %v1788_v36 = vadd.f32 %v1787_v18, %v1699_v16  ;;  %1838 = vmatmul.bf16.gmra.mxu0 %v4578_v26  ;;  %v1613_v42 = vadd.f32 %v1612_v29, %v1524_v38 }
 0x281   : > { %1927 = vmatmul.bf16.gmra.mxu1 %v4580_v27 }
 0x282   : > { %v2235_v24 = vpack.c.bf16 %v1788_v36, %v1610_v7  ;;  %2016 = vmatmul.bf16.gmra.mxu2 %v4578_v26 }
 0x283   : > { %2105 = vmatmul.bf16.gmra.mxu3 %v4580_v27 }
 0x284   : > { %v2545_v39 = vrot.slane %v2235_v24, 4 }
 0x285   : > { %v1701_v40 = vpop.f32.mrf.mxu2  ;;  %v1525_v2 = vpop.f32.mrf.mxu0 }
 0x286   : > { %3572 = vst [vmem:[%s4897_s2 + $0xd4] sm:$0xf] %v2545_v39  ;;  %v1702_v44 = vadd.f32 %v1701_v40, %v4890_v31  ;;  %v1790_v45 = vpop.f32.mrf.mxu3  ;;  %v1526_v3 = vadd.f32 %v1525_v2, %v4883_v35  ;;  %v1614_v46 = vpop.f32.mrf.mxu1 }
 0x288   : > { %v1791_v49 = vadd.f32 %v1790_v45, %v1702_v44  ;;  %v1615_v50 = vadd.f32 %v1614_v46, %v1526_v3 }
 0x28a   : > { %v2238_v51 = vpack.c.bf16 %v1791_v49, %v1613_v42  ;;  %v3896_v55 = vpack.c.bf16 %v1615_v50, %v1613_v42 }
 0x28c   : > { %v2546_v26 = vrot.slane %v2238_v51, 4  ;;  %4023 = vst [vmem:[%s4897_s2 + $0x58] sm:$0xff] %v3896_v55  }
 0x28d   : > { %v1703_v27 = vpop.f32.mrf.mxu2  ;;  %v1528_v60 = vpop.f32.mrf.mxu0 }
 0x28e   : > { %3573 = vst [vmem:[%s4897_s2 + $0xd8] sm:$0xf] %v2546_v26  ;;  %v1704_v56 = vadd.f32 %v1703_v27, %v4890_v31  ;;  %v1792_v57 = vpop.f32.mrf.mxu3  ;;  %v1617_v61 = vpop.f32.mrf.mxu1  ;;  %v1529_v47 = vadd.f32 %v1528_v60, %v4883_v35 }
 0x290   : > { %v1793_v62 = vadd.f32 %v1792_v57, %v1704_v56  ;;  %1843 = vmatmul.bf16.gmra.mxu0 %v4590_v32  ;;  %v1618_v4 = vadd.f32 %v1617_v61, %v1529_v47 }
 0x291   : > { %1932 = vmatmul.bf16.gmra.mxu1 %v4592_v33 }
 0x292   : > { %v2241_v43 = vpack.c.bf16 %v1793_v62, %v1615_v50  ;;  %2021 = vmatmul.bf16.gmra.mxu2 %v4590_v32 }
 0x293   : > { %2110 = vmatmul.bf16.gmra.mxu3 %v4592_v33 }
 0x294   : > { %v2547_v0 = vrot.slane %v2241_v43, 4 }
 0x295   : > { %v1706_v1 = vpop.f32.mrf.mxu2  ;;  %v1530_v12 = vpop.f32.mrf.mxu0 }
 0x296   : > { %3574 = vst [vmem:[%s4897_s2 + $0xdc] sm:$0xf] %v2547_v0  ;;  %v1707_v6 = vadd.f32 %v1706_v1, %v4890_v31  ;;  %v1795_v7 = vpop.f32.mrf.mxu3  ;;  %v1531_v15 = vadd.f32 %v1530_v12, %v4883_v35  ;;  %v1619_v8 = vpop.f32.mrf.mxu1 }
 0x298   : > { %v1796_v9 = vadd.f32 %v1795_v7, %v1707_v6  ;;  %v1620_v16 = vadd.f32 %v1619_v8, %v1531_v15 }
 0x29a   : > { %v2244_v18 = vpack.c.bf16 %v1796_v9, %v1618_v4  ;;  %v3901_v25 = vpack.c.bf16 %v1620_v16, %v1618_v4 }
 0x29c   : > { %v2548_v32 = vrot.slane %v2244_v18, 4  ;;  %4024 = vst [vmem:[%s4897_s2 + $0x60] sm:$0xff] %v3901_v25  }
 0x29d   : > { %v1708_v33 = vpop.f32.mrf.mxu2  ;;  %v1533_v24 = vpop.f32.mrf.mxu0 }
 0x29e   : > { %3575 = vst [vmem:[%s4897_s2 + $0xe0] sm:$0xf] %v2548_v32  ;;  %v1709_v29 = vadd.f32 %v1708_v33, %v4890_v31  ;;  %v1797_v36 = vpop.f32.mrf.mxu3  ;;  %v1622_v38 = vpop.f32.mrf.mxu1  ;;  %v1534_v42 = vadd.f32 %v1533_v24, %v4883_v35 }
 0x2a0   : > { %v1798_v39 = vadd.f32 %v1797_v36, %v1709_v29  ;;  %1848 = vmatmul.bf16.gmra.mxu0 %v4602_v52  ;;  %v1623_v2 = vadd.f32 %v1622_v38, %v1534_v42 }
 0x2a1   : > { %1937 = vmatmul.bf16.gmra.mxu1 %v4604_v53 }
 0x2a2   : > { %v2247_v40 = vpack.c.bf16 %v1798_v39, %v1620_v16  ;;  %2026 = vmatmul.bf16.gmra.mxu2 %v4602_v52 }
 0x2a3   : > { %2115 = vmatmul.bf16.gmra.mxu3 %v4604_v53 }
 0x2a4   : > { %v2549_v44 = vrot.slane %v2247_v40, 4 }
 0x2a5   : > { %v1711_v45 = vpop.f32.mrf.mxu2  ;;  %v1535_v49 = vpop.f32.mrf.mxu0 }
 0x2a6   : > { %3576 = vst [vmem:[%s4897_s2 + $0xe4] sm:$0xf] %v2549_v44  ;;  %v1712_v3 = vadd.f32 %v1711_v45, %v4890_v31  ;;  %v1800_v46 = vpop.f32.mrf.mxu3  ;;  %v1536_v50 = vadd.f32 %v1535_v49, %v4883_v35  ;;  %v1624_v51 = vpop.f32.mrf.mxu1 }
 0x2a8   : > { %v1801_v55 = vadd.f32 %v1800_v46, %v1712_v3  ;;  %v1625_v26 = vadd.f32 %v1624_v51, %v1536_v50 }
 0x2aa   : > { %v2250_v27 = vpack.c.bf16 %v1801_v55, %v1623_v2  ;;  %v3906_v56 = vpack.c.bf16 %v1625_v26, %v1623_v2 }
 0x2ac   : > { %v2550_v52 = vrot.slane %v2250_v27, 4  ;;  %4025 = vst [vmem:[%s4897_s2 + $0x68] sm:$0xff] %v3906_v56  }
 0x2ad   : > { %v1713_v53 = vpop.f32.mrf.mxu2  ;;  %v1538_v61 = vpop.f32.mrf.mxu0 }
 0x2ae   : > { %3577 = vst [vmem:[%s4897_s2 + $0xe8] sm:$0xf] %v2550_v52  ;;  %v1714_v57 = vadd.f32 %v1713_v53, %v4890_v31  ;;  %v1802_v60 = vpop.f32.mrf.mxu3  ;;  %v1627_v62 = vpop.f32.mrf.mxu1  ;;  %v1539_v0 = vadd.f32 %v1538_v61, %v4883_v35  ;;  %v5068_v53 = vperm.slane %v4880_v30, 4 }
 0x2b0   : > { %v1803_v43 = vadd.f32 %v1802_v60, %v1714_v57  ;;  %1853 = vmatmul.bf16.gmra.mxu0 %v4614_v58  ;;  %v1628_v6 = vadd.f32 %v1627_v62, %v1539_v0 }
 0x2b1   : > { %1942 = vmatmul.bf16.gmra.mxu1 %v4616_v59 }
 0x2b2   : > { %v2253_v47 = vpack.c.bf16 %v1803_v43, %v1625_v26  ;;  %2031 = vmatmul.bf16.gmra.mxu2 %v4614_v58  ;;  %v5075_v43 = vperm.slane %v4880_v30, 5 }
 0x2b3   : > { %2120 = vmatmul.bf16.gmra.mxu3 %v4616_v59 }
 0x2b4   : > { %v2551_v1 = vrot.slane %v2253_v47, 4 }
 0x2b5   : > { %v1716_v4 = vpop.f32.mrf.mxu2  ;;  %v1540_v15 = vpop.f32.mrf.mxu0 }
 0x2b6   : > { %3578 = vst [vmem:[%s4897_s2 + $0xec] sm:$0xf] %v2551_v1  ;;  %v1717_v7 = vadd.f32 %v1716_v4, %v4890_v31  ;;  %v1805_v12 = vpop.f32.mrf.mxu3  ;;  %v1541_v8 = vadd.f32 %v1540_v15, %v4883_v35  ;;  %v1629_v9 = vpop.f32.mrf.mxu1 }
 0x2b8   : > { %v1806_v16 = vadd.f32 %v1805_v12, %v1717_v7  ;;  %v1630_v18 = vadd.f32 %v1629_v9, %v1541_v8 }
 0x2ba   : > { %v2256_v25 = vpack.c.bf16 %v1806_v16, %v1628_v6  ;;  %v3911_v32 = vpack.c.bf16 %v1630_v18, %v1628_v6 }
 0x2bc   : > { %v2552_v58 = vrot.slane %v2256_v25, 4  ;;  %4026 = vst [vmem:[%s4897_s2 + $0x70] sm:$0xff] %v3911_v32  }
 0x2bd   : > { %v1718_v59 = vpop.f32.mrf.mxu2  ;;  %v1543_v36 = vpop.f32.mrf.mxu0 }
 0x2be   : > { %3579 = vst [vmem:[%s4897_s2 + $0xf0] sm:$0xf] %v2552_v58  ;;  %v1719_v33 = vadd.f32 %v1718_v59, %v4890_v31  ;;  %v1807_v29 = vpop.f32.mrf.mxu3  ;;  %v1632_v24 = vpop.f32.mrf.mxu1  ;;  %v1544_v40 = vadd.f32 %v1543_v36, %v4883_v35 }
 0x2c0   : > { %v1808_v38 = vadd.f32 %v1807_v29, %v1719_v33  ;;  %1858 = vmatmul.bf16.gmra.mxu0 %v4626_v10  ;;  %v1633_v45 = vadd.f32 %v1632_v24, %v1544_v40 }
 0x2c1   : > { %1947 = vmatmul.bf16.gmra.mxu1 %v4628_v11 }
 0x2c2   : > { %v2259_v39 = vpack.c.bf16 %v1808_v38, %v1630_v18  ;;  %2036 = vmatmul.bf16.gmra.mxu2 %v4626_v10 }
 0x2c3   : > { %2125 = vmatmul.bf16.gmra.mxu3 %v4628_v11 }
 0x2c4   : > { %v2553_v42 = vrot.slane %v2259_v39, 4 }
 0x2c5   : > { %v1721_v44 = vpop.f32.mrf.mxu2  ;;  %v1545_v46 = vpop.f32.mrf.mxu0 }
 0x2c6   : > { %3580 = vst [vmem:[%s4897_s2 + $0xf4] sm:$0xf] %v2553_v42  ;;  %v1722_v2 = vadd.f32 %v1721_v44, %v4890_v31  ;;  %v1810_v3 = vpop.f32.mrf.mxu3  ;;  %v1546_v49 = vadd.f32 %v1545_v46, %v4883_v35  ;;  %v1634_v50 = vpop.f32.mrf.mxu1 }
 0x2c8   : > { %v1811_v51 = vadd.f32 %v1810_v3, %v1722_v2  ;;  %v1635_v55 = vadd.f32 %v1634_v50, %v1546_v49 }
 0x2ca   : > { %v2262_v26 = vpack.c.bf16 %v1811_v51, %v1633_v45  ;;  %v3916_v27 = vpack.c.bf16 %v1635_v55, %v1633_v45 }
 0x2cc   : > { %v2554_v10 = vrot.slane %v2262_v26, 4  ;;  %4027 = vst [vmem:[%s4897_s2 + $0x78] sm:$0xff] %v3916_v27  }
 0x2cd   : > { %v1723_v56 = vpop.f32.mrf.mxu2  ;;  %v1824_v57 = vpop.f32.mrf.mxu0 }
 0x2ce   : > { %3581 = vst [vmem:[%s4897_s2 + $0xf8] sm:$0xf] %v2554_v10  ;;  %v1724_v11 = vadd.f32 %v1723_v56, %v4890_v31  ;;  %v1812_v52 = vpop.f32.mrf.mxu3  ;;  %v1913_v60 = vpop.f32.mrf.mxu1  ;;  %v1825_v62 = vadd.f32 %v1824_v57, %v5068_v53 }
 0x2d0   : > { %v1813_v61 = vadd.f32 %v1812_v52, %v1724_v11  ;;  %1863 = vmatmul.bf16.gmra.mxu0 %v4638_v23  ;;  %v1914_v0 = vadd.f32 %v1913_v60, %v1825_v62 }
 0x2d1   : > { %1952 = vmatmul.bf16.gmra.mxu1 %v4642_v28 }
 0x2d2   : > { %v2265_v35 = vpack.c.bf16 %v1813_v61, %v1635_v55  ;;  %2041 = vmatmul.bf16.gmra.mxu2 %v4638_v23 }
 0x2d3   : > { %2130 = vmatmul.bf16.gmra.mxu3 %v4642_v28 }
 0x2d4   : > { %v2555_v31 = vrot.slane %v2265_v35, 4 }
 0x2d5   : > { %v2002_v47 = vpop.f32.mrf.mxu2  ;;  %v1826_v6 = vpop.f32.mrf.mxu0 }
 0x2d6   : > { %3582 = vst [vmem:[%s4897_s2 + $0xfc] sm:$0xf] %v2555_v31  ;;  %v2003_v1 = vadd.f32 %v2002_v47, %v5075_v43  ;;  %v2091_v4 = vpop.f32.mrf.mxu3  ;;  %v1827_v7 = vadd.f32 %v1826_v6, %v5068_v53  ;;  %v1915_v12 = vpop.f32.mrf.mxu1 }
 0x2d8   : > { %v2092_v15 = vadd.f32 %v2091_v4, %v2003_v1  ;;  %v1916_v8 = vadd.f32 %v1915_v12, %v1827_v7 }
 0x2da   : > { %v2173_v23 = vpack.c.bf16 %v2092_v15, %v1914_v0  ;;  %v3921_v9 = vpack.c.bf16 %v1916_v8, %v1914_v0 }
 0x2dc   : > { %v2653_v30 = vrot.slane %v2173_v23, 4  ;;  %3922 = vst [vmem:[%s5082_s25] sm:$0xff] %v3921_v9  }
 0x2dd   : > { %v2004_v28 = vpop.f32.mrf.mxu2  ;;  %v1829_v25 = vpop.f32.mrf.mxu0 }
 0x2de   : > { %3583 = vst [vmem:[%s5082_s25 + $0x80] sm:$0xf] %v2653_v30  ;;  %v2005_v16 = vadd.f32 %v2004_v28, %v5075_v43  ;;  %v2093_v18 = vpop.f32.mrf.mxu3  ;;  %v1918_v32 = vpop.f32.mrf.mxu1  ;;  %v1830_v33 = vadd.f32 %v1829_v25, %v5068_v53 }
 0x2e0   : > { %v2094_v58 = vadd.f32 %v2093_v18, %v2005_v16  ;;  %1868 = vmatmul.bf16.gmra.mxu0 %v4661_v63  ;;  %v1919_v24 = vadd.f32 %v1918_v32, %v1830_v33 }
 0x2e1   : > { %1957 = vmatmul.bf16.gmra.mxu1 %v4665_v5 }
 0x2e2   : > { %v2176_v59 = vpack.c.bf16 %v2094_v58, %v1916_v8  ;;  %2046 = vmatmul.bf16.gmra.mxu2 %v4661_v63 }
 0x2e3   : > { %2135 = vmatmul.bf16.gmra.mxu3 %v4665_v5 }
 0x2e4   : > { %v2654_v29 = vrot.slane %v2176_v59, 4 }
 0x2e5   : > { %v2007_v36 = vpop.f32.mrf.mxu2  ;;  %v1831_v40 = vpop.f32.mrf.mxu0 }
 0x2e6   : > { %3584 = vst [vmem:[%s5082_s25 + $0x84] sm:$0xf] %v2654_v29  ;;  %v2008_v38 = vadd.f32 %v2007_v36, %v5075_v43  ;;  %v2096_v39 = vpop.f32.mrf.mxu3  ;;  %v1832_v42 = vadd.f32 %v1831_v40, %v5068_v53  ;;  %v1920_v44 = vpop.f32.mrf.mxu1 }
 0x2e8   : > { %v2097_v45 = vadd.f32 %v2096_v39, %v2008_v38  ;;  %v1921_v2 = vadd.f32 %v1920_v44, %v1832_v42 }
 0x2ea   : > { %v2179_v3 = vpack.c.bf16 %v2097_v45, %v1919_v24  ;;  %v3926_v46 = vpack.c.bf16 %v1921_v2, %v1919_v24 }
 0x2ec   : > { %v2655_v63 = vrot.slane %v2179_v3, 4  ;;  %4028 = vst [vmem:[%s5082_s25 + $0x8] sm:$0xff] %v3926_v46  }
 0x2ed   : > { %v2009_v5 = vpop.f32.mrf.mxu2  ;;  %v1834_v51 = vpop.f32.mrf.mxu0 }
 0x2ee   : > { %3585 = vst [vmem:[%s5082_s25 + $0x88] sm:$0xf] %v2655_v63  ;;  %v2010_v49 = vadd.f32 %v2009_v5, %v5075_v43  ;;  %v2098_v50 = vpop.f32.mrf.mxu3  ;;  %v1923_v55 = vpop.f32.mrf.mxu1  ;;  %v1835_v10 = vadd.f32 %v1834_v51, %v5068_v53 }
 0x2f0   : > { %v2099_v26 = vadd.f32 %v2098_v50, %v2010_v49  ;;  %1873 = vmatmul.bf16.gmra.mxu0 %v4680_v48  ;;  %v1924_v52 = vadd.f32 %v1923_v55, %v1835_v10 }
 0x2f1   : > { %1962 = vmatmul.bf16.gmra.mxu1 %v4684_v54 }
 0x2f2   : > { %v2182_v27 = vpack.c.bf16 %v2099_v26, %v1921_v2  ;;  %2051 = vmatmul.bf16.gmra.mxu2 %v4680_v48 }
 0x2f3   : > { %2140 = vmatmul.bf16.gmra.mxu3 %v4684_v54 }
 0x2f4   : > { %v2656_v56 = vrot.slane %v2182_v27, 4 }
 0x2f5   : > { %v2012_v11 = vpop.f32.mrf.mxu2  ;;  %v1836_v61 = vpop.f32.mrf.mxu0 }
 0x2f6   : > { %3586 = vst [vmem:[%s5082_s25 + $0x8c] sm:$0xf] %v2656_v56  ;;  %v2013_v57 = vadd.f32 %v2012_v11, %v5075_v43  ;;  %v2101_v60 = vpop.f32.mrf.mxu3  ;;  %v1837_v35 = vadd.f32 %v1836_v61, %v5068_v53  ;;  %v1925_v62 = vpop.f32.mrf.mxu1 }
 0x2f8   : > { %v2102_v31 = vadd.f32 %v2101_v60, %v2013_v57  ;;  %v1926_v47 = vadd.f32 %v1925_v62, %v1837_v35 }
 0x2fa   : > { %v2185_v0 = vpack.c.bf16 %v2102_v31, %v1924_v52  ;;  %v3931_v1 = vpack.c.bf16 %v1926_v47, %v1924_v52 }
 0x2fc   : > { %v2657_v48 = vrot.slane %v2185_v0, 4  ;;  %4029 = vst [vmem:[%s5082_s25 + $0x10] sm:$0xff] %v3931_v1  }
 0x2fd   : > { %v2014_v54 = vpop.f32.mrf.mxu2  ;;  %v1839_v7 = vpop.f32.mrf.mxu0 }
 0x2fe   : > { %3587 = vst [vmem:[%s5082_s25 + $0x90] sm:$0xf] %v2657_v48  ;;  %v2015_v4 = vadd.f32 %v2014_v54, %v5075_v43  ;;  %v2103_v6 = vpop.f32.mrf.mxu3  ;;  %v1928_v12 = vpop.f32.mrf.mxu1  ;;  %v1840_v23 = vadd.f32 %v1839_v7, %v5068_v53 }
 0x300   : > { %v2104_v15 = vadd.f32 %v2103_v6, %v2015_v4  ;;  %1878 = vmatmul.bf16.gmra.mxu0 %v4699_v37  ;;  %v1929_v28 = vadd.f32 %v1928_v12, %v1840_v23 }
 0x301   : > { %1967 = vmatmul.bf16.gmra.mxu1 %v4703_v41 }
 0x302   : > { %v2188_v8 = vpack.c.bf16 %v2104_v15, %v1926_v47  ;;  %2056 = vmatmul.bf16.gmra.mxu2 %v4699_v37 }
 0x303   : > { %2145 = vmatmul.bf16.gmra.mxu3 %v4703_v41 }
 0x304   : > { %v2658_v9 = vrot.slane %v2188_v8, 4 }
 0x305   : > { %v2017_v30 = vpop.f32.mrf.mxu2  ;;  %v1841_v25 = vpop.f32.mrf.mxu0 }
 0x306   : > { %3588 = vst [vmem:[%s5082_s25 + $0x94] sm:$0xf] %v2658_v9  ;;  %v2018_v16 = vadd.f32 %v2017_v30, %v5075_v43  ;;  %v2106_v18 = vpop.f32.mrf.mxu3  ;;  %v1842_v32 = vadd.f32 %v1841_v25, %v5068_v53  ;;  %v1930_v58 = vpop.f32.mrf.mxu1 }
 0x308   : > { %v2107_v59 = vadd.f32 %v2106_v18, %v2018_v16  ;;  %v1931_v33 = vadd.f32 %v1930_v58, %v1842_v32 }
 0x30a   : > { %v2191_v29 = vpack.c.bf16 %v2107_v59, %v1929_v28  ;;  %v3936_v36 = vpack.c.bf16 %v1931_v33, %v1929_v28 }
 0x30c   : > { %v2659_v37 = vrot.slane %v2191_v29, 4  ;;  %4030 = vst [vmem:[%s5082_s25 + $0x18] sm:$0xff] %v3936_v36  }
 0x30d   : > { %v2019_v41 = vpop.f32.mrf.mxu2  ;;  %v1844_v39 = vpop.f32.mrf.mxu0 }
 0x30e   : > { %3589 = vst [vmem:[%s5082_s25 + $0x98] sm:$0xf] %v2659_v37  ;;  %v2020_v24 = vadd.f32 %v2019_v41, %v5075_v43  ;;  %v2108_v38 = vpop.f32.mrf.mxu3  ;;  %v1933_v40 = vpop.f32.mrf.mxu1  ;;  %v1845_v45 = vadd.f32 %v1844_v39, %v5068_v53 }
 0x310   : > { %v2109_v42 = vadd.f32 %v2108_v38, %v2020_v24  ;;  %1883 = vmatmul.bf16.gmra.mxu0 %v4718_v22  ;;  %v1934_v46 = vadd.f32 %v1933_v40, %v1845_v45 }
 0x311   : > { %1972 = vmatmul.bf16.gmra.mxu1 %v4722_v34 }
 0x312   : > { %v2194_v44 = vpack.c.bf16 %v2109_v42, %v1931_v33  ;;  %2061 = vmatmul.bf16.gmra.mxu2 %v4718_v22 }
 0x313   : > { %2150 = vmatmul.bf16.gmra.mxu3 %v4722_v34 }
 0x314   : > { %v2660_v2 = vrot.slane %v2194_v44, 4 }
 0x315   : > { %v2022_v3 = vpop.f32.mrf.mxu2  ;;  %v1846_v49 = vpop.f32.mrf.mxu0 }
 0x316   : > { %3590 = vst [vmem:[%s5082_s25 + $0x9c] sm:$0xf] %v2660_v2  ;;  %v2023_v63 = vadd.f32 %v2022_v3, %v5075_v43  ;;  %v2111_v5 = vpop.f32.mrf.mxu3  ;;  %v1847_v50 = vadd.f32 %v1846_v49, %v5068_v53  ;;  %v1935_v51 = vpop.f32.mrf.mxu1 }
 0x318   : > { %v2112_v55 = vadd.f32 %v2111_v5, %v2023_v63  ;;  %v1936_v26 = vadd.f32 %v1935_v51, %v1847_v50 }
 0x31a   : > { %v2197_v27 = vpack.c.bf16 %v2112_v55, %v1934_v46  ;;  %v3941_v10 = vpack.c.bf16 %v1936_v26, %v1934_v46 }
 0x31c   : > { %v2661_v22 = vrot.slane %v2197_v27, 4  ;;  %4031 = vst [vmem:[%s5082_s25 + $0x20] sm:$0xff] %v3941_v10  }
 0x31d   : > { %v2024_v34 = vpop.f32.mrf.mxu2  ;;  %v1849_v52 = vpop.f32.mrf.mxu0 }
 0x31e   : > { %3591 = vst [vmem:[%s5082_s25 + $0xa0] sm:$0xf] %v2661_v22  ;;  %v2025_v56 = vadd.f32 %v2024_v34, %v5075_v43  ;;  %v2113_v11 = vpop.f32.mrf.mxu3  ;;  %v1938_v57 = vpop.f32.mrf.mxu1  ;;  %v1850_v35 = vadd.f32 %v1849_v52, %v5068_v53 }
 0x320   : > { %v2114_v60 = vadd.f32 %v2113_v11, %v2025_v56  ;;  %1888 = vmatmul.bf16.gmra.mxu0 %v4737_v17  ;;  %v1939_v47 = vadd.f32 %v1938_v57, %v1850_v35 }
 0x321   : > { %1977 = vmatmul.bf16.gmra.mxu1 %v4741_v21 }
 0x322   : > { %v2200_v61 = vpack.c.bf16 %v2114_v60, %v1936_v26  ;;  %2066 = vmatmul.bf16.gmra.mxu2 %v4737_v17 }
 0x323   : > { %2155 = vmatmul.bf16.gmra.mxu3 %v4741_v21 }
 0x324   : > { %v2662_v62 = vrot.slane %v2200_v61, 4 }
 0x325   : > { %v2027_v31 = vpop.f32.mrf.mxu2  ;;  %v1851_v48 = vpop.f32.mrf.mxu0 }
 0x326   : > { %3592 = vst [vmem:[%s5082_s25 + $0xa4] sm:$0xf] %v2662_v62  ;;  %v2028_v0 = vadd.f32 %v2027_v31, %v5075_v43  ;;  %v2116_v1 = vpop.f32.mrf.mxu3  ;;  %v1852_v54 = vadd.f32 %v1851_v48, %v5068_v53  ;;  %v1940_v4 = vpop.f32.mrf.mxu1 }
 0x328   : > { %v2117_v6 = vadd.f32 %v2116_v1, %v2028_v0  ;;  %v1941_v7 = vadd.f32 %v1940_v4, %v1852_v54 }
 0x32a   : > { %v2203_v12 = vpack.c.bf16 %v2117_v6, %v1939_v47  ;;  %v3946_v15 = vpack.c.bf16 %v1941_v7, %v1939_v47 }
 0x32c   : > { %v2663_v17 = vrot.slane %v2203_v12, 4  ;;  %4032 = vst [vmem:[%s5082_s25 + $0x28] sm:$0xff] %v3946_v15  }
 0x32d   : > { %v2029_v21 = vpop.f32.mrf.mxu2  ;;  %v1854_v9 = vpop.f32.mrf.mxu0 }
 0x32e   : > { %3593 = vst [vmem:[%s5082_s25 + $0xa8] sm:$0xf] %v2663_v17  ;;  %v2030_v8 = vadd.f32 %v2029_v21, %v5075_v43  ;;  %v2118_v23 = vpop.f32.mrf.mxu3  ;;  %v1943_v30 = vpop.f32.mrf.mxu1  ;;  %v1855_v18 = vadd.f32 %v1854_v9, %v5068_v53 }
 0x330   : > { %v2119_v28 = vadd.f32 %v2118_v23, %v2030_v8  ;;  %1893 = vmatmul.bf16.gmra.mxu0 %v4756_v14  ;;  %v1944_v58 = vadd.f32 %v1943_v30, %v1855_v18 }
 0x331   : > { %1982 = vmatmul.bf16.gmra.mxu1 %v4760_v19 }
 0x332   : > { %v2206_v16 = vpack.c.bf16 %v2119_v28, %v1941_v7  ;;  %2071 = vmatmul.bf16.gmra.mxu2 %v4756_v14 }
 0x333   : > { %2160 = vmatmul.bf16.gmra.mxu3 %v4760_v19 }
 0x334   : > { %v2664_v25 = vrot.slane %v2206_v16, 4 }
 0x335   : > { %v2032_v32 = vpop.f32.mrf.mxu2  ;;  %v1856_v29 = vpop.f32.mrf.mxu0 }
 0x336   : > { %3594 = vst [vmem:[%s5082_s25 + $0xac] sm:$0xf] %v2664_v25  ;;  %v2033_v59 = vadd.f32 %v2032_v32, %v5075_v43  ;;  %v2121_v33 = vpop.f32.mrf.mxu3  ;;  %v1857_v36 = vadd.f32 %v1856_v29, %v5068_v53  ;;  %v1945_v37 = vpop.f32.mrf.mxu1 }
 0x338   : > { %v2122_v41 = vadd.f32 %v2121_v33, %v2033_v59  ;;  %v1946_v24 = vadd.f32 %v1945_v37, %v1857_v36 }
 0x33a   : > { %v2209_v38 = vpack.c.bf16 %v2122_v41, %v1944_v58  ;;  %v3951_v39 = vpack.c.bf16 %v1946_v24, %v1944_v58 }
 0x33c   : > { %v2665_v14 = vrot.slane %v2209_v38, 4  ;;  %4033 = vst [vmem:[%s5082_s25 + $0x30] sm:$0xff] %v3951_v39  }
 0x33d   : > { %v2034_v19 = vpop.f32.mrf.mxu2  ;;  %v1859_v44 = vpop.f32.mrf.mxu0 }
 0x33e   : > { %3595 = vst [vmem:[%s5082_s25 + $0xb0] sm:$0xf] %v2665_v14  ;;  %v2035_v40 = vadd.f32 %v2034_v19, %v5075_v43  ;;  %v2123_v42 = vpop.f32.mrf.mxu3  ;;  %v1948_v45 = vpop.f32.mrf.mxu1  ;;  %v1860_v46 = vadd.f32 %v1859_v44, %v5068_v53 }
 0x340   : > { %v2124_v2 = vadd.f32 %v2123_v42, %v2035_v40  ;;  %1898 = vmatmul.bf16.gmra.mxu0 %v4775_v13  ;;  %v1949_v49 = vadd.f32 %v1948_v45, %v1860_v46 }
 0x341   : > { %1987 = vmatmul.bf16.gmra.mxu1 %v4779_v20 }
 0x342   : > { %v2212_v3 = vpack.c.bf16 %v2124_v2, %v1946_v24  ;;  %2076 = vmatmul.bf16.gmra.mxu2 %v4775_v13 }
 0x343   : > { %2165 = vmatmul.bf16.gmra.mxu3 %v4779_v20 }
 0x344   : > { %v2666_v63 = vrot.slane %v2212_v3, 4 }
 0x345   : > { %v2037_v5 = vpop.f32.mrf.mxu2  ;;  %v1861_v55 = vpop.f32.mrf.mxu0 }
 0x346   : > { %3596 = vst [vmem:[%s5082_s25 + $0xb4] sm:$0xf] %v2666_v63  ;;  %v2038_v50 = vadd.f32 %v2037_v5, %v5075_v43  ;;  %v2126_v51 = vpop.f32.mrf.mxu3  ;;  %v1862_v26 = vadd.f32 %v1861_v55, %v5068_v53  ;;  %v1950_v27 = vpop.f32.mrf.mxu1 }
 0x348   : > { %v2127_v10 = vadd.f32 %v2126_v51, %v2038_v50  ;;  %v1951_v22 = vadd.f32 %v1950_v27, %v1862_v26 }
 0x34a   : > { %v2215_v34 = vpack.c.bf16 %v2127_v10, %v1949_v49  ;;  %v3956_v13 = vpack.c.bf16 %v1951_v22, %v1949_v49 }
 0x34c   : > { %v2667_v56 = vrot.slane %v2215_v34, 4  ;;  %4034 = vst [vmem:[%s5082_s25 + $0x38] sm:$0xff] %v3956_v13  }
 0x34d   : > { %v2039_v20 = vpop.f32.mrf.mxu2  ;;  %v1864_v57 = vpop.f32.mrf.mxu0 }
 0x34e   : > { %3597 = vst [vmem:[%s5082_s25 + $0xb8] sm:$0xf] %v2667_v56  ;;  %v2040_v11 = vadd.f32 %v2039_v20, %v5075_v43  ;;  %v2128_v52 = vpop.f32.mrf.mxu3  ;;  %v1953_v60 = vpop.f32.mrf.mxu1  ;;  %v1865_v62 = vadd.f32 %v1864_v57, %v5068_v53 }
 0x350   : > { %v2129_v61 = vadd.f32 %v2128_v52, %v2040_v11  ;;  %v1954_v0 = vadd.f32 %v1953_v60, %v1865_v62 }
 0x352   : > { %v2218_v35 = vpack.c.bf16 %v2129_v61, %v1951_v22 }
 0x354   : > { %v2668_v31 = vrot.slane %v2218_v35, 4 }
 0x355   : > { %v2042_v47 = vpop.f32.mrf.mxu2  ;;  %v1866_v54 = vpop.f32.mrf.mxu0 }
 0x356   : > { %3598 = vst [vmem:[%s5082_s25 + $0xbc] sm:$0xf] %v2668_v31  ;;  %v2043_v1 = vadd.f32 %v2042_v47, %v5075_v43  ;;  %v2131_v48 = vpop.f32.mrf.mxu3  ;;  %v1867_v4 = vadd.f32 %v1866_v54, %v5068_v53  ;;  %v1955_v6 = vpop.f32.mrf.mxu1 }
 0x358   : > { %v2132_v7 = vadd.f32 %v2131_v48, %v2043_v1  ;;  %v1956_v12 = vadd.f32 %v1955_v6, %v1867_v4 }
 0x35a   : > { %v2221_v15 = vpack.c.bf16 %v2132_v7, %v1954_v0 }
 0x35b   : > { %4260 = shalt.err (!%p4257_p0)
}
 0x35c   : > { %s4387_s2 = smov 64   ;;  %s4388_s6 = smov 4   ;;  %v3961_v17 = vpack.c.bf16 %v1956_v12, %v1954_v0  ;;  %v2669_v21 = vrot.slane %v2221_v15, 4 }
 0x35d   : > { %4054 = dma.vmem_to_hbm [thread:$0]  (%p4500_p7), %s2795_s11, 4096, %s2797_s21, %s5177_s12, %s4387_s2, %s4387_s2, %s4388_s6   ;;  %v2044_v8 = vpop.f32.mrf.mxu2  ;;  %v1869_v30 = vpop.f32.mrf.mxu0 }
 0x35e   : > { %s2774_s9 = scalar_lea.hbm %s5312_s3, %s5166_s26  ;;  %s2775_s24 = sshll.u32 %s4658_s1, 4  ;;  %4035 = vst [vmem:[%s5082_s25 + $0x40] sm:$0xff] %v3961_v17   ;;  %v2045_v23 = vadd.f32 %v2044_v8, %v5075_v43  ;;  %v2133_v9 = vpop.f32.mrf.mxu3  ;;  %v1958_v28 = vpop.f32.mrf.mxu1  ;;  %s2776_s24 = int_to_ptr.vmem [resolvable:$true] %s2775_s24 }
 0x35f   : > { %s2777_s13 = sshll.u32 %s2774_s9, 4  ;;  %3599 = vst [vmem:[%s5082_s25 + $0xc0] sm:$0xf] %v2669_v21  ;;  %s2751_s11 = scalar_lea.sflag [#allocation4], %s4521_s17  ;;  %s2778_s13 = int_to_ptr.hbm [resolvable:$true] %s2777_s13 }
 0x360   : > { %s4275_s21 = sshra.s32 %s2778_s13, 4  ;;  %s4281_s30 = scalar_lea.hbm %s5312_s3, 512  ;;  %s4276_s21 = int_to_ptr.hbm [resolvable:$true] %s4275_s21 }
 0x361   : > { %s4277_s14 = scalar_lea.hbm %s4276_s21, 256  ;;  %p4282_p2 = scmp.lt.s32.totalorder %s4276_s21, %s5312_s3 }
 0x362   : > { %p4278_p3 = scmp.ne.s32.totalorder %s4276_s21, %s4277_s14  ;;  %p4283_p1 = scmp.lt.s32.totalorder %s4281_s30, %s4277_s14 }
 0x364   : > { %p4279_p5 = pnand %p4278_p3, %p4500_p7  ;;  %p4284_p4 = por %p4283_p1, %p4282_p2 }
 0x366   : > { %p4280_p9 = pneg %p4279_p5 }
 0x368   : > { %p4285_p8 = pnand %p4284_p4, %p4280_p9 }
 0x36a   : > { %4288 = shalt.err (!%p4285_p8)
}
 0x36b   : > { %4053 = dma.vmem_to_hbm [thread:$0]  (%p4500_p7), %s2776_s24, 4096, %s2778_s13, %s2751_s11, %s4387_s2, %s4387_s2, %s4388_s6   ;;  %v2134_v16 = vadd.f32 %v2133_v9, %v2045_v23  ;;  %v1870_v25 = vadd.f32 %v1869_v30, %v5068_v53  ;;  %v2047_v58 = vpop.f32.mrf.mxu2  ;;  %v2136_v29 = vpop.f32.mrf.mxu3 }
 0x36c   : > { %v2048_v33 = vadd.f32 %v2047_v58, %v5075_v43  ;;  %v1871_v36 = vpop.f32.mrf.mxu0  ;;  %v1960_v41 = vpop.f32.mrf.mxu1  ;;  %s2812_s7 = scalar_lea.hbm %s5314_s5, %s5166_s26  ;;  %s2813_s24 = sshll.u32 %s5082_s25, 4  ;;  %s2814_s24 = int_to_ptr.vmem [resolvable:$true] %s2813_s24 }
 0x36d   : > { %v2224_v18 = vpack.c.bf16 %v2134_v16, %v1956_v12  ;;  %v1959_v59 = vadd.f32 %v1958_v28, %v1870_v25  ;;  %v1872_v37 = vadd.f32 %v1871_v36, %v5068_v53  ;;  %s2815_s9 = sshll.u32 %s2812_s7, 4  ;;  %s4309_s26 = scalar_lea.hbm %s5314_s5, 512  ;;  %s2816_s9 = int_to_ptr.hbm [resolvable:$true] %s2815_s9 }
 0x36e   : > { %v2137_v24 = vadd.f32 %v2136_v29, %v2048_v33  ;;  %s4303_s13 = sshra.s32 %s2816_s9, 4  ;;  %s4304_s13 = int_to_ptr.hbm [resolvable:$true] %s4303_s13 }
 0x36f   : > { %v2670_v32 = vrot.slane %v2224_v18, 4  ;;  %v1961_v38 = vadd.f32 %v1960_v41, %v1872_v37  ;;  %s4305_s11 = scalar_lea.hbm %s4304_s13, 256  ;;  %p4310_p0 = scmp.lt.s32.totalorder %s4304_s13, %s5314_s5 }
 0x370   : > { %v2227_v39 = vpack.c.bf16 %v2137_v24, %v1959_v59  ;;  %p4306_p10 = scmp.ne.s32.totalorder %s4304_s13, %s4305_s11  ;;  %p4311_p3 = scmp.lt.s32.totalorder %s4309_s26, %s4305_s11 }
 0x371   : > { %3600 = vst [vmem:[%s5082_s25 + $0xc4] sm:$0xf] %v2670_v32  ;;  %v3966_v14 = vpack.c.bf16 %v1961_v38, %v1959_v59 }
 0x372   : > { %v2671_v19 = vrot.slane %v2227_v39, 4  ;;  %p4307_p12 = pnand %p4306_p10, %p4500_p7  ;;  %p4312_p5 = por %p4311_p3, %p4310_p0 }
 0x373   : > { %4036 = vst [vmem:[%s5082_s25 + $0x48] sm:$0xff] %v3966_v14   ;;  %v2049_v40 = vpop.f32.mrf.mxu2  ;;  %v2138_v44 = vpop.f32.mrf.mxu3 }
 0x374   : > { %3601 = vst [vmem:[%s5082_s25 + $0xc8] sm:$0xf] %v2671_v19  ;;  %v2050_v42 = vadd.f32 %v2049_v40, %v5075_v43  ;;  %v1874_v45 = vpop.f32.mrf.mxu0  ;;  %v1963_v2 = vpop.f32.mrf.mxu1  ;;  %p4308_p13 = pneg %p4307_p12 }
 0x375   : > { %v1875_v63 = vadd.f32 %v1874_v45, %v5068_v53 }
 0x376   : > { %v2139_v3 = vadd.f32 %v2138_v44, %v2050_v42  ;;  %p4313_p9 = pnand %p4312_p5, %p4308_p13 }
 0x377   : > { %v1964_v50 = vadd.f32 %v1963_v2, %v1875_v63 }
 0x378   : > { %v2230_v46 = vpack.c.bf16 %v2139_v3, %v1961_v38 }
 0x37a   : > { %v2672_v5 = vrot.slane %v2230_v46, 4 }
 0x37b   : > { %v2052_v49 = vpop.f32.mrf.mxu2  ;;  %v2141_v55 = vpop.f32.mrf.mxu3 }
 0x37c   : > { %3602 = vst [vmem:[%s5082_s25 + $0xcc] sm:$0xf] %v2672_v5  ;;  %v2053_v51 = vadd.f32 %v2052_v49, %v5075_v43  ;;  %v1876_v26 = vpop.f32.mrf.mxu0  ;;  %v1965_v10 = vpop.f32.mrf.mxu1 }
 0x37d   : > { %v1877_v27 = vadd.f32 %v1876_v26, %v5068_v53 }
 0x37e   : > { %v2142_v22 = vadd.f32 %v2141_v55, %v2053_v51 }
 0x37f   : > { %v1966_v34 = vadd.f32 %v1965_v10, %v1877_v27 }
 0x380   : > { %v2233_v13 = vpack.c.bf16 %v2142_v22, %v1964_v50 }
 0x381   : > { %v3971_v56 = vpack.c.bf16 %v1966_v34, %v1964_v50 }
 0x382   : > { %v2673_v20 = vrot.slane %v2233_v13, 4 }
 0x383   : > { %4037 = vst [vmem:[%s5082_s25 + $0x50] sm:$0xff] %v3971_v56   ;;  %v2054_v11 = vpop.f32.mrf.mxu2  ;;  %v2143_v57 = vpop.f32.mrf.mxu3 }
 0x384   : > { %3603 = vst [vmem:[%s5082_s25 + $0xd0] sm:$0xf] %v2673_v20  ;;  %v2055_v52 = vadd.f32 %v2054_v11, %v5075_v43  ;;  %v1879_v60 = vpop.f32.mrf.mxu0  ;;  %v1968_v61 = vpop.f32.mrf.mxu1 }
 0x385   : > { %v1880_v31 = vadd.f32 %v1879_v60, %v5068_v53 }
 0x386   : > { %v2144_v35 = vadd.f32 %v2143_v57, %v2055_v52 }
 0x387   : > { %v1969_v1 = vadd.f32 %v1968_v61, %v1880_v31 }
 0x388   : > { %v2236_v62 = vpack.c.bf16 %v2144_v35, %v1966_v34 }
 0x38a   : > { %v2674_v47 = vrot.slane %v2236_v62, 4 }
 0x38b   : > { %v2057_v0 = vpop.f32.mrf.mxu2  ;;  %v2146_v54 = vpop.f32.mrf.mxu3 }
 0x38c   : > { %3604 = vst [vmem:[%s5082_s25 + $0xd4] sm:$0xf] %v2674_v47  ;;  %v2058_v48 = vadd.f32 %v2057_v0, %v5075_v43  ;;  %v1881_v4 = vpop.f32.mrf.mxu0  ;;  %v1970_v7 = vpop.f32.mrf.mxu1 }
 0x38d   : > { %v1882_v6 = vadd.f32 %v1881_v4, %v5068_v53 }
 0x38e   : > { %v2147_v12 = vadd.f32 %v2146_v54, %v2058_v48 }
 0x38f   : > { %v1971_v15 = vadd.f32 %v1970_v7, %v1882_v6 }
 0x390   : > { %v2239_v17 = vpack.c.bf16 %v2147_v12, %v1969_v1 }
 0x391   : > { %v3976_v21 = vpack.c.bf16 %v1971_v15, %v1969_v1 }
 0x392   : > { %v2675_v8 = vrot.slane %v2239_v17, 4 }
 0x393   : > { %4038 = vst [vmem:[%s5082_s25 + $0x58] sm:$0xff] %v3976_v21   ;;  %v2059_v23 = vpop.f32.mrf.mxu2  ;;  %v2148_v30 = vpop.f32.mrf.mxu3 }
 0x394   : > { %3605 = vst [vmem:[%s5082_s25 + $0xd8] sm:$0xf] %v2675_v8  ;;  %v2060_v9 = vadd.f32 %v2059_v23, %v5075_v43  ;;  %v1884_v28 = vpop.f32.mrf.mxu0  ;;  %v1973_v16 = vpop.f32.mrf.mxu1 }
 0x395   : > { %v1885_v32 = vadd.f32 %v1884_v28, %v5068_v53 }
 0x396   : > { %v2149_v18 = vadd.f32 %v2148_v30, %v2060_v9 }
 0x397   : > { %v1974_v33 = vadd.f32 %v1973_v16, %v1885_v32 }
 0x398   : > { %v2242_v25 = vpack.c.bf16 %v2149_v18, %v1971_v15 }
 0x39a   : > { %v2676_v58 = vrot.slane %v2242_v25, 4 }
 0x39b   : > { %v2062_v59 = vpop.f32.mrf.mxu2  ;;  %v2151_v36 = vpop.f32.mrf.mxu3 }
 0x39c   : > { %3606 = vst [vmem:[%s5082_s25 + $0xdc] sm:$0xf] %v2676_v58  ;;  %v2063_v29 = vadd.f32 %v2062_v59, %v5075_v43  ;;  %v1886_v37 = vpop.f32.mrf.mxu0  ;;  %v1975_v24 = vpop.f32.mrf.mxu1 }
 0x39d   : > { %v1887_v41 = vadd.f32 %v1886_v37, %v5068_v53 }
 0x39e   : > { %v2152_v38 = vadd.f32 %v2151_v36, %v2063_v29 }
 0x39f   : > { %v1976_v39 = vadd.f32 %v1975_v24, %v1887_v41 }
 0x3a0   : > { %v2245_v14 = vpack.c.bf16 %v2152_v38, %v1974_v33 }
 0x3a1   : > { %v3981_v19 = vpack.c.bf16 %v1976_v39, %v1974_v33 }
 0x3a2   : > { %v2677_v40 = vrot.slane %v2245_v14, 4 }
 0x3a3   : > { %4039 = vst [vmem:[%s5082_s25 + $0x60] sm:$0xff] %v3981_v19   ;;  %v2064_v42 = vpop.f32.mrf.mxu2  ;;  %v2153_v45 = vpop.f32.mrf.mxu3 }
 0x3a4   : > { %3607 = vst [vmem:[%s5082_s25 + $0xe0] sm:$0xf] %v2677_v40  ;;  %v2065_v44 = vadd.f32 %v2064_v42, %v5075_v43  ;;  %v1889_v2 = vpop.f32.mrf.mxu0  ;;  %v1978_v3 = vpop.f32.mrf.mxu1 }
 0x3a5   : > { %v1890_v5 = vadd.f32 %v1889_v2, %v5068_v53 }
 0x3a6   : > { %v2154_v46 = vadd.f32 %v2153_v45, %v2065_v44 }
 0x3a7   : > { %v1979_v51 = vadd.f32 %v1978_v3, %v1890_v5 }
 0x3a8   : > { %v2248_v63 = vpack.c.bf16 %v2154_v46, %v1976_v39 }
 0x3aa   : > { %v2678_v49 = vrot.slane %v2248_v63, 4 }
 0x3ab   : > { %v2067_v50 = vpop.f32.mrf.mxu2  ;;  %v2156_v26 = vpop.f32.mrf.mxu3 }
 0x3ac   : > { %3608 = vst [vmem:[%s5082_s25 + $0xe4] sm:$0xf] %v2678_v49  ;;  %v2068_v55 = vadd.f32 %v2067_v50, %v5075_v43  ;;  %v1891_v27 = vpop.f32.mrf.mxu0  ;;  %v1980_v22 = vpop.f32.mrf.mxu1 }
 0x3ad   : > { %v1892_v10 = vadd.f32 %v1891_v27, %v5068_v53 }
 0x3ae   : > { %v2157_v34 = vadd.f32 %v2156_v26, %v2068_v55 }
 0x3af   : > { %v1981_v13 = vadd.f32 %v1980_v22, %v1892_v10 }
 0x3b0   : > { %v2251_v56 = vpack.c.bf16 %v2157_v34, %v1979_v51 }
 0x3b1   : > { %v3986_v20 = vpack.c.bf16 %v1981_v13, %v1979_v51 }
 0x3b2   : > { %v2679_v11 = vrot.slane %v2251_v56, 4 }
 0x3b3   : > { %4040 = vst [vmem:[%s5082_s25 + $0x68] sm:$0xff] %v3986_v20   ;;  %v2069_v52 = vpop.f32.mrf.mxu2  ;;  %v2158_v60 = vpop.f32.mrf.mxu3 }
 0x3b4   : > { %3609 = vst [vmem:[%s5082_s25 + $0xe8] sm:$0xf] %v2679_v11  ;;  %v2070_v57 = vadd.f32 %v2069_v52, %v5075_v43  ;;  %v1894_v61 = vpop.f32.mrf.mxu0  ;;  %v1983_v35 = vpop.f32.mrf.mxu1 }
 0x3b5   : > { %v1895_v47 = vadd.f32 %v1894_v61, %v5068_v53 }
 0x3b6   : > { %v2159_v62 = vadd.f32 %v2158_v60, %v2070_v57 }
 0x3b7   : > { %v1984_v48 = vadd.f32 %v1983_v35, %v1895_v47 }
 0x3b8   : > { %v2254_v31 = vpack.c.bf16 %v2159_v62, %v1981_v13 }
 0x3ba   : > { %v2680_v0 = vrot.slane %v2254_v31, 4 }
 0x3bb   : > { %v2072_v1 = vpop.f32.mrf.mxu2  ;;  %v2161_v4 = vpop.f32.mrf.mxu3 }
 0x3bc   : > { %3610 = vst [vmem:[%s5082_s25 + $0xec] sm:$0xf] %v2680_v0  ;;  %v2073_v54 = vadd.f32 %v2072_v1, %v5075_v43  ;;  %v1896_v6 = vpop.f32.mrf.mxu0  ;;  %v1985_v12 = vpop.f32.mrf.mxu1 }
 0x3bd   : > { %v1897_v7 = vadd.f32 %v1896_v6, %v5068_v53 }
 0x3be   : > { %v2162_v15 = vadd.f32 %v2161_v4, %v2073_v54 }
 0x3bf   : > { %v1986_v17 = vadd.f32 %v1985_v12, %v1897_v7 }
 0x3c0   : > { %v2257_v21 = vpack.c.bf16 %v2162_v15, %v1984_v48 }
 0x3c1   : > { %v3991_v8 = vpack.c.bf16 %v1986_v17, %v1984_v48 }
 0x3c2   : > { %v2681_v23 = vrot.slane %v2257_v21, 4 }
 0x3c3   : > { %4041 = vst [vmem:[%s5082_s25 + $0x70] sm:$0xff] %v3991_v8   ;;  %v2074_v9 = vpop.f32.mrf.mxu2  ;;  %v2163_v28 = vpop.f32.mrf.mxu3 }
 0x3c4   : > { %3611 = vst [vmem:[%s5082_s25 + $0xf0] sm:$0xf] %v2681_v23  ;;  %v2075_v30 = vadd.f32 %v2074_v9, %v5075_v43  ;;  %v1899_v16 = vpop.f32.mrf.mxu0  ;;  %v1988_v18 = vpop.f32.mrf.mxu1 }
 0x3c5   : > { %v1900_v58 = vadd.f32 %v1899_v16, %v5068_v53 }
 0x3c6   : > { %v2164_v25 = vadd.f32 %v2163_v28, %v2075_v30 }
 0x3c7   : > { %v1989_v29 = vadd.f32 %v1988_v18, %v1900_v58 }
 0x3c8   : > { %v2260_v32 = vpack.c.bf16 %v2164_v25, %v1986_v17 }
 0x3ca   : > { %v2682_v59 = vrot.slane %v2260_v32, 4 }
 0x3cb   : > { %v2077_v33 = vpop.f32.mrf.mxu2  ;;  %v2166_v37 = vpop.f32.mrf.mxu3 }
 0x3cc   : > { %3612 = vst [vmem:[%s5082_s25 + $0xf4] sm:$0xf] %v2682_v59  ;;  %v2078_v36 = vadd.f32 %v2077_v33, %v5075_v43  ;;  %v1901_v41 = vpop.f32.mrf.mxu0  ;;  %v1990_v39 = vpop.f32.mrf.mxu1 }
 0x3cd   : > { %v1902_v24 = vadd.f32 %v1901_v41, %v5068_v53 }
 0x3ce   : > { %v2167_v38 = vadd.f32 %v2166_v37, %v2078_v36 }
 0x3cf   : > { %v1991_v14 = vadd.f32 %v1990_v39, %v1902_v24 }
 0x3d0   : > { %v2263_v19 = vpack.c.bf16 %v2167_v38, %v1989_v29 }
 0x3d1   : > { %v3996_v40 = vpack.c.bf16 %v1991_v14, %v1989_v29 }
 0x3d2   : > { %v2683_v42 = vrot.slane %v2263_v19, 4 }
 0x3d3   : > { %4042 = vst [vmem:[%s5082_s25 + $0x78] sm:$0xff] %v3996_v40   ;;  %v2079_v44 = vpop.f32.mrf.mxu2  ;;  %v2168_v2 = vpop.f32.mrf.mxu3 }
 0x3d4   : > { %3613 = vst [vmem:[%s5082_s25 + $0xf8] sm:$0xf] %v2683_v42  ;;  %v2080_v45 = vadd.f32 %v2079_v44, %v5075_v43 }
 0x3d6   : > { %v2169_v3 = vadd.f32 %v2168_v2, %v2080_v45 }
 0x3d8   : > { %v2266_v53 = vpack.c.bf16 %v2169_v3, %v1991_v14 }
 0x3da   : > { %v2684_v46 = vrot.slane %v2266_v53, 4 }
 0x3dc   : > { %3614 = vst [vmem:[%s5082_s25 + $0xfc] sm:$0xf] %v2684_v46 }
 0x3dd   : > { %4316 = shalt.err (!%p4313_p9)
}
 0x3de   : > { %4055 = dma.vmem_to_hbm [thread:$0]  (%p4500_p7), %s2814_s24, 4096, %s2816_s9, %s5177_s12, %s4387_s2, %s4387_s2, %s4388_s6  }
 0x3df PF: > { %s2830_s25 = sand.u32 1, %s4359_s18   ;;  %p4071_p2 = pnand %p2996_p11, %p4466_p6 }
 0x3e0   : > { %s2831_s30 = scalar_lea.sflag [#allocation4], %s2830_s25 }
 0x3e1   : > { %p4072_p1 = pneg %p4071_p2 }
 0x3e3   : > { %4350 = dma.done.wait (%p4072_p1), %s2831_s30, 4096  }
 0x3e4   : > { %4352 = vsyncadd (%p4072_p1), %s2831_s30, 4294963200  ;;  %s5327_s8 = sadd.s32 4294967294, %s4379_s23  }
 0x3e5   : > { %s2840_s29 = sand.u32 1, %s5327_s8  }
 0x3e6   : > { %s2841_s28 = scalar_lea.sflag [#allocation10], %s2840_s29 }
 0x3e7   : > { %4354 = dma.done.wait (%p4072_p1), %s2841_s28, 8192  }
 0x3e8   : > { %4356 = vsyncadd (%p4072_p1), %s2841_s28, 4294959104  ;;  %s26_s23 = sadd.s32 1, %s4379_s23   ;;  %s5328_s27 = sld [smem:[#allocation16_spill]] }
 0x3e9   : > { %p23_p7 = scmp.ge.s32.totalorder %s26_s23, 4   ;;  %s5329_s18 = smov %s4363_s19 }
 0x3ea   : > { %s5330_s19 = smov %s4367_s20  ;;  %s5331_s20 = smov %s4509_s10 }
 0x3eb   : > { %s5332_s21 = smov %s4375_s22  ;;  %25 = sbr.rel (!%p23_p7) target bundleno = 12 (0xc), region = 120 }
 0x3ee   : > { %s5333_s22 = smov %s5328_s27 }
 0x3f0   :  { %2857 = vsyncpa [#allocation3], 1 }
 0x3f1   :  { %2859 = vsyncpa [#allocation3 + $0x1], 1 }
 0x3f2   :  { %2860 = vsyncpa [#allocation6], 1 }
 0x3f3   :  { %2861 = vsyncpa [#allocation4], 1 }
 0x3f4   :  { %2863 = vsyncpa [#allocation4 + $0x1], 1 }
 0x3f5   :  { %2864 = vsyncpa [#allocation10], 1 }
 0x3f6   :  { %2866 = vsyncpa [#allocation10 + $0x1], 1 }

</bundles_post_ra>
